<compile_context>
chip_gen: v7x
topology: tpu7x:2x2x1
jax: 0.10.0
libtpu: 0.0.40
codegen_flags: <defaults>
</compile_context>

<pallas_src>
import functools
import math

import jax
import jax.numpy as jnp
from jax.experimental import pallas as pl
from jax.experimental.pallas import tpu as pltpu


MXU_DTYPE = jnp.bfloat16      # matmul operand dtype (accumulation is always f32)
ACT_DTYPE = jnp.bfloat16      # intermediate activation storage between kernels
_MAX_ROW_TILE = 1024
_SELF_EPS = 1e-6              # diagonal of the neg-distance matrix (self wins top-1)


def _round_up(x, m):
    return ((x + m - 1) // m) * m


@functools.lru_cache(maxsize=None)
def _vmem_limit_bytes():
    # ~3/4 of physical VMEM, capped at 64 MiB: 64 MiB on v5e/v6e (128 MiB parts),
    # ~48 MiB on v7x (64 MiB part) -- big tiles without OOM/spill on any generation.
    cap = 128 * 1024 * 1024
    try:
        cap = int(pltpu.get_tpu_info().vmem_capacity_bytes)
    except Exception:
        pass
    return max(32 * 1024 * 1024, min(64 * 1024 * 1024, (cap // 4) * 3))


def _cparams(*sem):
    return pltpu.CompilerParams(dimension_semantics=sem,
                                vmem_limit_bytes=_vmem_limit_bytes())


# ----------------------------- fused MLP chain --------------------------------

def _mlp_kernel(*refs, relu_flags):
    n_layers = len(relu_flags)
    o_ref = refs[-1]
    h = refs[0][...]
    for i in range(n_layers):
        w = refs[1 + 2 * i][...]
        b = refs[2 + 2 * i][...]
        h = jnp.dot(h.astype(MXU_DTYPE), w,
                    preferred_element_type=jnp.float32) + b
        if relu_flags[i]:
            h = jnp.maximum(h, 0.0)
    o_ref[...] = h.astype(o_ref.dtype)


def pallas_mlp(x, layers, out_dtype=jnp.float32):
    """Fused chain of (w, b|None, relu) layers; x: (M, Cin). One HBM round trip."""
    M, _ = x.shape
    tm = min(_MAX_ROW_TILE, _round_up(M, 16))
    Mp = _round_up(M, tm)
    if Mp != M:
        x = jnp.pad(x, ((0, Mp - M), (0, 0)))
    relu_flags = tuple(bool(r) for _, _, r in layers)
    cout_last = layers[-1][0].shape[1]

    operands = [x]
    in_specs = [pl.BlockSpec((tm, x.shape[1]), lambda i: (i, 0))]
    for w, b, _ in layers:
        cin, cout = w.shape
        operands.append(w.astype(MXU_DTYPE))
        in_specs.append(pl.BlockSpec((cin, cout), lambda i: (0, 0)))
        bvec = jnp.zeros((cout,), jnp.float32) if b is None else b.astype(jnp.float32)
        operands.append(bvec.reshape(1, cout))
        in_specs.append(pl.BlockSpec((1, cout), lambda i: (0, 0)))

    out = pl.pallas_call(
        functools.partial(_mlp_kernel, relu_flags=relu_flags),
        out_shape=jax.ShapeDtypeStruct((Mp, cout_last), out_dtype),
        grid_spec=pltpu.PrefetchScalarGridSpec(
            num_scalar_prefetch=0,
            grid=(Mp // tm,),
            in_specs=in_specs,
            out_specs=pl.BlockSpec((tm, cout_last), lambda i: (i, 0)),
        ),
        compiler_params=_cparams("parallel"),
    )(*operands)
    return out[:M] if Mp != M else out


# --------------- graph stage 2: merged matmul fused with global max -----------

def _matmul_globalmax_kernel(x_ref, w_ref, b_ref, o_ref, *,
                             n_valid, tn, tiles_per_chunk, mask_rows):
    c = pl.program_id(1)
    t = pl.program_id(2)
    h = jnp.dot(x_ref[0].astype(MXU_DTYPE), w_ref[...],
                preferred_element_type=jnp.float32) + b_ref[...]       # (tn, cout)
    if mask_rows:                                   # mask padded rows out of the max
        row0 = (c * tiles_per_chunk + t) * tn
        rows = jax.lax.broadcasted_iota(jnp.int32, h.shape, 0) + row0
        h = jnp.where(rows < n_valid, h, -jnp.inf)
    tile_max = jnp.max(h, axis=0, keepdims=True)                       # (1, cout)

    @pl.when(t == 0)
    def _():
        o_ref[...] = jnp.full(o_ref.shape, -jnp.inf, o_ref.dtype)

    o_ref[0] = jnp.maximum(o_ref[0], tile_max)      # resident global-max accumulator


def pallas_matmul_globalmax(x, w, b):
    """max over points (per batch) of (x @ w + b); x: (B, N, cin) -> (B, cout) f32."""
    B, N, cin = x.shape
    cout = w.shape[1]
    nc = 2 if B == 1 else 1            # give v7x's 2nd TensorCore a parallel axis at B==1
    tn = min(_MAX_ROW_TILE, _round_up(N, 16))
    Np = _round_up(N, nc * tn)
    if Np != N:
        x = jnp.pad(x, ((0, 0), (0, Np - N), (0, 0)))
    T = Np // (nc * tn)
    out = pl.pallas_call(
        functools.partial(_matmul_globalmax_kernel, n_valid=N, tn=tn,
                          tiles_per_chunk=T, mask_rows=(Np != N)),
        out_shape=jax.ShapeDtypeStruct((B * nc, 1, cout), jnp.float32),
        grid_spec=pltpu.PrefetchScalarGridSpec(
            num_scalar_prefetch=0,
            grid=(B, nc, T),
            in_specs=[
                pl.BlockSpec((1, tn, cin), lambda bb, cc, tt: (bb, cc * T + tt, 0)),
                pl.BlockSpec((cin, cout), lambda bb, cc, tt: (0, 0)),
                pl.BlockSpec((1, cout), lambda bb, cc, tt: (0, 0)),
            ],
            out_specs=pl.BlockSpec((1, 1, cout),
                                   lambda bb, cc, tt: (bb * nc + cc, 0, 0)),
        ),
        compiler_params=_cparams("parallel", "parallel", "arbitrary"),
    )(x, w.astype(MXU_DTYPE), b.reshape(1, -1).astype(jnp.float32))
    return jnp.max(out.reshape(B, nc, cout), axis=1)   # combine chunk partial maxes


# ----------------------------- kNN pairwise distances -------------------------

def _neg_pdist_kernel(q_ref, p_ref, pp_ref, o_ref, *, tq, n_valid, n_pad):
    qi = pl.program_id(1)
    q = q_ref[0]                                               # (tq, D)
    p = p_ref[0]                                               # (Np, D)
    inner = jax.lax.dot_general(q, p, (((1,), (1,)), ((), ())),
                                preferred_element_type=jnp.float32)    # q @ p.T
    qq = jnp.sum(q * q, axis=-1, keepdims=True)                # (tq, 1)
    nd = 2.0 * inner - qq - pp_ref[0]                          # -||q_i - p_j||^2
    rows = jax.lax.broadcasted_iota(jnp.int32, nd.shape, 0) + qi * tq
    cols = jax.lax.broadcasted_iota(jnp.int32, nd.shape, 1)
    nd = jnp.where(rows == cols, _SELF_EPS, nd)                # self strictly outranks
    if n_pad != n_valid:
        nd = jnp.where(cols < n_valid, nd, -jnp.inf)           # padded cols never chosen
    o_ref[0] = nd


def pallas_neg_pairwise_dist(pts):
    """pts: (B, N, 3) -> neg. squared pairwise distances (B, Np, Np) f32,
    Np = round_up(N, 128); diag == +eps, padded columns == -inf."""
    B, N, D = pts.shape
    Np = _round_up(N, 128)
    pts = jnp.pad(pts.astype(jnp.float32),
                  ((0, 0), (0, Np - N), (0, 8 - D)))           # coords 3 -> 8 lanes
    pp = jnp.sum(pts * pts, axis=-1).reshape(B, 1, Np)         # hoisted out of the kernel
    tq = 128
    for cand in (1024, 512, 256, 128):
        if Np % cand == 0:
            tq = cand
            break
    while tq > 128 and 2 * tq * Np * 4 > 16 * 1024 * 1024:     # keep 2x-buffered out tile modest
        tq //= 2
    return pl.pallas_call(
        functools.partial(_neg_pdist_kernel, tq=tq, n_valid=N, n_pad=Np),
        out_shape=jax.ShapeDtypeStruct((B, Np, Np), jnp.float32),
        grid_spec=pltpu.PrefetchScalarGridSpec(
            num_scalar_prefetch=0,
            grid=(B, Np // tq),
            in_specs=[
                pl.BlockSpec((1, tq, 8), lambda b, i: (b, i, 0)),
                pl.BlockSpec((1, Np, 8), lambda b, i: (b, 0, 0)),
                pl.BlockSpec((1, 1, Np), lambda b, i: (b, 0, 0)),
            ],
            out_specs=pl.BlockSpec((1, tq, Np), lambda b, i: (b, i, 0)),
        ),
        compiler_params=_cparams("parallel", "parallel"),
    )(pts, pts, pp)


# ----------------------------- XLA-side helpers --------------------------------

def local_maxpool(h, idx):
    """h: (B, N, C); idx: (B, N, k) -> per-point max over the k neighbor rows.
    Exact in bf16; only the pooled (B, N, C) tensor feeds the Pallas kernels."""
    # TODO(synk): data-dependent neighbor row gather stays in XLA (fused with the
    # k-max there); an in-kernel VMEM gather has no guaranteed lowering.
    g = jax.vmap(lambda hb, ib: hb[ib])(h, idx)    # (B, N, k, C)
    return jnp.max(g, axis=2)


# ----------------------------- parameters -------------------------------------

def _init_linear(key, fan_in, fan_out, bias=True):
    kw, kb = jax.random.split(key)
    bound = 1.0 / math.sqrt(fan_in)
    w = jax.random.uniform(kw, (fan_in, fan_out), jnp.float32, -bound, bound)
    b = (jax.random.uniform(kb, (fan_out,), jnp.float32, -bound, bound)
         if bias else None)
    return w, b


def init_foldnet_params(key, num_features):
    shapes = [
        ("mlp1_0", 12, 64), ("mlp1_1", 64, 64), ("mlp1_2", 64, 64),
        ("linear1", 64, 64), ("conv1", 64, 128),
        ("linear2", 128, 128), ("conv2", 128, 1024),
        ("mlp2_0", 1024, 512), ("mlp2_1", 512, 512),
    ]
    params = {}
    keys = jax.random.split(key, len(shapes) + 1)
    for kk, (name, cin, cout) in zip(keys[:-1], shapes):
        params[name] = _init_linear(kk, cin, cout, bias=True)
    if num_features != 512:
        w, _ = _init_linear(keys[-1], 512, num_features, bias=False)
        params["embedding"] = (w, None)
    return params


# ----------------------------- forward pass ------------------------------------

def foldnet_encoder_forward(params, pts, *, k, num_features):
    """pts: (B, N, 3) == the PyTorch module's input before its internal transpose."""
    B, N, _ = pts.shape
    pts = pts.astype(jnp.float32)

    # ---- kNN: Pallas distance matrix; exact selection in XLA ----
    neg_dist = pallas_neg_pairwise_dist(pts)             # (B, Np, Np)
    # TODO(synk): top-k neighbor selection has no clean Pallas equivalent; uses jax.lax.top_k.
    _, idx = jax.lax.top_k(neg_dist, k)                  # nearest-first, self at rank 0
    idx = idx[:, :N, :]                                  # (B, N, k)

    # ---- local_cov: concat(point, outer(nbr0, nbr1)) -> 12 channels ----
    nbr01 = jax.vmap(lambda pb, ib: pb[ib])(pts, idx[..., :2])        # (B, N, 2, 3)
    outer = nbr01[:, :, 0, :, None] * nbr01[:, :, 1, None, :]         # (B, N, 3, 3)
    x = jnp.concatenate([pts, outer.reshape(B, N, 9)], axis=-1)       # (B, N, 12)

    # ---- mlp1: three 1x1 convs + ReLU fused in one kernel ----
    h0 = pallas_mlp(
        x.reshape(B * N, 12),
        [(params["mlp1_0"][0], params["mlp1_0"][1], True),
         (params["mlp1_1"][0], params["mlp1_1"][1], True),
         (params["mlp1_2"][0], params["mlp1_2"][1], True)],
        out_dtype=ACT_DTYPE,
    ).reshape(B, N, 64)

    # ---- graph_layer: merge linear+conv pairs (no nonlinearity between them) ----
    w_l1, b_l1 = params["linear1"]; w_c1, b_c1 = params["conv1"]
    w1 = w_l1 @ w_c1                                      # (64, 128)   f32
    b1 = b_l1 @ w_c1 + b_c1                               # (128,)      f32
    w_l2, b_l2 = params["linear2"]; w_c2, b_c2 = params["conv2"]
    w2 = w_l2 @ w_c2                                      # (128, 1024) f32
    b2 = b_l2 @ w_c2 + b_c2                               # (1024,)     f32

    # stage 1: local max (XLA gather+max) -> fused matmul + ReLU
    xm1 = local_maxpool(h0, idx)                          # (B, N, 64) bf16
    h1 = pallas_mlp(xm1.reshape(B * N, 64), [(w1, b1, True)],
                    out_dtype=ACT_DTYPE).reshape(B, N, 128)

    # stage 2: local max -> fused matmul + global max over points (never hits HBM wide)
    xm2 = local_maxpool(h1, idx)                          # (B, N, 128) bf16
    gmax = pallas_matmul_globalmax(xm2, w2, b2)           # (B, 1024) f32

    # ---- mlp2 (+ optional embedding) fused in one kernel ----
    layers = [(params["mlp2_0"][0], params["mlp2_0"][1], True),
              (params["mlp2_1"][0], params["mlp2_1"][1], False)]
    if num_features != 512:
        layers.append((params["embedding"][0], None, False))
    features = pallas_mlp(gmax, layers, out_dtype=jnp.float32)
    return features


# ----------------------------- main --------------------------------------------

if __name__ == "__main__":
    B, N, K, NUM_FEATURES = 2, 128, 4, 32
    key = jax.random.PRNGKey(0)
    kparams, kpts = jax.random.split(key)
    params = init_foldnet_params(kparams, NUM_FEATURES)
    pts = jax.random.normal(kpts, (B, N, 3), jnp.float32)

    fwd = jax.jit(functools.partial(foldnet_encoder_forward,
                                    k=K, num_features=NUM_FEATURES))
    feats = jax.block_until_ready(fwd(params, pts))

    assert feats.shape == (B, NUM_FEATURES), feats.shape
    assert feats.dtype == jnp.float32
    assert bool(jnp.all(jnp.isfinite(feats)))
    print("KERNEL_OK")
</pallas_src>

<mosaic_0001>
module attributes {stable_mosaic.version = 11 : i64} {
  func.func @_neg_pdist_kernel(%arg0: i32, %arg1: i32, %arg2: memref<1x128x8xf32, #tpu.memory_space<vmem>>, %arg3: memref<1x128x8xf32, #tpu.memory_space<vmem>>, %arg4: memref<1x1x128xf32, #tpu.memory_space<vmem>>, %arg5: memref<1x128x128xf32, #tpu.memory_space<vmem>>) attributes {dimension_semantics = [#tpu.dimension_semantics<parallel>, #tpu.dimension_semantics<parallel>], iteration_bounds = array<i64: 2, 1>, scalar_prefetch = 0 : i64, scratch_operands = 0 : i64, tpu.core_type = #tpu.core_type<tc>, window_params = [{transform_indices = @transform_0, window_bounds = array<i64: 1, 128, 8>}, {transform_indices = @transform_1, window_bounds = array<i64: 1, 128, 8>}, {transform_indices = @transform_2, window_bounds = array<i64: 1, 1, 128>}, {transform_indices = @transform_3, window_bounds = array<i64: 1, 128, 128>}]} {
    %c0 = arith.constant 0 : index
    %c0_0 = arith.constant 0 : index
    %c0_1 = arith.constant 0 : index
    %0 = vector.load %arg2[%c0, %c0_0, %c0_1] : memref<1x128x8xf32, #tpu.memory_space<vmem>>, vector<1x128x8xf32>
    %1 = vector.shape_cast %0 : vector<1x128x8xf32> to vector<128x8xf32>
    %c0_2 = arith.constant 0 : index
    %c0_3 = arith.constant 0 : index
    %c0_4 = arith.constant 0 : index
    %2 = vector.load %arg3[%c0_2, %c0_3, %c0_4] : memref<1x128x8xf32, #tpu.memory_space<vmem>>, vector<1x128x8xf32>
    %3 = vector.shape_cast %2 : vector<1x128x8xf32> to vector<128x8xf32>
    %cst = arith.constant dense<0.000000e+00> : vector<128x128xf32>
    %4 = tpu.matmul %1, %3, %cst {dimension_numbers = #tpu.dot_dimension_numbers<[1], [1], [0], [0], [0, 0, 1, 0], [], []>} : vector<128x8xf32>, vector<128x8xf32>, vector<128x128xf32> -> vector<128x128xf32>
    %5 = arith.mulf %1, %1 : vector<128x8xf32>
    %cst_5 = arith.constant dense<0.000000e+00> : vector<128xf32>
    %6 = vector.multi_reduction <add>, %5, %cst_5 [1] : vector<128x8xf32> to vector<128xf32>
    %7 = vector.shape_cast %6 : vector<128xf32> to vector<128x1xf32>
    %cst_6 = arith.constant 2.000000e+00 : f32
    %8 = vector.broadcast %cst_6 : f32 to vector<128x128xf32>
    %9 = arith.mulf %8, %4 : vector<128x128xf32>
    %10 = vector.broadcast %7 : vector<128x1xf32> to vector<128x128xf32>
    %11 = arith.subf %9, %10 : vector<128x128xf32>
    %c0_7 = arith.constant 0 : index
    %c0_8 = arith.constant 0 : index
    %c0_9 = arith.constant 0 : index
    %12 = vector.load %arg4[%c0_7, %c0_8, %c0_9] : memref<1x1x128xf32, #tpu.memory_space<vmem>>, vector<1x1x128xf32>
    %13 = vector.shape_cast %12 : vector<1x1x128xf32> to vector<1x128xf32>
    %14 = vector.broadcast %13 : vector<1x128xf32> to vector<128x128xf32>
    %15 = arith.subf %11, %14 : vector<128x128xf32>
    %16 = tpu.iota {dimensions = array<i32: 0>} : vector<128x128xi32>
    %c128_i32 = arith.constant 128 : i32
    %17 = arith.muli %arg1, %c128_i32 : i32
    %18 = vector.broadcast %17 : i32 to vector<128x128xi32>
    %19 = arith.addi %16, %18 : vector<128x128xi32>
    %20 = tpu.iota {dimensions = array<i32: 1>} : vector<128x128xi32>
    %21 = arith.cmpi eq, %19, %20 : vector<128x128xi32>
    %cst_10 = arith.constant 9.99999997E-7 : f32
    %22 = vector.broadcast %cst_10 : f32 to vector<128x128xf32>
    %23 = arith.select %21, %22, %15 : vector<128x128xi1>, vector<128x128xf32>
    %c0_11 = arith.constant 0 : index
    %c0_12 = arith.constant 0 : index
    %c0_13 = arith.constant 0 : index
    %24 = vector.load %arg5[%c0_11, %c0_12, %c0_13] : memref<1x128x128xf32, #tpu.memory_space<vmem>>, vector<1x128x128xf32>
    %25 = vector.shape_cast %24 : vector<1x128x128xf32> to vector<128x128xf32>
    %26 = vector.shape_cast %23 : vector<128x128xf32> to vector<1x128x128xf32>
    tpu.vector_store %arg5[%c0_11, %c0_12, %c0_13], %26 {strides = array<i32>} : memref<1x128x128xf32, #tpu.memory_space<vmem>>, vector<1x128x128xf32>,
    return
  }
  func.func @transform_0(%arg0: i32, %arg1: i32) -> (i32, i32, i32) {
    %c0_i32 = arith.constant 0 : i32
    %c0_i32_0 = arith.constant 0 : i32
    return %arg0, %arg1, %c0_i32 : i32, i32, i32
  }
  func.func @transform_1(%arg0: i32, %arg1: i32) -> (i32, i32, i32) {
    %c0_i32 = arith.constant 0 : i32
    %c0_i32_0 = arith.constant 0 : i32
    %c0_i32_1 = arith.constant 0 : i32
    return %arg0, %c0_i32, %c0_i32_0 : i32, i32, i32
  }
  func.func @transform_2(%arg0: i32, %arg1: i32) -> (i32, i32, i32) {
    %c0_i32 = arith.constant 0 : i32
    %c0_i32_0 = arith.constant 0 : i32
    %c0_i32_1 = arith.constant 0 : i32
    return %arg0, %c0_i32, %c0_i32_0 : i32, i32, i32
  }
  func.func @transform_3(%arg0: i32, %arg1: i32) -> (i32, i32, i32) {
    %c0_i32 = arith.constant 0 : i32
    %c0_i32_0 = arith.constant 0 : i32
    return %arg0, %arg1, %c0_i32 : i32, i32, i32
  }
}

module attributes {stable_mosaic.version = 11 : i64} {
  func.func @_mlp_kernel(%arg0: i32, %arg1: memref<256x12xf32, #tpu.memory_space<vmem>>, %arg2: memref<12x64xbf16, #tpu.memory_space<vmem>>, %arg3: memref<1x64xf32, #tpu.memory_space<vmem>>, %arg4: memref<64x64xbf16, #tpu.memory_space<vmem>>, %arg5: memref<1x64xf32, #tpu.memory_space<vmem>>, %arg6: memref<64x64xbf16, #tpu.memory_space<vmem>>, %arg7: memref<1x64xf32, #tpu.memory_space<vmem>>, %arg8: memref<256x64xbf16, #tpu.memory_space<vmem>>) attributes {dimension_semantics = [#tpu.dimension_semantics<parallel>], iteration_bounds = array<i64: 1>, scalar_prefetch = 0 : i64, scratch_operands = 0 : i64, tpu.core_type = #tpu.core_type<tc>, window_params = [{transform_indices = @transform_0, window_bounds = array<i64: 256, 12>}, {pipeline_mode = #tpu.pipeline_mode<synchronous>, transform_indices = @transform_1, window_bounds = array<i64: 12, 64>}, {pipeline_mode = #tpu.pipeline_mode<synchronous>, transform_indices = @transform_2, window_bounds = array<i64: 1, 64>}, {pipeline_mode = #tpu.pipeline_mode<synchronous>, transform_indices = @transform_3, window_bounds = array<i64: 64, 64>}, {pipeline_mode = #tpu.pipeline_mode<synchronous>, transform_indices = @transform_4, window_bounds = array<i64: 1, 64>}, {pipeline_mode = #tpu.pipeline_mode<synchronous>, transform_indices = @transform_5, window_bounds = array<i64: 64, 64>}, {pipeline_mode = #tpu.pipeline_mode<synchronous>, transform_indices = @transform_6, window_bounds = array<i64: 1, 64>}, {transform_indices = @transform_7, window_bounds = array<i64: 256, 64>}]} {
    %c0 = arith.constant 0 : index
    %c0_0 = arith.constant 0 : index
    %0 = vector.load %arg1[%c0, %c0_0] : memref<256x12xf32, #tpu.memory_space<vmem>>, vector<256x12xf32>
    %c0_1 = arith.constant 0 : index
    %c0_2 = arith.constant 0 : index
    %1 = vector.load %arg2[%c0_1, %c0_2] : memref<12x64xbf16, #tpu.memory_space<vmem>>, vector<12x64xbf16>
    %c0_3 = arith.constant 0 : index
    %c0_4 = arith.constant 0 : index
    %2 = vector.load %arg3[%c0_3, %c0_4] : memref<1x64xf32, #tpu.memory_space<vmem>>, vector<1x64xf32>
    %3 = arith.truncf %0 : vector<256x12xf32> to vector<256x12xbf16>
    %cst = arith.constant dense<0.000000e+00> : vector<256x64xf32>
    %4 = tpu.matmul %3, %1, %cst {dimension_numbers = #tpu.dot_dimension_numbers<[1], [0], [0], [1], [0, 0, 1, 1], [], []>} : vector<256x12xbf16>, vector<12x64xbf16>, vector<256x64xf32> -> vector<256x64xf32>
    %5 = vector.broadcast %2 : vector<1x64xf32> to vector<256x64xf32>
    %6 = arith.addf %4, %5 : vector<256x64xf32>
    %cst_5 = arith.constant 0.000000e+00 : f32
    %7 = vector.broadcast %cst_5 : f32 to vector<256x64xf32>
    %8 = arith.maximumf %6, %7 : vector<256x64xf32>
    %c0_6 = arith.constant 0 : index
    %c0_7 = arith.constant 0 : index
    %9 = vector.load %arg4[%c0_6, %c0_7] : memref<64x64xbf16, #tpu.memory_space<vmem>>, vector<64x64xbf16>
    %c0_8 = arith.constant 0 : index
    %c0_9 = arith.constant 0 : index
    %10 = vector.load %arg5[%c0_8, %c0_9] : memref<1x64xf32, #tpu.memory_space<vmem>>, vector<1x64xf32>
    %11 = arith.truncf %8 : vector<256x64xf32> to vector<256x64xbf16>
    %cst_10 = arith.constant dense<0.000000e+00> : vector<256x64xf32>
    %12 = tpu.matmul %11, %9, %cst_10 {dimension_numbers = #tpu.dot_dimension_numbers<[1], [0], [0], [1], [0, 0, 1, 1], [], []>} : vector<256x64xbf16>, vector<64x64xbf16>, vector<256x64xf32> -> vector<256x64xf32>
    %13 = vector.broadcast %10 : vector<1x64xf32> to vector<256x64xf32>
    %14 = arith.addf %12, %13 : vector<256x64xf32>
    %cst_11 = arith.constant 0.000000e+00 : f32
    %15 = vector.broadcast %cst_11 : f32 to vector<256x64xf32>
    %16 = arith.maximumf %14, %15 : vector<256x64xf32>
    %c0_12 = arith.constant 0 : index
    %c0_13 = arith.constant 0 : index
    %17 = vector.load %arg6[%c0_12, %c0_13] : memref<64x64xbf16, #tpu.memory_space<vmem>>, vector<64x64xbf16>
    %c0_14 = arith.constant 0 : index
    %c0_15 = arith.constant 0 : index
    %18 = vector.load %arg7[%c0_14, %c0_15] : memref<1x64xf32, #tpu.memory_space<vmem>>, vector<1x64xf32>
    %19 = arith.truncf %16 : vector<256x64xf32> to vector<256x64xbf16>
    %cst_16 = arith.constant dense<0.000000e+00> : vector<256x64xf32>
    %20 = tpu.matmul %19, %17, %cst_16 {dimension_numbers = #tpu.dot_dimension_numbers<[1], [0], [0], [1], [0, 0, 1, 1], [], []>} : vector<256x64xbf16>, vector<64x64xbf16>, vector<256x64xf32> -> vector<256x64xf32>
    %21 = vector.broadcast %18 : vector<1x64xf32> to vector<256x64xf32>
    %22 = arith.addf %20, %21 : vector<256x64xf32>
    %cst_17 = arith.constant 0.000000e+00 : f32
    %23 = vector.broadcast %cst_17 : f32 to vector<256x64xf32>
    %24 = arith.maximumf %22, %23 : vector<256x64xf32>
    %25 = arith.truncf %24 : vector<256x64xf32> to vector<256x64xbf16>
    %c0_18 = arith.constant 0 : index
    %c0_19 = arith.constant 0 : index
    %26 = vector.load %arg8[%c0_18, %c0_19] : memref<256x64xbf16, #tpu.memory_space<vmem>>, vector<256x64xbf16>
    tpu.vector_store %arg8[%c0_18, %c0_19], %25 {strides = array<i32>} : memref<256x64xbf16, #tpu.memory_space<vmem>>, vector<256x64xbf16>,
    return
  }
  func.func @transform_0(%arg0: i32) -> (i32, i32) {
    %c0_i32 = arith.constant 0 : i32
    %c0_i32_0 = arith.constant 0 : i32
    return %arg0, %c0_i32 : i32, i32
  }
  func.func @transform_1(%arg0: i32) -> (i32, i32) {
    %c0_i32 = arith.constant 0 : i32
    %c0_i32_0 = arith.constant 0 : i32
    %c0_i32_1 = arith.constant 0 : i32
    return %c0_i32, %c0_i32_0 : i32, i32
  }
  func.func @transform_2(%arg0: i32) -> (i32, i32) {
    %c0_i32 = arith.constant 0 : i32
    %c0_i32_0 = arith.constant 0 : i32
    %c0_i32_1 = arith.constant 0 : i32
    return %c0_i32, %c0_i32_0 : i32, i32
  }
  func.func @transform_3(%arg0: i32) -> (i32, i32) {
    %c0_i32 = arith.constant 0 : i32
    %c0_i32_0 = arith.constant 0 : i32
    %c0_i32_1 = arith.constant 0 : i32
    return %c0_i32, %c0_i32_0 : i32, i32
  }
  func.func @transform_4(%arg0: i32) -> (i32, i32) {
    %c0_i32 = arith.constant 0 : i32
    %c0_i32_0 = arith.constant 0 : i32
    %c0_i32_1 = arith.constant 0 : i32
    return %c0_i32, %c0_i32_0 : i32, i32
  }
  func.func @transform_5(%arg0: i32) -> (i32, i32) {
    %c0_i32 = arith.constant 0 : i32
    %c0_i32_0 = arith.constant 0 : i32
    %c0_i32_1 = arith.constant 0 : i32
    return %c0_i32, %c0_i32_0 : i32, i32
  }
  func.func @transform_6(%arg0: i32) -> (i32, i32) {
    %c0_i32 = arith.constant 0 : i32
    %c0_i32_0 = arith.constant 0 : i32
    %c0_i32_1 = arith.constant 0 : i32
    return %c0_i32, %c0_i32_0 : i32, i32
  }
  func.func @transform_7(%arg0: i32) -> (i32, i32) {
    %c0_i32 = arith.constant 0 : i32
    %c0_i32_0 = arith.constant 0 : i32
    return %arg0, %c0_i32 : i32, i32
  }
}

module attributes {stable_mosaic.version = 11 : i64} {
  func.func @_mlp_kernel(%arg0: i32, %arg1: memref<256x64xbf16, #tpu.memory_space<vmem>>, %arg2: memref<64x128xbf16, #tpu.memory_space<vmem>>, %arg3: memref<1x128xf32, #tpu.memory_space<vmem>>, %arg4: memref<256x128xbf16, #tpu.memory_space<vmem>>) attributes {dimension_semantics = [#tpu.dimension_semantics<parallel>], iteration_bounds = array<i64: 1>, scalar_prefetch = 0 : i64, scratch_operands = 0 : i64, tpu.core_type = #tpu.core_type<tc>, window_params = [{transform_indices = @transform_0, window_bounds = array<i64: 256, 64>}, {pipeline_mode = #tpu.pipeline_mode<synchronous>, transform_indices = @transform_1, window_bounds = array<i64: 64, 128>}, {pipeline_mode = #tpu.pipeline_mode<synchronous>, transform_indices = @transform_2, window_bounds = array<i64: 1, 128>}, {transform_indices = @transform_3, window_bounds = array<i64: 256, 128>}]} {
    %c0 = arith.constant 0 : index
    %c0_0 = arith.constant 0 : index
    %0 = vector.load %arg1[%c0, %c0_0] : memref<256x64xbf16, #tpu.memory_space<vmem>>, vector<256x64xbf16>
    %c0_1 = arith.constant 0 : index
    %c0_2 = arith.constant 0 : index
    %1 = vector.load %arg2[%c0_1, %c0_2] : memref<64x128xbf16, #tpu.memory_space<vmem>>, vector<64x128xbf16>
    %c0_3 = arith.constant 0 : index
    %c0_4 = arith.constant 0 : index
    %2 = vector.load %arg3[%c0_3, %c0_4] : memref<1x128xf32, #tpu.memory_space<vmem>>, vector<1x128xf32>
    %cst = arith.constant dense<0.000000e+00> : vector<256x128xf32>
    %3 = tpu.matmul %0, %1, %cst {dimension_numbers = #tpu.dot_dimension_numbers<[1], [0], [0], [1], [0, 0, 1, 1], [], []>} : vector<256x64xbf16>, vector<64x128xbf16>, vector<256x128xf32> -> vector<256x128xf32>
    %4 = vector.broadcast %2 : vector<1x128xf32> to vector<256x128xf32>
    %5 = arith.addf %3, %4 : vector<256x128xf32>
    %cst_5 = arith.constant 0.000000e+00 : f32
    %6 = vector.broadcast %cst_5 : f32 to vector<256x128xf32>
    %7 = arith.maximumf %5, %6 : vector<256x128xf32>
    %8 = arith.truncf %7 : vector<256x128xf32> to vector<256x128xbf16>
    %c0_6 = arith.constant 0 : index
    %c0_7 = arith.constant 0 : index
    %9 = vector.load %arg4[%c0_6, %c0_7] : memref<256x128xbf16, #tpu.memory_space<vmem>>, vector<256x128xbf16>
    tpu.vector_store %arg4[%c0_6, %c0_7], %8 {strides = array<i32>} : memref<256x128xbf16, #tpu.memory_space<vmem>>, vector<256x128xbf16>,
    return
  }
  func.func @transform_0(%arg0: i32) -> (i32, i32) {
    %c0_i32 = arith.constant 0 : i32
    %c0_i32_0 = arith.constant 0 : i32
    return %arg0, %c0_i32 : i32, i32
  }
  func.func @transform_1(%arg0: i32) -> (i32, i32) {
    %c0_i32 = arith.constant 0 : i32
    %c0_i32_0 = arith.constant 0 : i32
    %c0_i32_1 = arith.constant 0 : i32
    return %c0_i32, %c0_i32_0 : i32, i32
  }
  func.func @transform_2(%arg0: i32) -> (i32, i32) {
    %c0_i32 = arith.constant 0 : i32
    %c0_i32_0 = arith.constant 0 : i32
    %c0_i32_1 = arith.constant 0 : i32
    return %c0_i32, %c0_i32_0 : i32, i32
  }
  func.func @transform_3(%arg0: i32) -> (i32, i32) {
    %c0_i32 = arith.constant 0 : i32
    %c0_i32_0 = arith.constant 0 : i32
    return %arg0, %c0_i32 : i32, i32
  }
}

module attributes {stable_mosaic.version = 11 : i64} {
  func.func @_matmul_globalmax_kernel(%arg0: i32, %arg1: i32, %arg2: i32, %arg3: memref<1x128x128xbf16, #tpu.memory_space<vmem>>, %arg4: memref<128x1024xbf16, #tpu.memory_space<vmem>>, %arg5: memref<1x1024xf32, #tpu.memory_space<vmem>>, %arg6: memref<1x1x1024xf32, #tpu.memory_space<vmem>>) attributes {dimension_semantics = [#tpu.dimension_semantics<parallel>, #tpu.dimension_semantics<parallel>, #tpu.dimension_semantics<arbitrary>], iteration_bounds = array<i64: 2, 1, 1>, scalar_prefetch = 0 : i64, scratch_operands = 0 : i64, tpu.core_type = #tpu.core_type<tc>, window_params = [{transform_indices = @transform_0, window_bounds = array<i64: 1, 128, 128>}, {pipeline_mode = #tpu.pipeline_mode<synchronous>, transform_indices = @transform_1, window_bounds = array<i64: 128, 1024>}, {pipeline_mode = #tpu.pipeline_mode<synchronous>, transform_indices = @transform_2, window_bounds = array<i64: 1, 1024>}, {transform_indices = @transform_3, window_bounds = array<i64: 1, 1, 1024>}]} {
    %c0 = arith.constant 0 : index
    %c0_0 = arith.constant 0 : index
    %c0_1 = arith.constant 0 : index
    %0 = vector.load %arg3[%c0, %c0_0, %c0_1] : memref<1x128x128xbf16, #tpu.memory_space<vmem>>, vector<1x128x128xbf16>
    %1 = vector.shape_cast %0 : vector<1x128x128xbf16> to vector<128x128xbf16>
    %c0_2 = arith.constant 0 : index
    %c0_3 = arith.constant 0 : index
    %2 = vector.load %arg4[%c0_2, %c0_3] : memref<128x1024xbf16, #tpu.memory_space<vmem>>, vector<128x1024xbf16>
    %cst = arith.constant dense<0.000000e+00> : vector<128x1024xf32>
    %3 = tpu.matmul %1, %2, %cst {dimension_numbers = #tpu.dot_dimension_numbers<[1], [0], [0], [1], [0, 0, 1, 1], [], []>} : vector<128x128xbf16>, vector<128x1024xbf16>, vector<128x1024xf32> -> vector<128x1024xf32>
    %c0_4 = arith.constant 0 : index
    %c0_5 = arith.constant 0 : index
    %4 = vector.load %arg5[%c0_4, %c0_5] : memref<1x1024xf32, #tpu.memory_space<vmem>>, vector<1x1024xf32>
    %5 = vector.broadcast %4 : vector<1x1024xf32> to vector<128x1024xf32>
    %6 = arith.addf %3, %5 : vector<128x1024xf32>
    %cst_6 = arith.constant dense<0xFF800000> : vector<1024xf32>
    %7 = vector.multi_reduction <maximumf>, %6, %cst_6 [0] : vector<128x1024xf32> to vector<1024xf32>
    %8 = vector.shape_cast %7 : vector<1024xf32> to vector<1x1024xf32>
    %c0_i32 = arith.constant 0 : i32
    %9 = arith.cmpi eq, %arg2, %c0_i32 : i32
    %10 = arith.extui %9 : i1 to i32
    %c0_i32_7 = arith.constant 0 : i32
    %11 = arith.cmpi ne, %10, %c0_i32_7 : i32
    scf.if %11 {
      %cst_14 = arith.constant 0xFF800000 : f32
      %18 = vector.broadcast %cst_14 : f32 to vector<1x1x1024xf32>
      %c0_15 = arith.constant 0 : index
      %c0_16 = arith.constant 0 : index
      %c0_17 = arith.constant 0 : index
      %19 = vector.load %arg6[%c0_15, %c0_16, %c0_17] : memref<1x1x1024xf32, #tpu.memory_space<vmem>>, vector<1x1x1024xf32>
      tpu.vector_store %arg6[%c0_15, %c0_16, %c0_17], %18 {strides = array<i32>} : memref<1x1x1024xf32, #tpu.memory_space<vmem>>, vector<1x1x1024xf32>,
    } else {
    }
    %c0_8 = arith.constant 0 : index
    %c0_9 = arith.constant 0 : index
    %c0_10 = arith.constant 0 : index
    %12 = vector.load %arg6[%c0_8, %c0_9, %c0_10] : memref<1x1x1024xf32, #tpu.memory_space<vmem>>, vector<1x1x1024xf32>
    %13 = vector.shape_cast %12 : vector<1x1x1024xf32> to vector<1x1024xf32>
    %14 = arith.maximumf %13, %8 : vector<1x1024xf32>
    %c0_11 = arith.constant 0 : index
    %c0_12 = arith.constant 0 : index
    %c0_13 = arith.constant 0 : index
    %15 = vector.load %arg6[%c0_11, %c0_12, %c0_13] : memref<1x1x1024xf32, #tpu.memory_space<vmem>>, vector<1x1x1024xf32>
    %16 = vector.shape_cast %15 : vector<1x1x1024xf32> to vector<1x1024xf32>
    %17 = vector.shape_cast %14 : vector<1x1024xf32> to vector<1x1x1024xf32>
    tpu.vector_store %arg6[%c0_11, %c0_12, %c0_13], %17 {strides = array<i32>} : memref<1x1x1024xf32, #tpu.memory_space<vmem>>, vector<1x1x1024xf32>,
    return
  }
  func.func @transform_0(%arg0: i32, %arg1: i32, %arg2: i32) -> (i32, i32, i32) {
    %c1_i32 = arith.constant 1 : i32
    %0 = arith.muli %arg1, %c1_i32 : i32
    %1 = arith.addi %0, %arg2 : i32
    %c0_i32 = arith.constant 0 : i32
    %c0_i32_0 = arith.constant 0 : i32
    return %arg0, %1, %c0_i32 : i32, i32, i32
  }
  func.func @transform_1(%arg0: i32, %arg1: i32, %arg2: i32) -> (i32, i32) {
    %c0_i32 = arith.constant 0 : i32
    %c0_i32_0 = arith.constant 0 : i32
    %c0_i32_1 = arith.constant 0 : i32
    return %c0_i32, %c0_i32_0 : i32, i32
  }
  func.func @transform_2(%arg0: i32, %arg1: i32, %arg2: i32) -> (i32, i32) {
    %c0_i32 = arith.constant 0 : i32
    %c0_i32_0 = arith.constant 0 : i32
    %c0_i32_1 = arith.constant 0 : i32
    return %c0_i32, %c0_i32_0 : i32, i32
  }
  func.func @transform_3(%arg0: i32, %arg1: i32, %arg2: i32) -> (i32, i32, i32) {
    %c1_i32 = arith.constant 1 : i32
    %0 = arith.muli %arg0, %c1_i32 : i32
    %1 = arith.addi %0, %arg1 : i32
    %c0_i32 = arith.constant 0 : i32
    %c0_i32_0 = arith.constant 0 : i32
    %c0_i32_1 = arith.constant 0 : i32
    return %1, %c0_i32, %c0_i32_0 : i32, i32, i32
  }
}

module attributes {stable_mosaic.version = 11 : i64} {
  func.func @_mlp_kernel(%arg0: i32, %arg1: memref<16x1024xf32, #tpu.memory_space<vmem>>, %arg2: memref<1024x512xbf16, #tpu.memory_space<vmem>>, %arg3: memref<1x512xf32, #tpu.memory_space<vmem>>, %arg4: memref<512x512xbf16, #tpu.memory_space<vmem>>, %arg5: memref<1x512xf32, #tpu.memory_space<vmem>>, %arg6: memref<512x32xbf16, #tpu.memory_space<vmem>>, %arg7: memref<1x32xf32, #tpu.memory_space<vmem>>, %arg8: memref<16x32xf32, #tpu.memory_space<vmem>>) attributes {dimension_semantics = [#tpu.dimension_semantics<parallel>], iteration_bounds = array<i64: 1>, scalar_prefetch = 0 : i64, scratch_operands = 0 : i64, tpu.core_type = #tpu.core_type<tc>, window_params = [{transform_indices = @transform_0, window_bounds = array<i64: 16, 1024>}, {pipeline_mode = #tpu.pipeline_mode<synchronous>, transform_indices = @transform_1, window_bounds = array<i64: 1024, 512>}, {pipeline_mode = #tpu.pipeline_mode<synchronous>, transform_indices = @transform_2, window_bounds = array<i64: 1, 512>}, {pipeline_mode = #tpu.pipeline_mode<synchronous>, transform_indices = @transform_3, window_bounds = array<i64: 512, 512>}, {pipeline_mode = #tpu.pipeline_mode<synchronous>, transform_indices = @transform_4, window_bounds = array<i64: 1, 512>}, {pipeline_mode = #tpu.pipeline_mode<synchronous>, transform_indices = @transform_5, window_bounds = array<i64: 512, 32>}, {pipeline_mode = #tpu.pipeline_mode<synchronous>, transform_indices = @transform_6, window_bounds = array<i64: 1, 32>}, {transform_indices = @transform_7, window_bounds = array<i64: 16, 32>}]} {
    %c0 = arith.constant 0 : index
    %c0_0 = arith.constant 0 : index
    %0 = vector.load %arg1[%c0, %c0_0] : memref<16x1024xf32, #tpu.memory_space<vmem>>, vector<16x1024xf32>
    %c0_1 = arith.constant 0 : index
    %c0_2 = arith.constant 0 : index
    %1 = vector.load %arg2[%c0_1, %c0_2] : memref<1024x512xbf16, #tpu.memory_space<vmem>>, vector<1024x512xbf16>
    %c0_3 = arith.constant 0 : index
    %c0_4 = arith.constant 0 : index
    %2 = vector.load %arg3[%c0_3, %c0_4] : memref<1x512xf32, #tpu.memory_space<vmem>>, vector<1x512xf32>
    %3 = arith.truncf %0 : vector<16x1024xf32> to vector<16x1024xbf16>
    %cst = arith.constant dense<0.000000e+00> : vector<16x512xf32>
    %4 = tpu.matmul %3, %1, %cst {dimension_numbers = #tpu.dot_dimension_numbers<[1], [0], [0], [1], [0, 0, 1, 1], [], []>} : vector<16x1024xbf16>, vector<1024x512xbf16>, vector<16x512xf32> -> vector<16x512xf32>
    %5 = vector.broadcast %2 : vector<1x512xf32> to vector<16x512xf32>
    %6 = arith.addf %4, %5 : vector<16x512xf32>
    %cst_5 = arith.constant 0.000000e+00 : f32
    %7 = vector.broadcast %cst_5 : f32 to vector<16x512xf32>
    %8 = arith.maximumf %6, %7 : vector<16x512xf32>
    %c0_6 = arith.constant 0 : index
    %c0_7 = arith.constant 0 : index
    %9 = vector.load %arg4[%c0_6, %c0_7] : memref<512x512xbf16, #tpu.memory_space<vmem>>, vector<512x512xbf16>
    %c0_8 = arith.constant 0 : index
    %c0_9 = arith.constant 0 : index
    %10 = vector.load %arg5[%c0_8, %c0_9] : memref<1x512xf32, #tpu.memory_space<vmem>>, vector<1x512xf32>
    %11 = arith.truncf %8 : vector<16x512xf32> to vector<16x512xbf16>
    %cst_10 = arith.constant dense<0.000000e+00> : vector<16x512xf32>
    %12 = tpu.matmul %11, %9, %cst_10 {dimension_numbers = #tpu.dot_dimension_numbers<[1], [0], [0], [1], [0, 0, 1, 1], [], []>} : vector<16x512xbf16>, vector<512x512xbf16>, vector<16x512xf32> -> vector<16x512xf32>
    %13 = vector.broadcast %10 : vector<1x512xf32> to vector<16x512xf32>
    %14 = arith.addf %12, %13 : vector<16x512xf32>
    %c0_11 = arith.constant 0 : index
    %c0_12 = arith.constant 0 : index
    %15 = vector.load %arg6[%c0_11, %c0_12] : memref<512x32xbf16, #tpu.memory_space<vmem>>, vector<512x32xbf16>
    %c0_13 = arith.constant 0 : index
    %c0_14 = arith.constant 0 : index
    %16 = vector.load %arg7[%c0_13, %c0_14] : memref<1x32xf32, #tpu.memory_space<vmem>>, vector<1x32xf32>
    %17 = arith.truncf %14 : vector<16x512xf32> to vector<16x512xbf16>
    %cst_15 = arith.constant dense<0.000000e+00> : vector<16x32xf32>
    %18 = tpu.matmul %17, %15, %cst_15 {dimension_numbers = #tpu.dot_dimension_numbers<[1], [0], [0], [1], [0, 0, 1, 1], [], []>} : vector<16x512xbf16>, vector<512x32xbf16>, vector<16x32xf32> -> vector<16x32xf32>
    %19 = vector.broadcast %16 : vector<1x32xf32> to vector<16x32xf32>
    %20 = arith.addf %18, %19 : vector<16x32xf32>
    %c0_16 = arith.constant 0 : index
    %c0_17 = arith.constant 0 : index
    %21 = vector.load %arg8[%c0_16, %c0_17] : memref<16x32xf32, #tpu.memory_space<vmem>>, vector<16x32xf32>
    tpu.vector_store %arg8[%c0_16, %c0_17], %20 {strides = array<i32>} : memref<16x32xf32, #tpu.memory_space<vmem>>, vector<16x32xf32>,
    return
  }
  func.func @transform_0(%arg0: i32) -> (i32, i32) {
    %c0_i32 = arith.constant 0 : i32
    %c0_i32_0 = arith.constant 0 : i32
    return %arg0, %c0_i32 : i32, i32
  }
  func.func @transform_1(%arg0: i32) -> (i32, i32) {
    %c0_i32 = arith.constant 0 : i32
    %c0_i32_0 = arith.constant 0 : i32
    %c0_i32_1 = arith.constant 0 : i32
    return %c0_i32, %c0_i32_0 : i32, i32
  }
  func.func @transform_2(%arg0: i32) -> (i32, i32) {
    %c0_i32 = arith.constant 0 : i32
    %c0_i32_0 = arith.constant 0 : i32
    %c0_i32_1 = arith.constant 0 : i32
    return %c0_i32, %c0_i32_0 : i32, i32
  }
  func.func @transform_3(%arg0: i32) -> (i32, i32) {
    %c0_i32 = arith.constant 0 : i32
    %c0_i32_0 = arith.constant 0 : i32
    %c0_i32_1 = arith.constant 0 : i32
    return %c0_i32, %c0_i32_0 : i32, i32
  }
  func.func @transform_4(%arg0: i32) -> (i32, i32) {
    %c0_i32 = arith.constant 0 : i32
    %c0_i32_0 = arith.constant 0 : i32
    %c0_i32_1 = arith.constant 0 : i32
    return %c0_i32, %c0_i32_0 : i32, i32
  }
  func.func @transform_5(%arg0: i32) -> (i32, i32) {
    %c0_i32 = arith.constant 0 : i32
    %c0_i32_0 = arith.constant 0 : i32
    %c0_i32_1 = arith.constant 0 : i32
    return %c0_i32, %c0_i32_0 : i32, i32
  }
  func.func @transform_6(%arg0: i32) -> (i32, i32) {
    %c0_i32 = arith.constant 0 : i32
    %c0_i32_0 = arith.constant 0 : i32
    %c0_i32_1 = arith.constant 0 : i32
    return %c0_i32, %c0_i32_0 : i32, i32
  }
  func.func @transform_7(%arg0: i32) -> (i32, i32) {
    %c0_i32 = arith.constant 0 : i32
    %c0_i32_0 = arith.constant 0 : i32
    return %arg0, %c0_i32 : i32, i32
  }
}

</mosaic_0001>

<bundles_post_ra>
// kernel: foldnet_encoder_forward.5
= control target key start
LH: loop header
LB: loop body
LE: loop exit
PB: predicated region body
PF: predicated region fallthrough
CT: control target
= control target key end

     0   :  { %s2030_s0 = inlined_call_operand.hbm [shape: f32[2,128,8], index: 0, kind: input, shape index: {}, may-alias: {0,1}]   ;;  %s2031_s1 = inlined_call_operand.hbm [shape: f32[2,128,8], index: 1, kind: input, shape index: {}, may-alias: {0,1}]   ;;  %s2032_s2 = inlined_call_operand.hbm [shape: f32[2,1,128], index: 2, kind: input, shape index: {}]   ;;  %s2033_s3 = inlined_call_operand.hbm [shape: f32[2,128,128], index: 3, kind: output, shape index: {}]  }
   0x1   :  { %2040 = sst [smem:[#allocation13_spill]] %s2030_s0 }
   0x2   :  { %2041 = sst [smem:[#allocation14_spill]] %s2031_s1 }
   0x3   :  { %8 = vsyncpa [#allocation3], 0 }
   0x4   :  { %10 = vsyncpa [#allocation3 + $0x1], 0 }
   0x5   :  { %11 = vsyncpa [#allocation6], 0 }
   0x6   :  { %13 = vsyncpa [#allocation6 + $0x1], 0 }
   0x7   :  { %14 = vsyncpa [#allocation4], 0 }
   0x8   :  { %16 = vsyncpa [#allocation4 + $0x1], 0  ;;  %s1391_s12 = smov 0   ;;  %s1393_s13 = smov 0  }
   0x9   :  { %s1395_s14 = smov 0   ;;  %s1397_s15 = smov 0  }
   0xa   :  { %s1399_s16 = smov 0   ;;  %s1401_s17 = smov 0  }
   0xb LB: > { %s1422_s18 = sadd.s32 4294967295, %s1361_s17   ;;  %s902_s19 = sadd.s32 4294967294, %s1361_s17   ;;  %s1361_s17 = sphi %s1401_s17, %s22_s17   ;;  %s1357_s16 = sphi %s1399_s16, %s2069_s16   ;;  %s1353_s15 = sphi %s1397_s15, %s2068_s15   ;;  %s1349_s14 = sphi %s1395_s14, %s2067_s14   ;;  %s1345_s13 = sphi %s1393_s13, %s2066_s13   ;;  %s1341_s12 = sphi %s1391_s12, %s2065_s12  }
   0xc   : > { %s34_s20 = sadd.s32 1, %s1357_s16  ;;  %s43_s21 = sadd.s32 1, %s1349_s14 }
   0xd   : > { %p36_p0 = scmp.ge.s32.totalorder %s34_s20, 2  ;;  %p50_p1 = scmp.ne.s32.totalorder %s1349_s14, %s1345_s13 }
   0xe   : > { %p51_p2 = scmp.eq.s32.totalorder %s1361_s17, 0  ;;  %p56_p3 = scmp.ne.s32.totalorder %s1345_s13, %s1341_s12 }
   0xf   : > { %s2071_s20 = smov (%p36_p0, %s34_s20), 0  ;;  %p57_p5 = scmp.eq.s32.totalorder %s1422_s18, 0 }
  0x10   : > { %2042 = sst [smem:[#allocation12_spill]] %s2071_s20  ;;  %p1434_p4 = por %p51_p2, %p50_p1 }
  0x11   : > { %s38_s23 = ssub.s32 %s1357_s16, %s2071_s20  ;;  %p134_p6 = scmp.eq.s32.totalorder %s1422_s18, 1 }
  0x12   : > { %p41_p7 = scmp.eq.s32.totalorder %s38_s23, 0  ;;  %p1442_p8 = por %p57_p5, %p56_p3 }
  0x13   : > { %p1446_p9 = por %p134_p6, %p50_p1  ;;  %p140_p10 = scmp.eq.s32.totalorder %s902_s19, 1 }
  0x14   : > { %s2044_s24 = scalar_select %p1442_p8, 1, 0 }
  0x15   : > { %s2045_s25 = scalar_select %p1446_p9, 1, 0 }
  0x16   : > { %s1451_s26 = scalar_select %p41_p7, %s1349_s14, %s43_s21  }
  0x17   : > { %p1453_p11 = por %p140_p10, %p56_p3  ;;  %p1131_p13 = scmp.lt.s32.totalorder %s1361_s17, 2 }
  0x18   : > { %s1460_s28 = sand.u32 1, %s1349_s14   ;;  %s954_s30 = sshll.u32 %s1357_s16, 11 }
  0x19   : > { %s2046_s27 = scalar_select %p1453_p11, 1, 0 }
  0x1a   : > { %s905_s29 = sshll.u32 %s1460_s28, 7  ;;  %p1466_p0 = pnand %p1131_p13, %p1434_p4 }
  0x1b   : > { %s183_s5 = sand.u32 1, %s1361_s17   ;;  %s2048_s1 = sld [smem:[#allocation14_spill]] }
  0x1c   : > { %s2047_s4 = scalar_select %p1466_p0, 1, 0 }
  0x1d   : > { %s187_s9 = scalar_lea.vmem [#allocation5], %s905_s29  ;;  %s1484_s11 = scalar_lea.sflag [#allocation6], %s183_s5 }
  0x1e   : > { %s194_s10 = sshll.u32 %s187_s9, 4  ;;  %p1490_p4 = pneg %p1466_p0  ;;  %s1481_s10 = int_to_ptr.vmem [resolvable:$true] %s194_s10 }
  0x21   : > { %s1476_s8 = scalar_lea.hbm %s2048_s1, %s954_s30  ;;  %s1190_s6 = scalar_lea.hbm %s2048_s1, 4096 }
  0x22   : > { %s1185_s19 = scalar_lea.hbm %s1476_s8, 2048  ;;  %p1191_p7 = scmp.lt.u32.totalorder %s1476_s8, %s2048_s1 }
  0x23   : > { %p1186_p3 = scmp.ne.s32.totalorder %s1476_s8, %s1185_s19  ;;  %p1192_p10 = scmp.lt.u32.totalorder %s1190_s6, %s1185_s19 }
  0x24   : > { %p1194_p12 = scmp.lt.u32.totalorder %s1185_s19, %s1476_s8 }
  0x25   : > { %p1188_p5 = pnand %p1490_p4, %p1186_p3  ;;  %p1193_p13 = por %p1192_p10, %p1191_p7 }
  0x27   : > { %p1189_p6 = pneg %p1188_p5  ;;  %p1195_p1 = por %p1194_p12, %p1193_p13 }
  0x29   : > { %p1196_p2 = pnand %p1195_p1, %p1189_p6 }
  0x2b   : > { %1199 = shalt.err (!%p1196_p2)
}
  0x2c   : > { %s1200_s5 = scalar_lea.vmem %s1481_s10, 2048  ;;  %s1363_s22 = smov [#allocation5]  }
  0x2d   : > { %p1201_p3 = scmp.ne.s32.totalorder %s1481_s10, %s1200_s5  ;;  %s1205_s23 = sshll.u32 %s1363_s22, 4  ;;  %s1206_s23 = int_to_ptr.vmem [resolvable:$false] %s1205_s23 }
  0x2e   : > { %s1207_s7 = scalar_lea.vmem %s1206_s23, 4096  ;;  %p1208_p9 = scmp.lt.s32.totalorder %s1481_s10, %s1206_s23 }
  0x2f   : > { %p1203_p5 = pnand %p1201_p3, %p1490_p4  ;;  %p1209_p8 = scmp.lt.s32.totalorder %s1207_s7, %s1200_s5 }
  0x31   : > { %p1204_p11 = pneg %p1203_p5  ;;  %p1210_p7 = por %p1209_p8, %p1208_p9 }
  0x33   : > { %p1211_p10 = pnand %p1210_p7, %p1204_p11 }
  0x35   : > { %1214 = shalt.err (!%p1211_p10)
}
  0x36   : > { %s2036_s19 = smov 128   ;;  %s2037_s6 = smov 8  }
  0x37   : > { %1123 = dma.hbm_to_vmem [thread:$0]  (!%p1466_p0), %s1476_s8, 2048, %s1481_s10, %s1484_s11, %s2036_s19, %s2036_s19, %s2037_s6  }
  0x38   : > { %p2050_p8 = scmp.lt.s32.totalorder %s1361_s17, 3  ;;  %p2051_p9 = scmp.ge.s32.totalorder %s1361_s17, 1 }
  0x39   : > { %s2053_s0 = sld [smem:[#allocation13_spill]]  ;;  %s164_s7 = scalar_lea.vmem [#allocation2], %s905_s29 }
  0x3a   : > { %p1521_p11 = pnand %p2051_p9, %p2050_p8  ;;  %s173_s1 = sshll.u32 %s164_s7, 4  ;;  %s1534_s1 = int_to_ptr.vmem [resolvable:$true] %s173_s1 }
  0x3b   : > { %s911_s8 = sshll.u32 %s1357_s16, 4  ;;  %s161_s10 = scalar_lea.sflag [#allocation3], %s1460_s28 }
  0x3c   : > { %s2052_s9 = scalar_select %p1521_p11, 1, 0 }
  0x3f   : > { %s1530_s23 = scalar_lea.hbm %s2053_s0, %s954_s30  ;;  %s1220_s30 = scalar_lea.hbm %s2053_s0, 4096 }
  0x40   : > { %s1215_s19 = scalar_lea.hbm %s1530_s23, 2048  ;;  %p1221_p6 = scmp.lt.u32.totalorder %s1530_s23, %s2053_s0 }
  0x41   : > { %p1216_p12 = scmp.ne.s32.totalorder %s1530_s23, %s1215_s19  ;;  %p1222_p13 = scmp.lt.u32.totalorder %s1220_s30, %s1215_s19 }
  0x42   : > { %p1224_p5 = scmp.lt.u32.totalorder %s1215_s19, %s1530_s23 }
  0x43   : > { %p1218_p1 = pnand %p1216_p12, %p1490_p4  ;;  %p1223_p3 = por %p1222_p13, %p1221_p6 }
  0x45   : > { %p1219_p2 = pneg %p1218_p1  ;;  %p1225_p7 = por %p1224_p5, %p1223_p3 }
  0x47   : > { %p1226_p10 = pnand %p1225_p7, %p1219_p2 }
  0x49   : > { %1229 = shalt.err (!%p1226_p10)
}
  0x4a   : > { %s1230_s29 = scalar_lea.vmem %s1534_s1, 2048  ;;  %s1366_s6 = smov [#allocation2]  }
  0x4b   : > { %p1231_p8 = scmp.ne.s32.totalorder %s1534_s1, %s1230_s29  ;;  %s1235_s7 = sshll.u32 %s1366_s6, 4  ;;  %s1236_s7 = int_to_ptr.vmem [resolvable:$false] %s1235_s7 }
  0x4c   : > { %s1237_s20 = scalar_lea.vmem %s1236_s7, 4096  ;;  %p1238_p1 = scmp.lt.s32.totalorder %s1534_s1, %s1236_s7 }
  0x4d   : > { %p1233_p9 = pnand %p1231_p8, %p1490_p4  ;;  %p1239_p11 = scmp.lt.s32.totalorder %s1237_s20, %s1230_s29 }
  0x4f   : > { %p1234_p12 = pneg %p1233_p9  ;;  %p1240_p6 = por %p1239_p11, %p1238_p1 }
  0x51   : > { %p1241_p13 = pnand %p1240_p6, %p1234_p12 }
  0x53   : > { %1244 = shalt.err (!%p1241_p13)
}
  0x54   : > { %s2054_s19 = smov 8   ;;  %s2055_s5 = smov 128  }
  0x55   : > { %1120 = dma.hbm_to_vmem [thread:$0]  (!%p1466_p0), %s1530_s23, 2048, %s1534_s1, %s161_s10, %s2055_s5, %s2055_s5, %s2054_s19  }
  0x56   : > { %s1569_s29 = scalar_lea.hbm %s2032_s2, %s911_s8  ;;  %s207_s6 = scalar_lea.vmem [#allocation7], %s1460_s28 }
  0x57   : > { %s214_s7 = sshll.u32 %s207_s6, 4  ;;  %s1245_s20 = scalar_lea.hbm %s1569_s29, 16  ;;  %s215_s7 = int_to_ptr.vmem [resolvable:$true] %s214_s7 }
  0x58   : > { %p1246_p11 = scmp.ne.s32.totalorder %s1569_s29, %s1245_s20  ;;  %s1250_s23 = scalar_lea.hbm %s2032_s2, 32 }
  0x59   : > { %p1251_p5 = scmp.lt.u32.totalorder %s1569_s29, %s2032_s2  ;;  %p1252_p7 = scmp.lt.u32.totalorder %s1250_s23, %s1245_s20 }
  0x5a   : > { %p1248_p2 = pnand %p1246_p11, %p1490_p4  ;;  %p1254_p8 = scmp.lt.u32.totalorder %s1245_s20, %s1569_s29 }
  0x5b   : > { %p1253_p10 = por %p1252_p7, %p1251_p5 }
  0x5c   : > { %p1249_p3 = pneg %p1248_p2 }
  0x5d   : > { %p1255_p9 = por %p1254_p8, %p1253_p10 }
  0x5f   : > { %p1256_p12 = pnand %p1255_p9, %p1249_p3 }
  0x61   : > { %1259 = shalt.err (!%p1256_p12)
}
  0x62   : > { %s1260_s28 = scalar_lea.vmem %s215_s7, 16  ;;  %s1367_s8 = smov [#allocation7]  }
  0x63   : > { %p1261_p1 = scmp.ne.s32.totalorder %s215_s7, %s1260_s28  ;;  %s1265_s5 = sshll.u32 %s1367_s8, 4  ;;  %s1266_s5 = int_to_ptr.vmem [resolvable:$false] %s1265_s5 }
  0x64   : > { %s1267_s0 = scalar_lea.vmem %s1266_s5, 32  ;;  %p1268_p11 = scmp.lt.s32.totalorder %s215_s7, %s1266_s5 }
  0x65   : > { %p1263_p6 = pnand %p1261_p1, %p1490_p4  ;;  %p1269_p2 = scmp.lt.s32.totalorder %s1267_s0, %s1260_s28 }
  0x67   : > { %p1264_p13 = pneg %p1263_p6  ;;  %p1270_p0 = por %p1269_p2, %p1268_p11 }
  0x69   : > { %p1271_p5 = pnand %p1270_p0, %p1264_p13 }
  0x6b   : > { %1274 = shalt.err (!%p1271_p5)
}
  0x6c   : > { %p2056_p7 = scmp.ne.s32.totalorder %s2047_s4, 0  ;;  %p2057_p3 = scmp.ne.s32.totalorder %s2052_s9, 0 }
  0x6d   : > { %s1593_s21 = sand.u32 (!%p2057_p3), 1, %s1345_s13   ;;  %p2058_p0 = scmp.ne.s32.totalorder (!%p2057_p3), %s2044_s24, 0 }
  0x6e   : > { %1126 = dma.hbm_to_vmem [thread:$0]  (!%p2056_p7), %s1569_s29, 16, %s215_s7, %s1484_s11  }
  0x6f   : > { %223 = sbr.rel (%p2057_p3) target bundleno = 437 (0x1b5), region = 32  ;;  %s1596_s30 = sshll.u32 (!%p2057_p3), %s1593_s21, 7 }
  0x70   : > { %s226_s22 = scalar_lea.sflag (!%p2057_p3), [#allocation3], %s1593_s21  ;;  %s1600_s6 = scalar_lea.vmem (!%p2057_p3), [#allocation2], %s1596_s30 }
  0x76   : > { %1328 = dma.done.wait (%p2058_p0), %s226_s22, 2048  }
  0x77   : > { %1330 = vsyncadd (%p2058_p0), %s226_s22, 4294965248  ;;  %s234_s4 = sand.u32 1, %s1422_s18   ;;  %s1608_s9 = scalar_lea.vmem [#allocation5], %s1596_s30 }
  0x78   : > { %s235_s11 = scalar_lea.sflag [#allocation6], %s234_s4 }
  0x79   : > { %1332 = dma.done.wait (%p2058_p0), %s235_s11, 2064  }
  0x7a   : > { %1334 = vsyncadd (%p2058_p0), %s235_s11, 4294965232  ;;  %vm312_vm0 = vcmask 64512   ;;  %v296_v1 = vld [vmem:[%s1608_s9] sm:$0xff]  ;;  %v297_v2 = vld [vmem:[%s1608_s9 + $0x8] sm:$0xff]  ;;  %s246_s18 = scalar_lea.vmem [#allocation7], %s1593_s21  ;;  %s1892_s24 = scalar_lea.vmem [#allocation8], %s1596_s30 }
  0x7b   : > { %vm1616_vm1 = vmpackc.low %vm312_vm0, %vm312_vm0  ;;  %v298_v3 = vld [vmem:[%s1608_s9 + $0x10] sm:$0xff]  ;;  %v1045_v4 = vpack.c.bf16 %v297_v2, %v296_v1  ;;  %v299_v5 = vld [vmem:[%s1608_s9 + $0x18] sm:$0xff]  ;;  %s956_s29 = sshll.u32 %s1353_s15, 11  ;;  %s774_s7 = sshll.u32 %s1892_s24, 4  ;;  %s1971_s7 = int_to_ptr.vmem [resolvable:$true] %s774_s7 }
  0x7c   : > { %v1051_v6 = vpack.c.bf16 %v299_v5, %v298_v3  ;;  %v300_v7 = vld [vmem:[%s1608_s9 + $0x20] sm:$0xff]  ;;  %v301_v10 = vld [vmem:[%s1608_s9 + $0x28] sm:$0xff]  ;;  %v1646_v13 = vld [vmem:[%s1600_s6 + $0x10] sm:$0xff]  ;;  %s1969_s1 = scalar_lea.hbm %s2033_s3, %s956_s29  ;;  %s759_s23 = scalar_lea.sflag [#allocation4], %s1593_s21 }
  0x7d   : > { %1047 = vmatprep.subr.msk.bf16.mxu0 %vm1616_vm1, %v1045_v4  ;;  %1093 = vmatprep.subr.msk.bf16.mxu1 %vm1616_vm1, %v1045_v4  ;;  %v280_v8 = vld [vmem:[%s1600_s6] sm:$0xff]  ;;  %v1643_v12 = vld [vmem:[%s1600_s6 + $0x8] sm:$0xff]  ;;  %v1649_v14 = vld [vmem:[%s1600_s6 + $0x18] sm:$0xff]  ;;  %v556_v15 = vmul.f32 %v1646_v13, %v1646_v13  ;;  %v1057_v19 = vpack.c.bf16 %v301_v10, %v300_v7  ;;  %s1275_s10 = scalar_lea.vmem %s1971_s7, 2048  ;;  %p2061_p10 = scmp.ne.s32.totalorder %s2045_s25, 0 }
  0x7e   : > { %1050 = vmatpush3.bf16.xpose.msk.msra.mxu0 %vm1616_vm1, %v1045_v4  ;;  %1101 = vmatpush3.bf16.xpose.msk.msra.mxu1 %vm1616_vm1, %v1045_v4  ;;  %v288_v9 = vld [vmem:[%s1600_s6 + $0x40] sm:$0xff]  ;;  %v554_v11 = vmul.f32 %v280_v8, %v280_v8  ;;  %v555_v16 = vmul.f32 %v1643_v12, %v1643_v12  ;;  %v557_v18 = vmul.f32 %v1649_v14, %v1649_v14  ;;  %v1663_v22 = vld [vmem:[%s1600_s6 + $0x28] sm:$0xff]  ;;  %v302_v27 = vld [vmem:[%s1608_s9 + $0x30] sm:$0xff]  ;;  %p1276_p4 = scmp.ne.s32.totalorder %s1971_s7, %s1275_s10  ;;  %s1368_s19 = smov [#allocation8]  }
  0x7f   : > { %1053 = vmatprep.subr.msk.bf16.mxu0 %vm1616_vm1, %v1051_v6  ;;  %1094 = vmatprep.subr.msk.bf16.mxu1 %vm1616_vm1, %v1051_v6  ;;  %v576_v20 = vsel %vm312_vm0, %v556_v15, 0.0  ;;  %v1660_v21 = vld [vmem:[%s1600_s6 + $0x20] sm:$0xff]  ;;  %v559_v25 = vmul.f32 %v1663_v22, %v1663_v22  ;;  %v303_v28 = vld [vmem:[%s1608_s9 + $0x38] sm:$0xff]  ;;  %v1682_v29 = vld [vmem:[%s1600_s6 + $0x30] sm:$0xff]  ;;  %v562_v37 = vmul.f32 %v288_v9, %v288_v9  ;;  %s1279_s28 = sshll.u32 %s1368_s19, 4  ;;  %s1280_s28 = int_to_ptr.vmem [resolvable:$false] %s1279_s28 }
  0x80   : > { %1021 = vmatprep.mubr.msk.f32.mxu0 %vm312_vm0, %v280_v8  ;;  %1033 = vmatprep.mubr.msk.f32.mxu1 %vm312_vm0, %v288_v9  ;;  %v570_v17 = vsel %vm312_vm0, %v554_v11, 0.0  ;;  %v579_v23 = vsel %vm312_vm0, %v557_v18, 0.0  ;;  %v573_v24 = vsel %vm312_vm0, %v555_v16, 0.0  ;;  %v558_v26 = vmul.f32 %v1660_v21, %v1660_v21  ;;  %v1685_v30 = vld [vmem:[%s1600_s6 + $0x38] sm:$0xff]  ;;  %v1694_v36 = vld [vmem:[%s1600_s6 + $0x48] sm:$0xff]  ;;  %v304_v41 = vld [vmem:[%s1608_s9 + $0x40] sm:$0xff]  ;;  %p1277_p8 = pnand %p1276_p4, %p2061_p10  ;;  %p1282_p12 = scmp.lt.s32.totalorder %s1971_s7, %s1280_s28 }
  0x81   : > { %571 = vadd.xlane.f32.xlu0 %v570_v17  ;;  %577 = vadd.xlane.f32.xlu1 %v576_v20  ;;  %v585_v31 = vsel %vm312_vm0, %v559_v25, 0.0  ;;  %v561_v33 = vmul.f32 %v1685_v30, %v1685_v30  ;;  %v560_v34 = vmul.f32 %v1682_v29, %v1682_v29  ;;  %v1063_v35 = vpack.c.bf16 %v303_v28, %v302_v27  ;;  %v305_v42 = vld [vmem:[%s1608_s9 + $0x48] sm:$0xff]  ;;  %v290_v43 = vld [vmem:[%s1600_s6 + $0x50] sm:$0xff]  ;;  %v291_v44 = vld [vmem:[%s1600_s6 + $0x58] sm:$0xff]  ;;  %s1281_s8 = scalar_lea.vmem %s1280_s28, 4096 }
  0x82   : > { %v582_v32 = vsel %vm312_vm0, %v558_v26, 0.0  ;;  %v563_v40 = vmul.f32 %v1694_v36, %v1694_v36  ;;  %v594_v46 = vsel %vm312_vm0, %v562_v37, 0.0  ;;  %v565_v47 = vmul.f32 %v291_v44, %v291_v44  ;;  %v292_v50 = vld [vmem:[%s1600_s6 + $0x60] sm:$0xff]  ;;  %v293_v51 = vld [vmem:[%s1600_s6 + $0x68] sm:$0xff]  ;;  %v306_v56 = vld [vmem:[%s1608_s9 + $0x50] sm:$0xff]  ;;  %p1278_p9 = pneg %p1277_p8  ;;  %p1283_p1 = scmp.lt.s32.totalorder %s1281_s8, %s1275_s10 }
  0x83   : > { %v591_v38 = vsel %vm312_vm0, %v561_v33, 0.0  ;;  %v588_v39 = vsel %vm312_vm0, %v560_v34, 0.0  ;;  %v564_v48 = vmul.f32 %v290_v43, %v290_v43  ;;  %v1069_v49 = vpack.c.bf16 %v305_v42, %v304_v41  ;;  %v307_v57 = vld [vmem:[%s1608_s9 + $0x58] sm:$0xff]  ;;  %v294_v58 = vld [vmem:[%s1600_s6 + $0x70] sm:$0xff]  ;;  %v308_v4 = vld [vmem:[%s1608_s9 + $0x60] sm:$0xff] }
  0x84   : > { %v597_v45 = vsel %vm312_vm0, %v563_v40, 0.0  ;;  %v603_v52 = vsel %vm312_vm0, %v565_v47, 0.0  ;;  %v567_v54 = vmul.f32 %v293_v51, %v293_v51  ;;  %v566_v55 = vmul.f32 %v292_v50, %v292_v50  ;;  %v295_v59 = vld [vmem:[%s1600_s6 + $0x78] sm:$0xff]  ;;  %v309_v5 = vld [vmem:[%s1608_s9 + $0x68] sm:$0xff]  ;;  %v310_v7 = vld [vmem:[%s1608_s9 + $0x70] sm:$0xff]  ;;  %p1284_p6 = por %p1283_p1, %p1282_p12 }
  0x85   : > { %580 = vadd.xlane.f32.xlu1 %v579_v23  ;;  %574 = vadd.xlane.f32.xlu0 %v573_v24  ;;  %v600_v53 = vsel %vm312_vm0, %v564_v48, 0.0  ;;  %v569_v62 = vmul.f32 %v295_v59, %v295_v59  ;;  %v568_v63 = vmul.f32 %v294_v58, %v294_v58  ;;  %v1075_v1 = vpack.c.bf16 %v307_v57, %v306_v56  ;;  %v311_v8 = vld [vmem:[%s1608_s9 + $0x78] sm:$0xff]  ;;  %v1850_v41 = vld [vmem:[%s246_s18] ss:$0 sm:$0xff] }
  0x86   : > { %1056 = vmatpush3.bf16.xpose.msk.msra.mxu0 %vm1616_vm1, %v1051_v6  ;;  %1102 = vmatpush3.bf16.xpose.msk.msra.mxu1 %vm1616_vm1, %v1051_v6  ;;  %v609_v60 = vsel %vm312_vm0, %v567_v54, 0.0  ;;  %v606_v61 = vsel %vm312_vm0, %v566_v55, 0.0  ;;  %v1081_v6 = vpack.c.bf16 %v309_v5, %v308_v4  ;;  %v1087_v9 = vpack.c.bf16 %v311_v8, %v310_v7  ;;  %p1285_p13 = pnand %p1284_p6, %p1278_p9 }
  0x87   : > { %1059 = vmatprep.subr.msk.bf16.mxu0 %vm1616_vm1, %v1057_v19  ;;  %1095 = vmatprep.subr.msk.bf16.mxu1 %vm1616_vm1, %v1057_v19  ;;  %v615_v2 = vsel %vm312_vm0, %v569_v62, 0.0  ;;  %v612_v3 = vsel %vm312_vm0, %v568_v63, 0.0  ;;  %v673_v17 = vlaneseq }
  0x89   : > { %586 = vadd.xlane.f32.xlu1 %v585_v31  ;;  %583 = vadd.xlane.f32.xlu0 %v582_v32  ;;  %v1802_v18 = vshrl.u32 %v673_v17, 7 }
  0x8b   : > { %v683_v23 = vadd.s32 72, %v1802_v18  ;;  %v1809_v24 = vadd.s32 64, %v1802_v18  ;;  %v1812_v25 = vadd.s32 24, %v1802_v18  ;;  %v1815_v26 = vadd.s32 88, %v1802_v18 }
  0x8c   : > { %v1838_v33 = vadd.s32 40, %v1802_v18  ;;  %v1841_v34 = vadd.s32 104, %v1802_v18  ;;  %v1847_v40 = vadd.s32 96, %v1802_v18  ;;  %v1861_v48 = vadd.s32 56, %v1802_v18 }
  0x8d   : > { %592 = vadd.xlane.f32.xlu1 %v591_v38  ;;  %589 = vadd.xlane.f32.xlu0 %v588_v39  ;;  %v1844_v39 = vadd.s32 32, %v1802_v18  ;;  %v1872_v54 = vadd.s32 48, %v1802_v18  ;;  %v1875_v55 = vadd.s32 112, %v1802_v18 }
  0x8e   : > { %1062 = vmatpush3.bf16.xpose.msk.msra.mxu0 %vm1616_vm1, %v1057_v19  ;;  %1103 = vmatpush3.bf16.xpose.msk.msra.mxu1 %vm1616_vm1, %v1057_v19 }
  0x8f   : > { %1065 = vmatprep.subr.msk.bf16.mxu0 %vm1616_vm1, %v1063_v35  ;;  %1096 = vmatprep.subr.msk.bf16.mxu1 %vm1616_vm1, %v1063_v35 }
  0x91   : > { %598 = vadd.xlane.f32.xlu1 %v597_v45  ;;  %595 = vadd.xlane.f32.xlu0 %v594_v46 }
  0x95   : > { %604 = vadd.xlane.f32.xlu1 %v603_v52  ;;  %601 = vadd.xlane.f32.xlu0 %v600_v53 }
  0x96   : > { %1068 = vmatpush3.bf16.xpose.msk.msra.mxu0 %vm1616_vm1, %v1063_v35  ;;  %1104 = vmatpush3.bf16.xpose.msk.msra.mxu1 %vm1616_vm1, %v1063_v35 }
  0x97   : > { %1071 = vmatprep.subr.msk.bf16.mxu0 %vm1616_vm1, %v1069_v49  ;;  %1097 = vmatprep.subr.msk.bf16.mxu1 %vm1616_vm1, %v1069_v49 }
  0x99   : > { %610 = vadd.xlane.f32.xlu1 %v609_v60  ;;  %607 = vadd.xlane.f32.xlu0 %v606_v61 }
  0x9d   : > { %616 = vadd.xlane.f32.xlu1 %v615_v2  ;;  %613 = vadd.xlane.f32.xlu0 %v612_v3 }
  0x9e   : > { %1074 = vmatpush3.bf16.xpose.msk.msra.mxu0 %vm1616_vm1, %v1069_v49  ;;  %1105 = vmatpush3.bf16.xpose.msk.msra.mxu1 %vm1616_vm1, %v1069_v49  ;;  %v1864_v49 = vadd.s32 120, %v1802_v18 }
  0x9f   : > { %1077 = vmatprep.subr.msk.bf16.mxu0 %vm1616_vm1, %v1075_v1  ;;  %1098 = vmatprep.subr.msk.bf16.mxu1 %vm1616_vm1, %v1075_v1 }
  0xa6   : > { %1080 = vmatpush3.bf16.xpose.msk.msra.mxu0 %vm1616_vm1, %v1075_v1  ;;  %1106 = vmatpush3.bf16.xpose.msk.msra.mxu1 %vm1616_vm1, %v1075_v1 }
  0xa7   : > { %1083 = vmatprep.subr.msk.bf16.mxu0 %vm1616_vm1, %v1081_v6  ;;  %1099 = vmatprep.subr.msk.bf16.mxu1 %vm1616_vm1, %v1081_v6 }
  0xae   : > { %1086 = vmatpush3.bf16.xpose.msk.msra.mxu0 %vm1616_vm1, %v1081_v6  ;;  %1107 = vmatpush3.bf16.xpose.msk.msra.mxu1 %vm1616_vm1, %v1081_v6 }
  0xaf   : > { %1089 = vmatprep.subr.msk.bf16.mxu0 %vm1616_vm1, %v1087_v9  ;;  %1100 = vmatprep.subr.msk.bf16.mxu1 %vm1616_vm1, %v1087_v9 }
  0xb6   : > { %1092 = vmatpush3.bf16.xpose.msk.msra.mxu0 %vm1616_vm1, %v1087_v9  ;;  %1108 = vmatpush3.bf16.xpose.msk.msra.mxu1 %vm1616_vm1, %v1087_v9 }
  0xbd   : > { %1022 = vmatmul.mubr.msk.f32.vlgmr.msra.gmra.mrb[0].mxu0 %vm312_vm0, %v1643_v12  ;;  %1034 = vmatmul.mubr.msk.f32.vlgmr.msra.gmra.mrb[0].mxu1 %vm312_vm0, %v1694_v36 }
  0xbe   : > { %1024 = vmatprep.mubr.msk.f32.mxu0 %vm312_vm0, %v1646_v13  ;;  %1036 = vmatprep.mubr.msk.f32.mxu1 %vm312_vm0, %v290_v43 }
  0xc1   : > { %1025 = vmatmul.mubr.msk.f32.gmra.mrb[2].mxu0 %vm312_vm0, %v1649_v14  ;;  %1037 = vmatmul.mubr.msk.f32.gmra.mrb[2].mxu1 %vm312_vm0, %v291_v44 }
  0xc2   : > { %1027 = vmatprep.mubr.msk.f32.mxu0 %vm312_vm0, %v1660_v21  ;;  %1039 = vmatprep.mubr.msk.f32.mxu1 %vm312_vm0, %v292_v50  ;;  %v675_v21 = vadd.s32 8, %v1802_v18 }
  0xc5   : > { %1028 = vmatmul.mubr.msk.f32.gmra.mrb[4].mxu0 %vm312_vm0, %v1663_v22  ;;  %1040 = vmatmul.mubr.msk.f32.gmra.mrb[4].mxu1 %vm312_vm0, %v293_v51  ;;  %v1805_v22 = vand.u32 127, %v673_v17 }
  0xc6   : > { %1030 = vmatprep.mubr.msk.f32.mxu0 %vm312_vm0, %v1682_v29  ;;  %1042 = vmatprep.mubr.msk.f32.mxu1 %vm312_vm0, %v294_v58  ;;  %v1822_v29 = vadd.s32 16, %v1802_v18 }
  0xc7   : > { %vm711_vm2 = vcmp.eq.s32.totalorder %v675_v21, %v1805_v22  ;;  %vm710_vm3 = vcmp.eq.s32.totalorder %v1802_v18, %v1805_v22  ;;  %vm719_vm4 = vcmp.eq.s32.totalorder %v683_v23, %v1805_v22  ;;  %vm718_vm5 = vcmp.eq.s32.totalorder %v1809_v24, %v1805_v22 }
  0xc8   : > { %vm713_vm6 = vcmp.eq.s32.totalorder %v1812_v25, %v1805_v22  ;;  %vm721_vm7 = vcmp.eq.s32.totalorder %v1815_v26, %v1805_v22  ;;  %vm712_vm8 = vcmp.eq.s32.totalorder %v1822_v29, %v1805_v22  ;;  %vm715_vm10 = vcmp.eq.s32.totalorder %v1838_v33, %v1805_v22 }
  0xc9   : > { %1031 = vmatmul.mubr.msk.f32.gmra.mrb[6].mxu0 %vm312_vm0, %v1685_v30  ;;  %1043 = vmatmul.mubr.msk.f32.gmra.mrb[6].mxu1 %vm312_vm0, %v295_v59  ;;  %v1825_v30 = vadd.s32 80, %v1802_v18  ;;  %vm723_vm11 = vcmp.eq.s32.totalorder %v1841_v34, %v1805_v22  ;;  %vm714_vm12 = vcmp.eq.s32.totalorder %v1844_v39, %v1805_v22  ;;  %vm722_vm13 = vcmp.eq.s32.totalorder %v1847_v40, %v1805_v22 }
  0xca   : > { %vm717_vm14 = vcmp.eq.s32.totalorder %v1861_v48, %v1805_v22  ;;  %vm725_vm15 = vcmp.eq.s32.totalorder %v1864_v49, %v1805_v22  ;;  %vm716_vm0 = vcmp.eq.s32.totalorder %v1872_v54, %v1805_v22  ;;  %vm724_vm1 = vcmp.eq.s32.totalorder %v1875_v55, %v1805_v22 }
  0xcb   : > { %vm720_vm9 = vcmp.eq.s32.totalorder %v1825_v30, %v1805_v22 }
 0x10e   : > { %v1788_v0 = vpop.xlane.xlu1 %577  ;;  %v1790_v10 = vpop.xlane.xlu0 %571 }
 0x112   : > { %v1792_v11 = vpop.xlane.xlu1 %580  ;;  %v575_v12 = vpop.xlane.xlu0 %574 }
 0x116   : > { %v1794_v13 = vpop.xlane.xlu1 %586  ;;  %v1796_v14 = vpop.xlane.xlu0 %583 }
 0x11a   : > { %v1798_v15 = vpop.xlane.xlu1 %592  ;;  %v1800_v16 = vpop.xlane.xlu0 %589 }
 0x11e   : > { %v599_v19 = vpop.xlane.xlu1 %598  ;;  %v596_v20 = vpop.xlane.xlu0 %595 }
 0x122   : > { %v1817_v27 = vpop.xlane.xlu1 %604  ;;  %v1819_v28 = vpop.xlane.xlu0 %601 }
 0x126   : > { %v1856_v46 = vpop.xlane.xlu1 %610  ;;  %v1858_v47 = vpop.xlane.xlu0 %607 }
 0x190   : > { %v1023_v31 = vpop.f32.mrb[0].mxu0  ;;  %v1035_v32 = vpop.f32.mrb[0].mxu1 }
 0x191   : > { %v619_v35 = vmul.f32 2.0, %v1023_v31  ;;  %v627_v36 = vmul.f32 2.0, %v1035_v32  ;;  %v475_v37 = vpop.f32.mrb[1].mxu0  ;;  %v515_v38 = vpop.f32.mrb[1].mxu1 }
 0x192   : > { %v618_v42 = vmul.f32 2.0, %v475_v37  ;;  %v626_v43 = vmul.f32 2.0, %v515_v38  ;;  %v617_v37 = vpop.xlane.xlu1 %616  ;;  %v614_v38 = vpop.xlane.xlu0 %613 }
 0x193   : > { %v635_v44 = vsub.f32 %v619_v35, %v575_v12  ;;  %v643_v45 = vsub.f32 %v627_v36, %v599_v19 }
 0x194   : > { %v634_v50 = vsub.f32 %v618_v42, %v1790_v10  ;;  %v642_v51 = vsub.f32 %v626_v43, %v596_v20  ;;  %v1026_v52 = vpop.f32.mrb[2].mxu0  ;;  %v1038_v53 = vpop.f32.mrb[2].mxu1 }
 0x195   : > { %v658_v56 = vsub.f32 %v635_v44, %v1850_v41  ;;  %v666_v57 = vsub.f32 %v643_v45, %v1850_v41  ;;  %v621_v58 = vmul.f32 2.0, %v1026_v52  ;;  %v629_v59 = vmul.f32 2.0, %v1038_v53  ;;  %v485_v60 = vpop.f32.mrb[3].mxu0  ;;  %v525_v61 = vpop.f32.mrb[3].mxu1 }
 0x196   : > { %v657_v62 = vsub.f32 %v634_v50, %v1850_v41  ;;  %v665_v63 = vsub.f32 %v642_v51, %v1850_v41  ;;  %v620_v1 = vmul.f32 2.0, %v485_v60  ;;  %v628_v2 = vmul.f32 2.0, %v525_v61 }
 0x197   : > { %v727_v3 = vsel %vm711_vm2, 1e-06, %v658_v56  ;;  %v735_v4 = vsel %vm719_vm4, 1e-06, %v666_v57  ;;  %v637_v5 = vsub.f32 %v621_v58, %v1792_v11  ;;  %v645_v6 = vsub.f32 %v629_v59, %v1817_v27 }
 0x198   : > { %743 = vst [vmem:[%s1892_s24 + $0x8] sm:$0xff] %v727_v3  ;;  %v726_v7 = vsel %vm710_vm3, 1e-06, %v657_v62  ;;  %751 = vst [vmem:[%s1892_s24 + $0x48] sm:$0xff] %v735_v4  ;;  %v734_v8 = vsel %vm718_vm5, 1e-06, %v665_v63  ;;  %v636_v9 = vsub.f32 %v620_v1, %v1788_v0  ;;  %v644_v10 = vsub.f32 %v628_v2, %v1819_v28 }
 0x199   : > { %v1029_v11 = vpop.f32.mrb[4].mxu0  ;;  %v1041_v12 = vpop.f32.mrb[4].mxu1  ;;  %742 = vst [vmem:[%s1892_s24] sm:$0xff] %v726_v7  ;;  %750 = vst [vmem:[%s1892_s24 + $0x40] sm:$0xff] %v734_v8  ;;  %v660_v17 = vsub.f32 %v637_v5, %v1850_v41  ;;  %v668_v18 = vsub.f32 %v645_v6, %v1850_v41 }
 0x19a   : > { %v623_v19 = vmul.f32 2.0, %v1029_v11  ;;  %v631_v0 = vmul.f32 2.0, %v1041_v12  ;;  %v495_v20 = vpop.f32.mrb[5].mxu0  ;;  %v535_v21 = vpop.f32.mrb[5].mxu1  ;;  %v659_v23 = vsub.f32 %v636_v9, %v1850_v41  ;;  %v667_v24 = vsub.f32 %v644_v10, %v1850_v41 }
 0x19b   : > { %v622_v27 = vmul.f32 2.0, %v495_v20  ;;  %v630_v28 = vmul.f32 2.0, %v535_v21  ;;  %v729_v31 = vsel %vm713_vm6, 1e-06, %v660_v17  ;;  %v737_v32 = vsel %vm721_vm7, 1e-06, %v668_v18 }
 0x19c   : > { %v639_v35 = vsub.f32 %v623_v19, %v1794_v13  ;;  %v647_v36 = vsub.f32 %v631_v0, %v1856_v46  ;;  %745 = vst [vmem:[%s1892_s24 + $0x18] sm:$0xff] %v729_v31  ;;  %v728_v42 = vsel %vm712_vm8, 1e-06, %v659_v23  ;;  %753 = vst [vmem:[%s1892_s24 + $0x58] sm:$0xff] %v737_v32  ;;  %v736_v25 = vsel %vm720_vm9, 1e-06, %v667_v24 }
 0x19d   : > { %v638_v43 = vsub.f32 %v622_v27, %v1796_v14  ;;  %v646_v26 = vsub.f32 %v630_v28, %v1858_v47  ;;  %v1032_v44 = vpop.f32.mrb[6].mxu0  ;;  %v1044_v13 = vpop.f32.mrb[6].mxu1  ;;  %744 = vst [vmem:[%s1892_s24 + $0x10] sm:$0xff] %v728_v42  ;;  %752 = vst [vmem:[%s1892_s24 + $0x50] sm:$0xff] %v736_v25 }
 0x19e   : > { %v662_v45 = vsub.f32 %v639_v35, %v1850_v41  ;;  %v670_v29 = vsub.f32 %v647_v36, %v1850_v41  ;;  %v625_v46 = vmul.f32 2.0, %v1032_v44  ;;  %v633_v50 = vmul.f32 2.0, %v1044_v13  ;;  %v505_v30 = vpop.f32.mrb[7].mxu0  ;;  %v545_v51 = vpop.f32.mrb[7].mxu1 }
 0x19f   : > { %v661_v14 = vsub.f32 %v638_v43, %v1850_v41  ;;  %v669_v47 = vsub.f32 %v646_v26, %v1850_v41  ;;  %v624_v52 = vmul.f32 2.0, %v505_v30  ;;  %v632_v53 = vmul.f32 2.0, %v545_v51 }
 0x1a0   : > { %v731_v56 = vsel %vm715_vm10, 1e-06, %v662_v45  ;;  %v739_v57 = vsel %vm723_vm11, 1e-06, %v670_v29  ;;  %v641_v58 = vsub.f32 %v625_v46, %v1798_v15  ;;  %v649_v59 = vsub.f32 %v633_v50, %v617_v37 }
 0x1a1   : > { %747 = vst [vmem:[%s1892_s24 + $0x28] sm:$0xff] %v731_v56  ;;  %v730_v60 = vsel %vm714_vm12, 1e-06, %v661_v14  ;;  %755 = vst [vmem:[%s1892_s24 + $0x68] sm:$0xff] %v739_v57  ;;  %v738_v33 = vsel %vm722_vm13, 1e-06, %v669_v47  ;;  %v640_v61 = vsub.f32 %v624_v52, %v1800_v16  ;;  %v648_v34 = vsub.f32 %v632_v53, %v614_v38 }
 0x1a2   : > { %746 = vst [vmem:[%s1892_s24 + $0x20] sm:$0xff] %v730_v60  ;;  %754 = vst [vmem:[%s1892_s24 + $0x60] sm:$0xff] %v738_v33  ;;  %v664_v15 = vsub.f32 %v641_v58, %v1850_v41  ;;  %v672_v39 = vsub.f32 %v649_v59, %v1850_v41 }
 0x1a3   : > { %v663_v16 = vsub.f32 %v640_v61, %v1850_v41  ;;  %v671_v40 = vsub.f32 %v648_v34, %v1850_v41 }
 0x1a4   : > { %v733_v54 = vsel %vm717_vm14, 1e-06, %v664_v15  ;;  %v741_v55 = vsel %vm725_vm15, 1e-06, %v672_v39 }
 0x1a5   : > { %749 = vst [vmem:[%s1892_s24 + $0x38] sm:$0xff] %v733_v54  ;;  %v732_v41 = vsel %vm716_vm0, 1e-06, %v663_v16  ;;  %757 = vst [vmem:[%s1892_s24 + $0x78] sm:$0xff] %v741_v55  ;;  %v740_v62 = vsel %vm724_vm1, 1e-06, %v671_v40 }
 0x1a6   : > { %748 = vst [vmem:[%s1892_s24 + $0x30] sm:$0xff] %v732_v41  ;;  %756 = vst [vmem:[%s1892_s24 + $0x70] sm:$0xff] %v740_v62 }
 0x1a7   : > { %1288 = shalt.err (!%p1285_p13)
}
 0x1a8   : > { %s1289_s5 = scalar_lea.hbm %s1969_s1, 2048  ;;  %s1293_s22 = scalar_lea.hbm %s2033_s3, 4096 }
 0x1a9   : > { %p1290_p11 = scmp.ne.s32.totalorder %s1969_s1, %s1289_s5  ;;  %p1294_p7 = scmp.lt.u32.totalorder %s1969_s1, %s2033_s3 }
 0x1aa   : > { %p1295_p3 = scmp.lt.u32.totalorder %s1293_s22, %s1289_s5  ;;  %p1297_p4 = scmp.lt.u32.totalorder %s1289_s5, %s1969_s1 }
 0x1ab   : > { %p1291_p2 = pnand %p1290_p11, %p2061_p10 }
 0x1ac   : > { %p1296_p0 = por %p1295_p3, %p1294_p7 }
 0x1ad   : > { %p1292_p5 = pneg %p1291_p2 }
 0x1ae   : > { %p1298_p8 = por %p1297_p4, %p1296_p0 }
 0x1b0   : > { %p1299_p9 = pnand %p1298_p8, %p1292_p5 }
 0x1b2   : > { %1302 = shalt.err (!%p1299_p9)
}
 0x1b3   : > { %s1369_s11 = smov 128   ;;  %s1370_s9 = smov 8  }
 0x1b4   : > { %1115 = dma.vmem_to_hbm [thread:$0]  (%p2061_p10), %s1971_s7, 2048, %s1969_s1, %s759_s23, %s1369_s11, %s1369_s11, %s1370_s9  }
 0x1b5 PF: > { %s789_s18 = sand.u32 1, %s1341_s12   ;;  %p2062_p12 = scmp.ne.s32.totalorder %s2046_s27, 0 }
 0x1b6   : > { %p2063_p1 = scmp.ge.s32.totalorder %s1361_s17, 2  ;;  %s790_s24 = scalar_lea.sflag [#allocation4], %s789_s18 }
 0x1b8   : > { %p1128_p6 = pnand %p2063_p1, %p2062_p12 }
 0x1ba   : > { %1336 = dma.done.wait (!%p1128_p6), %s790_s24, 2048  }
 0x1bb   : > { %1338 = vsyncadd (!%p1128_p6), %s790_s24, 4294965248  ;;  %s22_s17 = sadd.s32 1, %s1361_s17   ;;  %s2064_s25 = sld [smem:[#allocation12_spill]] }
 0x1bc   : > { %p19_p13 = scmp.ge.s32.totalorder %s22_s17, 4   ;;  %s2065_s12 = smov %s1345_s13 }
 0x1bd   : > { %s2066_s13 = smov %s1349_s14  ;;  %s2067_s14 = smov %s1451_s26 }
 0x1be   : > { %s2068_s15 = smov %s1357_s16  ;;  %21 = sbr.rel (!%p19_p13) target bundleno = 11 (0xb), region = 101 }
 0x1c1   : > { %s2069_s16 = smov %s2064_s25 }
 0x1c5   :  { %795 = vsyncpa [#allocation3], 1 }
 0x1c6   :  { %797 = vsyncpa [#allocation3 + $0x1], 1 }
 0x1c7   :  { %798 = vsyncpa [#allocation6], 1 }
 0x1c8   :  { %800 = vsyncpa [#allocation6 + $0x1], 1 }
 0x1c9   :  { %801 = vsyncpa [#allocation4], 1 }
 0x1ca   :  { %803 = vsyncpa [#allocation4 + $0x1], 1 }

// kernel: foldnet_encoder_forward.6
= control target key start
LH: loop header
LB: loop body
LE: loop exit
PB: predicated region body
PF: predicated region fallthrough
CT: control target
= control target key end

     0   :  { %12 = vsyncpa [#allocation3], 0  ;;  %s2053_s0 = inlined_call_operand.hbm [shape: f32[256,12], index: 0, kind: input, shape index: {}]   ;;  %s2054_s1 = inlined_call_operand.hbm [shape: bf16[12,64], index: 1, kind: input, shape index: {}]   ;;  %s2055_s2 = inlined_call_operand.hbm [shape: f32[1,64], index: 2, kind: input, shape index: {}]   ;;  %s2056_s3 = inlined_call_operand.hbm [shape: bf16[64,64], index: 3, kind: input, shape index: {}]   ;;  %s2057_s4 = inlined_call_operand.hbm [shape: f32[1,64], index: 4, kind: input, shape index: {}]   ;;  %s2058_s5 = inlined_call_operand.hbm [shape: bf16[64,64], index: 5, kind: input, shape index: {}]   ;;  %s2059_s6 = inlined_call_operand.hbm [shape: f32[1,64], index: 6, kind: input, shape index: {}]   ;;  %s2060_s7 = inlined_call_operand.hbm [shape: bf16[256,64], index: 7, kind: output, shape index: {}]  }
   0x1   :  { %13 = vsyncpa [#allocation6], 0 }
   0x2   :  { %14 = vsyncpa [#allocation9], 0 }
   0x3   :  { %15 = vsyncpa [#allocation12], 0 }
   0x4   :  { %16 = vsyncpa [#allocation4], 0  ;;  %s1705_s24 = smov [#allocation5]   ;;  %s1519_s28 = scalar_lea.hbm %s2054_s1, 128 }
   0x5   :  { %s34_s25 = sshll.u32 %s1705_s24, 4  ;;  %p1520_p0 = scmp.ne.s32.totalorder %s2054_s1, %s1519_s28  ;;  %s35_s25 = int_to_ptr.vmem [resolvable:$true] %s34_s25 }
   0x6   :  { %p1523_p1 = scmp.lt.u32.totalorder %s1519_s28, %s2054_s1 }
   0x8   :  { %p1525_p2 = pnand %p1523_p1, %p1520_p0 }
   0xa   :  { %1528 = shalt.err (!%p1525_p2)
}
   0xb   :  { %s1529_s10 = scalar_lea.vmem %s35_s25, 128  ;;  %p1534_p4 = scmp.lt.s32.totalorder %s35_s25, %s35_s25 }
   0xc   :  { %p1530_p3 = scmp.ne.s32.totalorder %s35_s25, %s1529_s10  ;;  %p1535_p5 = scmp.lt.s32.totalorder %s1529_s10, %s1529_s10 }
   0xe   :  { %p1536_p6 = por %p1535_p5, %p1534_p4 }
  0x10   :  { %p1537_p7 = pnand %p1536_p6, %p1530_p3 }
  0x12   :  { %1540 = shalt.err (!%p1537_p7)
}
  0x13   :  { %s1706_s11 = smov 64   ;;  %s1707_s12 = smov 4  }
  0x14   :  { %40 = dma.hbm_to_vmem [thread:$0]  %s2054_s1, 128, %s35_s25, [#allocation6], %s1706_s11, %s1706_s11, %s1707_s12  }
  0x15   :  { %s1708_s15 = smov [#allocation8]   ;;  %s1709_s17 = smov [#allocation11]  }
  0x16   :  { %s56_s16 = sshll.u32 %s1708_s15, 4  ;;  %s78_s18 = sshll.u32 %s1709_s17, 4  ;;  %s57_s16 = int_to_ptr.vmem [resolvable:$true] %s56_s16  ;;  %s79_s18 = int_to_ptr.vmem [resolvable:$true] %s78_s18 }
  0x17   :  { %s1541_s21 = scalar_lea.hbm %s2056_s3, 512 }
  0x18   :  { %p1542_p8 = scmp.ne.s32.totalorder %s2056_s3, %s1541_s21  ;;  %p1545_p9 = scmp.lt.u32.totalorder %s1541_s21, %s2056_s3 }
  0x1a   :  { %p1547_p10 = pnand %p1545_p9, %p1542_p8 }
  0x1c   :  { %1550 = shalt.err (!%p1547_p10)
}
  0x1d   :  { %s1551_s1 = scalar_lea.vmem %s57_s16, 512  ;;  %p1556_p12 = scmp.lt.s32.totalorder %s57_s16, %s57_s16 }
  0x1e   :  { %p1552_p11 = scmp.ne.s32.totalorder %s57_s16, %s1551_s1  ;;  %p1557_p13 = scmp.lt.s32.totalorder %s1551_s1, %s1551_s1 }
  0x20   :  { %p1558_p0 = por %p1557_p13, %p1556_p12 }
  0x22   :  { %p1559_p1 = pnand %p1558_p0, %p1552_p11 }
  0x24   :  { %1562 = shalt.err (!%p1559_p1)
}
  0x25   :  { %62 = dma.hbm_to_vmem [thread:$0]  %s2056_s3, 512, %s57_s16, [#allocation9], %s1706_s11, %s1706_s11, %s1707_s12  }
  0x26   :  { %s1563_s30 = scalar_lea.hbm %s2058_s5, 512 }
  0x27   :  { %p1564_p2 = scmp.ne.s32.totalorder %s2058_s5, %s1563_s30  ;;  %p1567_p3 = scmp.lt.u32.totalorder %s1563_s30, %s2058_s5 }
  0x29   :  { %p1569_p4 = pnand %p1567_p3, %p1564_p2 }
  0x2b   :  { %1572 = shalt.err (!%p1569_p4)
}
  0x2c   :  { %s1573_s14 = scalar_lea.vmem %s79_s18, 512  ;;  %p1578_p6 = scmp.lt.s32.totalorder %s79_s18, %s79_s18 }
  0x2d   :  { %p1574_p5 = scmp.ne.s32.totalorder %s79_s18, %s1573_s14  ;;  %p1579_p7 = scmp.lt.s32.totalorder %s1573_s14, %s1573_s14 }
  0x2f   :  { %p1580_p8 = por %p1579_p7, %p1578_p6 }
  0x31   :  { %p1581_p9 = pnand %p1580_p8, %p1574_p5 }
  0x33   :  { %1584 = shalt.err (!%p1581_p9)
}
  0x34   :  { %84 = dma.hbm_to_vmem [thread:$0]  %s2058_s5, 512, %s79_s18, [#allocation12], %s1706_s11, %s1706_s11, %s1707_s12  }
  0x35   :  { %s1710_s16 = smov [#allocation2]   ;;  %s1585_s21 = scalar_lea.hbm %s2053_s0, 4096 }
  0x36   :  { %s22_s17 = sshll.u32 %s1710_s16, 4  ;;  %p1586_p10 = scmp.ne.s32.totalorder %s2053_s0, %s1585_s21  ;;  %s23_s17 = int_to_ptr.vmem [resolvable:$true] %s22_s17 }
  0x37   :  { %p1589_p11 = scmp.lt.u32.totalorder %s1585_s21, %s2053_s0 }
  0x39   :  { %p1591_p12 = pnand %p1589_p11, %p1586_p10 }
  0x3b   :  { %1594 = shalt.err (!%p1591_p12)
}
  0x3c   :  { %s1595_s1 = scalar_lea.vmem %s23_s17, 4096  ;;  %p1600_p0 = scmp.lt.s32.totalorder %s23_s17, %s23_s17 }
  0x3d   :  { %p1596_p13 = scmp.ne.s32.totalorder %s23_s17, %s1595_s1  ;;  %p1601_p1 = scmp.lt.s32.totalorder %s1595_s1, %s1595_s1 }
  0x3f   :  { %p1602_p2 = por %p1601_p1, %p1600_p0 }
  0x41   :  { %p1603_p3 = pnand %p1602_p2, %p1596_p13 }
  0x43   :  { %1606 = shalt.err (!%p1603_p3)
}
  0x44   :  { %s1711_s5 = smov 128   ;;  %s1712_s18 = smov 8  }
  0x45   :  { %28 = dma.hbm_to_vmem [thread:$0]  %s2053_s0, 4096, %s23_s17, [#allocation3], %s1711_s5, %s1711_s5, %s1712_s18  }
  0x46   :  { %s1713_s28 = smov [#allocation7]   ;;  %s1714_s30 = smov [#allocation10]  }
  0x47   :  { %s47_s29 = sshll.u32 %s1713_s28, 4  ;;  %s69_s8 = sshll.u32 %s1714_s30, 4  ;;  %s48_s29 = int_to_ptr.vmem [resolvable:$true] %s47_s29  ;;  %s70_s8 = int_to_ptr.vmem [resolvable:$true] %s69_s8 }
  0x48   :  { %s1607_s13 = scalar_lea.hbm %s2055_s2, 16 }
  0x49   :  { %p1608_p4 = scmp.ne.s32.totalorder %s2055_s2, %s1607_s13  ;;  %p1611_p5 = scmp.lt.u32.totalorder %s1607_s13, %s2055_s2 }
  0x4b   :  { %p1613_p6 = pnand %p1611_p5, %p1608_p4 }
  0x4d   :  { %1616 = shalt.err (!%p1613_p6)
}
  0x4e   :  { %s1617_s0 = scalar_lea.vmem %s48_s29, 16  ;;  %s1621_s17 = scalar_lea.vmem %s48_s29, 32 }
  0x4f   :  { %p1618_p7 = scmp.ne.s32.totalorder %s48_s29, %s1617_s0  ;;  %p1622_p8 = scmp.lt.s32.totalorder %s48_s29, %s48_s29 }
  0x50   :  { %p1623_p9 = scmp.lt.s32.totalorder %s1621_s17, %s1617_s0 }
  0x52   :  { %p1624_p10 = por %p1623_p9, %p1622_p8 }
  0x54   :  { %p1625_p11 = pnand %p1624_p10, %p1618_p7 }
  0x56   :  { %1628 = shalt.err (!%p1625_p11)
}
  0x57   :  { %50 = dma.hbm_to_vmem [thread:$0]  %s2055_s2, 16, %s48_s29, [#allocation6]  }
  0x58   :  { %s1629_s23 = scalar_lea.hbm %s2057_s4, 16 }
  0x59   :  { %p1630_p12 = scmp.ne.s32.totalorder %s2057_s4, %s1629_s23  ;;  %p1633_p13 = scmp.lt.u32.totalorder %s1629_s23, %s2057_s4 }
  0x5b   :  { %p1635_p0 = pnand %p1633_p13, %p1630_p12 }
  0x5d   :  { %1638 = shalt.err (!%p1635_p0)
}
  0x5e   :  { %s1639_s18 = scalar_lea.vmem %s70_s8, 16  ;;  %s1643_s25 = scalar_lea.vmem %s70_s8, 32 }
  0x5f   :  { %p1640_p1 = scmp.ne.s32.totalorder %s70_s8, %s1639_s18  ;;  %p1644_p2 = scmp.lt.s32.totalorder %s70_s8, %s70_s8 }
  0x60   :  { %p1645_p3 = scmp.lt.s32.totalorder %s1643_s25, %s1639_s18 }
  0x62   :  { %p1646_p4 = por %p1645_p3, %p1644_p2 }
  0x64   :  { %p1647_p5 = pnand %p1646_p4, %p1640_p1 }
  0x66   :  { %1650 = shalt.err (!%p1647_p5)
}
  0x67   :  { %72 = dma.hbm_to_vmem [thread:$0]  %s2057_s4, 16, %s70_s8, [#allocation9]  }
  0x68   :  { %s1715_s28 = smov [#allocation13]   ;;  %s1651_s10 = scalar_lea.hbm %s2059_s6, 16 }
  0x69   :  { %s91_s29 = sshll.u32 %s1715_s28, 4  ;;  %p1652_p6 = scmp.ne.s32.totalorder %s2059_s6, %s1651_s10  ;;  %s92_s29 = int_to_ptr.vmem [resolvable:$true] %s91_s29 }
  0x6a   :  { %p1655_p7 = scmp.lt.u32.totalorder %s1651_s10, %s2059_s6 }
  0x6c   :  { %p1657_p8 = pnand %p1655_p7, %p1652_p6 }
  0x6e   :  { %1660 = shalt.err (!%p1657_p8)
}
  0x6f   :  { %s1661_s16 = scalar_lea.vmem %s92_s29, 16  ;;  %s1665_s4 = scalar_lea.vmem %s92_s29, 32 }
  0x70   :  { %p1662_p9 = scmp.ne.s32.totalorder %s92_s29, %s1661_s16  ;;  %p1666_p10 = scmp.lt.s32.totalorder %s92_s29, %s92_s29 }
  0x71   :  { %p1667_p11 = scmp.lt.s32.totalorder %s1665_s4, %s1661_s16 }
  0x73   :  { %p1668_p12 = por %p1667_p11, %p1666_p10 }
  0x75   :  { %p1669_p13 = pnand %p1668_p12, %p1662_p9 }
  0x77   :  { %1672 = shalt.err (!%p1669_p13)
}
  0x78   :  { %94 = dma.hbm_to_vmem [thread:$0]  %s2059_s6, 16, %s92_s29, [#allocation12]  }
  0x79   :  { %1695 = dma.done.wait [#allocation3], 4096  }
  0x7a   :  { %1696 = vsyncadd [#allocation3], 4294963200 }
  0x7b   :  { %1697 = dma.done.wait [#allocation6], 144  }
  0x7c   :  { %1698 = vsyncadd [#allocation6], 4294967152 }
  0x7d   :  { %1699 = dma.done.wait [#allocation9], 528  }
  0x7e   :  { %1700 = vsyncadd [#allocation9], 4294966768 }
  0x7f   :  { %1701 = dma.done.wait [#allocation12], 528  }
  0x80   :  { %1702 = vsyncadd [#allocation12], 4294966768  ;;  %vm228_vm0 = vcmask 1045504   ;;  %v1510_v0 = vld [vmem:[#allocation5] sm:$0x3f]   ;;  %v118_v2 = vld [vmem:[#allocation2 + $0x8] sm:$0xff] }
  0x81   :  { %v117_v1 = vld [vmem:[#allocation2] sm:$0xff]  ;;  %vm179_vm1 = vcmask 97280   ;;  %v119_v3 = vld [vmem:[#allocation2 + $0x10] sm:$0xff]  ;;  %1496 = vmatprep.subr.msk.bf16.mxu0 %vm228_vm0, %v1510_v0  ;;  %v230_v4 = vsel %vm228_vm0, %v1510_v0, 0  ;;  %v120_v6 = vld [vmem:[#allocation2 + $0x18] sm:$0xff]  ;;  %1497 = vmatprep.subr.msk.bf16.mxu1 %vm228_vm0, %v1510_v0  ;;  %vm480_vm2 = vcmask 523264  }
  0x82   :  { %v152_v5 = vpack.c.bf16 %v118_v2, %v117_v1  ;;  %v121_v7 = vld [vmem:[#allocation2 + $0x20] sm:$0xff]  ;;  %v122_v8 = vld [vmem:[#allocation2 + $0x28] sm:$0xff]  ;;  %1381 = vmatpush3.bf16.msra.mxu0 %v230_v4  ;;  %v153_v9 = vpack.c.bf16 %v120_v6, %v119_v3  ;;  %1495 = vmatpush3.bf16.msra.mxu1 %v230_v4  ;;  %v123_v11 = vld [vmem:[#allocation2 + $0x30] sm:$0xff]  ;;  %vm1146_vm3 = vcmask 519168   ;;  %s1716_s6 = smov [#allocation14]  }
  0x83   :  { %v154_v10 = vpack.c.bf16 %v122_v8, %v121_v7  ;;  %v124_v12 = vld [vmem:[#allocation2 + $0x38] sm:$0xff]  ;;  %v133_v13 = vld [vmem:[#allocation2 + $0x80] sm:$0xff]  ;;  %v134_v14 = vld [vmem:[#allocation2 + $0x88] sm:$0xff]  ;;  %s1184_s17 = sshll.u32 %s1716_s6, 4  ;;  %s1185_s17 = int_to_ptr.vmem [resolvable:$true] %s1184_s17 }
  0x84   :  { %1382 = vmatprep.mubr.msk.bf16.mxu0 %vm179_vm1, %v152_v5  ;;  %v160_v15 = vpack.c.bf16 %v134_v14, %v133_v13  ;;  %v135_v16 = vld [vmem:[#allocation2 + $0x90] sm:$0xff]  ;;  %v136_v17 = vld [vmem:[#allocation2 + $0x98] sm:$0xff]  ;;  %v137_v18 = vld [vmem:[#allocation2 + $0xa0] sm:$0xff]  ;;  %v155_v24 = vpack.c.bf16 %v124_v12, %v123_v11  ;;  %s1673_s19 = scalar_lea.vmem %s1185_s17, 2048  ;;  %p1678_p1 = scmp.lt.s32.totalorder %s1185_s17, %s1185_s17 }
  0x85   :  { %1383 = vmatmul.mubr.msk.bf16.vlgmr.msra.gmra.mrb[0].mxu0 %vm179_vm1, %v153_v9  ;;  %v125_v19 = vld [vmem:[#allocation2 + $0x40] sm:$0xff]  ;;  %v126_v20 = vld [vmem:[#allocation2 + $0x48] sm:$0xff]  ;;  %v161_v21 = vpack.c.bf16 %v136_v17, %v135_v16  ;;  %v139_v25 = vld [vmem:[#allocation2 + $0xb0] sm:$0xff]  ;;  %p1674_p0 = scmp.ne.s32.totalorder %s1185_s17, %s1673_s19  ;;  %p1679_p2 = scmp.lt.s32.totalorder %s1673_s19, %s1673_s19 }
  0x86   :  { %1386 = vmatprep.mubr.msk.bf16.mxu0 %vm179_vm1, %v154_v10  ;;  %v138_v22 = vld [vmem:[#allocation2 + $0xa8] sm:$0xff]  ;;  %1398 = vmatprep.mubr.msk.bf16.mxu1 %vm179_vm1, %v160_v15  ;;  %v140_v26 = vld [vmem:[#allocation2 + $0xb8] sm:$0xff]  ;;  %v156_v27 = vpack.c.bf16 %v126_v20, %v125_v19  ;;  %v141_v28 = vld [vmem:[#allocation2 + $0xc0] sm:$0xff] }
  0x87   :  { %v162_v23 = vpack.c.bf16 %v138_v22, %v137_v18  ;;  %1399 = vmatmul.mubr.msk.bf16.vlgmr.msra.gmra.mrb[0].mxu1 %vm179_vm1, %v161_v21  ;;  %v142_v29 = vld [vmem:[#allocation2 + $0xc8] sm:$0xff]  ;;  %v127_v31 = vld [vmem:[#allocation2 + $0x50] sm:$0xff]  ;;  %v128_v32 = vld [vmem:[#allocation2 + $0x58] sm:$0xff]  ;;  %v163_v36 = vpack.c.bf16 %v140_v26, %v139_v25  ;;  %p1680_p3 = por %p1679_p2, %p1678_p1 }
  0x88   :  { %v1511_v30 = vld [vmem:[#allocation8] sm:$0xff]   ;;  %v1512_v33 = vld [vmem:[#allocation8 + $0x8] sm:$0xff]   ;;  %v129_v34 = vld [vmem:[#allocation2 + $0x60] sm:$0xff]  ;;  %v164_v38 = vpack.c.bf16 %v142_v29, %v141_v28  ;;  %v157_v39 = vpack.c.bf16 %v128_v32, %v127_v31 }
  0x89   :  { %1402 = vmatprep.mubr.msk.bf16.mxu1 %vm179_vm1, %v162_v23  ;;  %v130_v35 = vld [vmem:[#allocation2 + $0x68] sm:$0xff]  ;;  %1414 = vmatprep.subr.bf16.mxu1 %v1511_v30  ;;  %v1513_v37 = vld [vmem:[#allocation8 + $0x10] sm:$0xff]   ;;  %v143_v41 = vld [vmem:[#allocation2 + $0xd0] sm:$0xff]  ;;  %p1681_p4 = pnand %p1680_p3, %p1674_p0 }
  0x8a   :  { %1415 = vmatpush3.bf16.msra.mxu1 %v1511_v30  ;;  %v158_v40 = vpack.c.bf16 %v130_v35, %v129_v34  ;;  %v144_v42 = vld [vmem:[#allocation2 + $0xd8] sm:$0xff]  ;;  %v145_v43 = vld [vmem:[#allocation2 + $0xe0] sm:$0xff]  ;;  %v146_v44 = vld [vmem:[#allocation2 + $0xe8] sm:$0xff] }
  0x8b   :  { %1416 = vmatprep.subr.bf16.mxu1 %v1512_v33  ;;  %v165_v45 = vpack.c.bf16 %v144_v42, %v143_v41  ;;  %v131_v46 = vld [vmem:[#allocation2 + $0x70] sm:$0xff]  ;;  %v132_v47 = vld [vmem:[#allocation2 + $0x78] sm:$0xff]  ;;  %v166_v48 = vpack.c.bf16 %v146_v44, %v145_v43  ;;  %v1514_v53 = vld [vmem:[#allocation8 + $0x18] sm:$0xff]  }
  0x8c   :  { %v159_v49 = vpack.c.bf16 %v132_v47, %v131_v46  ;;  %v147_v50 = vld [vmem:[#allocation2 + $0xf0] sm:$0xff]  ;;  %v148_v51 = vld [vmem:[#allocation2 + $0xf8] sm:$0xff]  ;;  %v1866_v57 = vld [vmem:[#allocation7] ss:$0 sm:$0xff] }
  0x8d   :  { %1387 = vmatmul.mubr.msk.bf16.gmra.mrb[4].mxu0 %vm179_vm1, %v155_v24  ;;  %v167_v52 = vpack.c.bf16 %v148_v51, %v147_v50  ;;  %v1515_v54 = vld [vmem:[#allocation11] sm:$0xff]   ;;  %v1516_v55 = vld [vmem:[#allocation11 + $0x8] sm:$0xff]   ;;  %v1517_v56 = vld [vmem:[#allocation11 + $0x10] sm:$0xff]  }
  0x8e   :  { %1390 = vmatprep.mubr.msk.bf16.mxu0 %vm179_vm1, %v156_v27  ;;  %1417 = vmatpush3.bf16.msra.mxu1 %v1512_v33 }
  0x8f   :  { %1403 = vmatmul.mubr.msk.bf16.gmra.mrb[4].mxu1 %vm179_vm1, %v163_v36  ;;  %1418 = vmatprep.subr.bf16.mxu1 %v1513_v37 }
  0x90   :  { %1406 = vmatprep.mubr.msk.bf16.mxu1 %vm179_vm1, %v164_v38  ;;  %1454 = vmatprep.subr.bf16.mxu0 %v1515_v54 }
  0x91   :  { %1455 = vmatpush3.bf16.msra.mxu0 %v1515_v54 }
  0x92   :  { %1419 = vmatpush3.bf16.msra.mxu1 %v1513_v37  ;;  %1456 = vmatprep.subr.bf16.mxu0 %v1516_v55 }
  0x93   :  { %1420 = vmatprep.subr.bf16.mxu1 %v1514_v53 }
  0x95   :  { %1391 = vmatmul.mubr.msk.bf16.gmra.mrb[8].mxu0 %vm179_vm1, %v157_v39 }
  0x96   :  { %1394 = vmatprep.mubr.msk.bf16.mxu0 %vm179_vm1, %v158_v40  ;;  %1421 = vmatpush3.bf16.msra.mxu1 %v1514_v53 }
  0x97   :  { %1407 = vmatmul.mubr.msk.bf16.gmra.mrb[8].mxu1 %vm179_vm1, %v165_v45  ;;  %1457 = vmatpush3.bf16.msra.mxu0 %v1516_v55 }
  0x98   :  { %1410 = vmatprep.mubr.msk.bf16.mxu1 %vm179_vm1, %v166_v48  ;;  %1458 = vmatprep.subr.bf16.mxu0 %v1517_v56 }
  0x9b   :  { %1459 = vmatpush3.bf16.msra.mxu0 %v1517_v56 }
  0x9d   :  { %1395 = vmatmul.mubr.msk.bf16.gmra.mrb[12].mxu0 %vm179_vm1, %v159_v49 }
  0x9f   :  { %1411 = vmatmul.mubr.msk.bf16.gmra.mrb[12].mxu1 %vm179_vm1, %v167_v52 }
 0x158   :  { %v1384_v58 = vpop.f32.mrb[0].mxu0 }
 0x159   :  { %v275_v59 = vadd.f32 %v1384_v58, %v1866_v57  ;;  %v266_v60 = vpop.f32.mrb[1].mxu0 }
 0x15a   :  { %v267_v61 = vadd.f32 %v1866_v57, %v266_v60  ;;  %v1385_v62 = vpop.f32.mrb[2].mxu0  ;;  %v1400_v2 = vpop.f32.mrb[0].mxu1 }
 0x15b   :  { %v278_v63 = vadd.f32 %v1385_v62, %v1866_v57  ;;  %v269_v0 = vpop.f32.mrb[3].mxu0  ;;  %v395_v3 = vmax.f32 %v275_v59, 0.0  ;;  %v339_v5 = vadd.f32 %v1400_v2, %v1866_v57  ;;  %v330_v6 = vpop.f32.mrb[1].mxu1 }
 0x15c   :  { %v270_v1 = vadd.f32 %v1866_v57, %v269_v0  ;;  %v393_v7 = vmax.f32 %v267_v61, 0.0  ;;  %v331_v9 = vadd.f32 %v1866_v57, %v330_v6  ;;  %v1401_v10 = vpop.f32.mrb[2].mxu1 }
 0x15d   :  { %v396_v4 = vmax.f32 %v278_v63, 0.0  ;;  %v411_v12 = vmax.f32 %v339_v5, 0.0  ;;  %v342_v13 = vadd.f32 %v1401_v10, %v1866_v57  ;;  %v333_v14 = vpop.f32.mrb[3].mxu1 }
 0x15e   :  { %v394_v8 = vmax.f32 %v270_v1, 0.0  ;;  %v409_v17 = vmax.f32 %v331_v9, 0.0  ;;  %v334_v18 = vadd.f32 %v1866_v57, %v333_v14 }
 0x15f   :  { %v435_v11 = vpack.c.bf16 %v396_v4, %v395_v3  ;;  %v412_v21 = vmax.f32 %v342_v13, 0.0 }
 0x160   :  { %v434_v15 = vpack.c.bf16 %v394_v8, %v393_v7  ;;  %v1388_v16 = vpop.f32.mrb[4].mxu0  ;;  %v410_v24 = vmax.f32 %v334_v18, 0.0 }
 0x161   :  { %v291_v19 = vadd.f32 %v1388_v16, %v1866_v57  ;;  %v282_v20 = vpop.f32.mrb[5].mxu0  ;;  %v1881_v27 = vpack.c.bf16 %v412_v21, %v411_v12 }
 0x162   :  { %v283_v22 = vadd.f32 %v1866_v57, %v282_v20  ;;  %v1389_v23 = vpop.f32.mrb[6].mxu0  ;;  %1422 = vmatprep.mubr.msk.bf16.mxu1 %vm480_vm2, %v434_v15  ;;  %v1884_v29 = vpack.c.bf16 %v410_v24, %v409_v17  ;;  %v1404_v30 = vpop.f32.mrb[4].mxu1 }
 0x163   :  { %v294_v25 = vadd.f32 %v1389_v23, %v1866_v57  ;;  %v285_v26 = vpop.f32.mrb[7].mxu0  ;;  %1423 = vmatmul.mubr.msk.bf16.vlgmr.msra.gmra.mrb[16].mxu1 %vm480_vm2, %v435_v11  ;;  %v399_v31 = vmax.f32 %v291_v19, 0.0  ;;  %v355_v33 = vadd.f32 %v1404_v30, %v1866_v57  ;;  %v346_v34 = vpop.f32.mrb[5].mxu1 }
 0x164   :  { %v286_v28 = vadd.f32 %v1866_v57, %v285_v26  ;;  %v397_v35 = vmax.f32 %v283_v22, 0.0  ;;  %v347_v37 = vadd.f32 %v1866_v57, %v346_v34  ;;  %v1405_v38 = vpop.f32.mrb[6].mxu1 }
 0x165   :  { %v400_v32 = vmax.f32 %v294_v25, 0.0  ;;  %v415_v40 = vmax.f32 %v355_v33, 0.0  ;;  %v358_v41 = vadd.f32 %v1405_v38, %v1866_v57  ;;  %v349_v42 = vpop.f32.mrb[7].mxu1 }
 0x166   :  { %v398_v36 = vmax.f32 %v286_v28, 0.0  ;;  %v413_v45 = vmax.f32 %v347_v37, 0.0  ;;  %v350_v46 = vadd.f32 %v1866_v57, %v349_v42 }
 0x167   :  { %v437_v39 = vpack.c.bf16 %v400_v32, %v399_v31  ;;  %v416_v49 = vmax.f32 %v358_v41, 0.0 }
 0x168   :  { %v436_v43 = vpack.c.bf16 %v398_v36, %v397_v35  ;;  %v1392_v44 = vpop.f32.mrb[8].mxu0  ;;  %v414_v52 = vmax.f32 %v350_v46, 0.0 }
 0x169   :  { %v307_v47 = vadd.f32 %v1392_v44, %v1866_v57  ;;  %v298_v48 = vpop.f32.mrb[9].mxu0  ;;  %v445_v55 = vpack.c.bf16 %v416_v49, %v415_v40 }
 0x16a   :  { %v299_v50 = vadd.f32 %v1866_v57, %v298_v48  ;;  %v1393_v51 = vpop.f32.mrb[10].mxu0  ;;  %1426 = vmatprep.mubr.msk.bf16.mxu1 %vm480_vm2, %v436_v43  ;;  %v444_v58 = vpack.c.bf16 %v414_v52, %v413_v45  ;;  %v1408_v59 = vpop.f32.mrb[8].mxu1 }
 0x16b   :  { %v310_v53 = vadd.f32 %v1393_v51, %v1866_v57  ;;  %v301_v54 = vpop.f32.mrb[11].mxu0  ;;  %1427 = vmatmul.mubr.msk.bf16.gmra.mrb[20].mxu1 %vm480_vm2, %v437_v39  ;;  %v403_v60 = vmax.f32 %v307_v47, 0.0  ;;  %v371_v62 = vadd.f32 %v1408_v59, %v1866_v57  ;;  %v362_v63 = vpop.f32.mrb[9].mxu1 }
 0x16c   :  { %v302_v56 = vadd.f32 %v1866_v57, %v301_v54  ;;  %v401_v0 = vmax.f32 %v299_v50, 0.0  ;;  %v363_v2 = vadd.f32 %v1866_v57, %v362_v63  ;;  %v1409_v3 = vpop.f32.mrb[10].mxu1 }
 0x16d   :  { %v404_v61 = vmax.f32 %v310_v53, 0.0  ;;  %v419_v5 = vmax.f32 %v371_v62, 0.0  ;;  %v374_v6 = vadd.f32 %v1409_v3, %v1866_v57  ;;  %v365_v7 = vpop.f32.mrb[11].mxu1 }
 0x16e   :  { %v402_v1 = vmax.f32 %v302_v56, 0.0  ;;  %v417_v10 = vmax.f32 %v363_v2, 0.0  ;;  %v366_v11 = vadd.f32 %v1866_v57, %v365_v7 }
 0x16f   :  { %v439_v4 = vpack.c.bf16 %v404_v61, %v403_v60  ;;  %v420_v14 = vmax.f32 %v374_v6, 0.0 }
 0x170   :  { %v438_v8 = vpack.c.bf16 %v402_v1, %v401_v0  ;;  %v1396_v9 = vpop.f32.mrb[12].mxu0  ;;  %v418_v17 = vmax.f32 %v366_v11, 0.0 }
 0x171   :  { %v323_v12 = vadd.f32 %v1396_v9, %v1866_v57  ;;  %v314_v13 = vpop.f32.mrb[13].mxu0  ;;  %v447_v20 = vpack.c.bf16 %v420_v14, %v419_v5 }
 0x172   :  { %v315_v15 = vadd.f32 %v1866_v57, %v314_v13  ;;  %v1397_v16 = vpop.f32.mrb[14].mxu0  ;;  %1430 = vmatprep.mubr.msk.bf16.mxu1 %vm480_vm2, %v438_v8  ;;  %v446_v22 = vpack.c.bf16 %v418_v17, %v417_v10  ;;  %v1412_v23 = vpop.f32.mrb[12].mxu1 }
 0x173   :  { %v326_v18 = vadd.f32 %v1397_v16, %v1866_v57  ;;  %v317_v19 = vpop.f32.mrb[15].mxu0  ;;  %1431 = vmatmul.mubr.msk.bf16.gmra.mrb[24].mxu1 %vm480_vm2, %v439_v4  ;;  %v407_v24 = vmax.f32 %v323_v12, 0.0  ;;  %v387_v26 = vadd.f32 %v1412_v23, %v1866_v57  ;;  %v378_v28 = vpop.f32.mrb[13].mxu1 }
 0x174   :  { %v318_v21 = vadd.f32 %v1866_v57, %v317_v19  ;;  %v405_v30 = vmax.f32 %v315_v15, 0.0  ;;  %v379_v32 = vadd.f32 %v1866_v57, %v378_v28  ;;  %v1413_v33 = vpop.f32.mrb[14].mxu1 }
 0x175   :  { %v408_v25 = vmax.f32 %v326_v18, 0.0  ;;  %v423_v35 = vmax.f32 %v387_v26, 0.0  ;;  %v390_v36 = vadd.f32 %v1413_v33, %v1866_v57  ;;  %v381_v37 = vpop.f32.mrb[15].mxu1 }
 0x176   :  { %v406_v31 = vmax.f32 %v318_v21, 0.0  ;;  %v421_v39 = vmax.f32 %v379_v32, 0.0  ;;  %v382_v40 = vadd.f32 %v1866_v57, %v381_v37  ;;  %v1518_v57 = vld [vmem:[#allocation11 + $0x18] sm:$0xff]  }
 0x177   :  { %v441_v34 = vpack.c.bf16 %v408_v25, %v407_v24  ;;  %v424_v41 = vmax.f32 %v390_v36, 0.0  ;;  %1460 = vmatprep.subr.bf16.mxu0 %v1518_v57 }
 0x178   :  { %v440_v38 = vpack.c.bf16 %v406_v31, %v405_v30  ;;  %v422_v42 = vmax.f32 %v382_v40, 0.0  ;;  %1461 = vmatpush3.bf16.msra.mxu0 %v1518_v57 }
 0x179   :  { %v449_v43 = vpack.c.bf16 %v424_v41, %v423_v35 }
 0x17a   :  { %1434 = vmatprep.mubr.msk.bf16.mxu1 %vm480_vm2, %v440_v38  ;;  %v448_v44 = vpack.c.bf16 %v422_v42, %v421_v39 }
 0x17b   :  { %1435 = vmatmul.mubr.msk.bf16.gmra.mrb[28].mxu1 %vm480_vm2, %v441_v34 }
 0x17c   :  { %1438 = vmatprep.mubr.msk.bf16.mxu1 %vm480_vm2, %v1884_v29  ;;  %v1922_v29 = vld [vmem:[#allocation10] ss:$0 sm:$0xff] }
 0x183   :  { %1439 = vmatmul.mubr.msk.bf16.gmra.mrb[32].mxu1 %vm480_vm2, %v1881_v27 }
 0x184   :  { %1442 = vmatprep.mubr.msk.bf16.mxu1 %vm480_vm2, %v444_v58 }
 0x18b   :  { %1443 = vmatmul.mubr.msk.bf16.gmra.mrb[36].mxu1 %vm480_vm2, %v445_v55 }
 0x18c   :  { %1446 = vmatprep.mubr.msk.bf16.mxu1 %vm480_vm2, %v446_v22 }
 0x193   :  { %1447 = vmatmul.mubr.msk.bf16.gmra.mrb[40].mxu1 %vm480_vm2, %v447_v20 }
 0x194   :  { %1450 = vmatprep.mubr.msk.bf16.mxu1 %vm480_vm2, %v448_v44 }
 0x19b   :  { %1451 = vmatmul.mubr.msk.bf16.gmra.mrb[44].mxu1 %vm480_vm2, %v449_v43 }
 0x236   :  { %v1424_v45 = vpop.f32.mrb[16].mxu1 }
 0x237   :  { %v572_v27 = vadd.f32 %v1424_v45, %v1922_v29  ;;  %v563_v46 = vpop.f32.mrb[17].mxu1 }
 0x238   :  { %v564_v47 = vadd.f32 %v1922_v29, %v563_v46  ;;  %v1425_v48 = vpop.f32.mrb[18].mxu1 }
 0x239   :  { %v575_v49 = vadd.f32 %v1425_v48, %v1922_v29  ;;  %v566_v50 = vpop.f32.mrb[19].mxu1  ;;  %v692_v52 = vmax.f32 %v572_v27, 0.0 }
 0x23a   :  { %v567_v51 = vadd.f32 %v1922_v29, %v566_v50  ;;  %v690_v54 = vmax.f32 %v564_v47, 0.0 }
 0x23b   :  { %v693_v53 = vmax.f32 %v575_v49, 0.0 }
 0x23c   :  { %v691_v55 = vmax.f32 %v567_v51, 0.0 }
 0x23d   :  { %v732_v56 = vpack.c.bf16 %v693_v53, %v692_v52 }
 0x23e   :  { %v731_v58 = vpack.c.bf16 %v691_v55, %v690_v54  ;;  %v1428_v59 = vpop.f32.mrb[20].mxu1 }
 0x23f   :  { %v588_v60 = vadd.f32 %v1428_v59, %v1922_v29  ;;  %v579_v61 = vpop.f32.mrb[21].mxu1 }
 0x240   :  { %v580_v62 = vadd.f32 %v1922_v29, %v579_v61  ;;  %v1429_v63 = vpop.f32.mrb[22].mxu1  ;;  %1462 = vmatprep.mubr.msk.bf16.mxu0 %vm480_vm2, %v731_v58 }
 0x241   :  { %v591_v0 = vadd.f32 %v1429_v63, %v1922_v29  ;;  %v582_v1 = vpop.f32.mrb[23].mxu1  ;;  %1463 = vmatmul.mubr.msk.bf16.vlgmr.msra.gmra.mrb[16].mxu0 %vm480_vm2, %v732_v56  ;;  %v696_v3 = vmax.f32 %v588_v60, 0.0 }
 0x242   :  { %v583_v2 = vadd.f32 %v1922_v29, %v582_v1  ;;  %v694_v5 = vmax.f32 %v580_v62, 0.0 }
 0x243   :  { %v697_v4 = vmax.f32 %v591_v0, 0.0 }
 0x244   :  { %v695_v6 = vmax.f32 %v583_v2, 0.0 }
 0x245   :  { %v734_v7 = vpack.c.bf16 %v697_v4, %v696_v3 }
 0x246   :  { %v733_v8 = vpack.c.bf16 %v695_v6, %v694_v5  ;;  %v1432_v9 = vpop.f32.mrb[24].mxu1 }
 0x247   :  { %v604_v10 = vadd.f32 %v1432_v9, %v1922_v29  ;;  %v595_v11 = vpop.f32.mrb[25].mxu1 }
 0x248   :  { %v596_v12 = vadd.f32 %v1922_v29, %v595_v11  ;;  %v1433_v13 = vpop.f32.mrb[26].mxu1  ;;  %1466 = vmatprep.mubr.msk.bf16.mxu0 %vm480_vm2, %v733_v8 }
 0x249   :  { %v607_v14 = vadd.f32 %v1433_v13, %v1922_v29  ;;  %v598_v15 = vpop.f32.mrb[27].mxu1  ;;  %1467 = vmatmul.mubr.msk.bf16.gmra.mrb[20].mxu0 %vm480_vm2, %v734_v7  ;;  %v700_v17 = vmax.f32 %v604_v10, 0.0 }
 0x24a   :  { %v599_v16 = vadd.f32 %v1922_v29, %v598_v15  ;;  %v698_v19 = vmax.f32 %v596_v12, 0.0 }
 0x24b   :  { %v701_v18 = vmax.f32 %v607_v14, 0.0 }
 0x24c   :  { %v699_v20 = vmax.f32 %v599_v16, 0.0 }
 0x24d   :  { %v736_v21 = vpack.c.bf16 %v701_v18, %v700_v17 }
 0x24e   :  { %v735_v22 = vpack.c.bf16 %v699_v20, %v698_v19  ;;  %v1436_v23 = vpop.f32.mrb[28].mxu1 }
 0x24f   :  { %v620_v24 = vadd.f32 %v1436_v23, %v1922_v29  ;;  %v611_v25 = vpop.f32.mrb[29].mxu1 }
 0x250   :  { %v612_v26 = vadd.f32 %v1922_v29, %v611_v25  ;;  %v1437_v28 = vpop.f32.mrb[30].mxu1  ;;  %1470 = vmatprep.mubr.msk.bf16.mxu0 %vm480_vm2, %v735_v22 }
 0x251   :  { %v623_v30 = vadd.f32 %v1437_v28, %v1922_v29  ;;  %v614_v31 = vpop.f32.mrb[31].mxu1  ;;  %1471 = vmatmul.mubr.msk.bf16.gmra.mrb[24].mxu0 %vm480_vm2, %v736_v21  ;;  %v704_v33 = vmax.f32 %v620_v24, 0.0 }
 0x252   :  { %v615_v32 = vadd.f32 %v1922_v29, %v614_v31  ;;  %v702_v35 = vmax.f32 %v612_v26, 0.0 }
 0x253   :  { %v705_v34 = vmax.f32 %v623_v30, 0.0 }
 0x254   :  { %v703_v36 = vmax.f32 %v615_v32, 0.0  ;;  %v1972_v32 = vld [vmem:[#allocation13] ss:$0 sm:$0xff] }
 0x255   :  { %v738_v37 = vpack.c.bf16 %v705_v34, %v704_v33 }
 0x256   :  { %v737_v38 = vpack.c.bf16 %v703_v36, %v702_v35  ;;  %v1440_v39 = vpop.f32.mrb[32].mxu1 }
 0x257   :  { %v636_v40 = vadd.f32 %v1440_v39, %v1922_v29  ;;  %v627_v41 = vpop.f32.mrb[33].mxu1 }
 0x258   :  { %v628_v42 = vadd.f32 %v1922_v29, %v627_v41  ;;  %v1441_v43 = vpop.f32.mrb[34].mxu1  ;;  %1474 = vmatprep.mubr.msk.bf16.mxu0 %vm480_vm2, %v737_v38 }
 0x259   :  { %v639_v44 = vadd.f32 %v1441_v43, %v1922_v29  ;;  %v630_v57 = vpop.f32.mrb[35].mxu1  ;;  %1475 = vmatmul.mubr.msk.bf16.gmra.mrb[28].mxu0 %vm480_vm2, %v738_v37  ;;  %v708_v27 = vmax.f32 %v636_v40, 0.0 }
 0x25a   :  { %v631_v45 = vadd.f32 %v1922_v29, %v630_v57  ;;  %v706_v47 = vmax.f32 %v628_v42, 0.0 }
 0x25b   :  { %v709_v46 = vmax.f32 %v639_v44, 0.0 }
 0x25c   :  { %v707_v48 = vmax.f32 %v631_v45, 0.0 }
 0x25d   :  { %v740_v49 = vpack.c.bf16 %v709_v46, %v708_v27 }
 0x25e   :  { %v739_v50 = vpack.c.bf16 %v707_v48, %v706_v47  ;;  %v1444_v51 = vpop.f32.mrb[36].mxu1 }
 0x25f   :  { %v652_v52 = vadd.f32 %v1444_v51, %v1922_v29  ;;  %v643_v53 = vpop.f32.mrb[37].mxu1 }
 0x260   :  { %v644_v54 = vadd.f32 %v1922_v29, %v643_v53  ;;  %v1445_v55 = vpop.f32.mrb[38].mxu1  ;;  %1478 = vmatprep.mubr.msk.bf16.mxu0 %vm480_vm2, %v739_v50 }
 0x261   :  { %v655_v56 = vadd.f32 %v1445_v55, %v1922_v29  ;;  %v646_v58 = vpop.f32.mrb[39].mxu1  ;;  %1479 = vmatmul.mubr.msk.bf16.gmra.mrb[32].mxu0 %vm480_vm2, %v740_v49  ;;  %v712_v60 = vmax.f32 %v652_v52, 0.0 }
 0x262   :  { %v647_v59 = vadd.f32 %v1922_v29, %v646_v58  ;;  %v710_v62 = vmax.f32 %v644_v54, 0.0 }
 0x263   :  { %v713_v61 = vmax.f32 %v655_v56, 0.0 }
 0x264   :  { %v711_v63 = vmax.f32 %v647_v59, 0.0 }
 0x265   :  { %v742_v0 = vpack.c.bf16 %v713_v61, %v712_v60 }
 0x266   :  { %v741_v1 = vpack.c.bf16 %v711_v63, %v710_v62  ;;  %v1448_v2 = vpop.f32.mrb[40].mxu1 }
 0x267   :  { %v668_v3 = vadd.f32 %v1448_v2, %v1922_v29  ;;  %v659_v4 = vpop.f32.mrb[41].mxu1 }
 0x268   :  { %v660_v5 = vadd.f32 %v1922_v29, %v659_v4  ;;  %v1449_v6 = vpop.f32.mrb[42].mxu1  ;;  %1482 = vmatprep.mubr.msk.bf16.mxu0 %vm480_vm2, %v741_v1 }
 0x269   :  { %v671_v7 = vadd.f32 %v1449_v6, %v1922_v29  ;;  %v662_v8 = vpop.f32.mrb[43].mxu1  ;;  %1483 = vmatmul.mubr.msk.bf16.gmra.mrb[36].mxu0 %vm480_vm2, %v742_v0  ;;  %v716_v10 = vmax.f32 %v668_v3, 0.0 }
 0x26a   :  { %v663_v9 = vadd.f32 %v1922_v29, %v662_v8  ;;  %v714_v12 = vmax.f32 %v660_v5, 0.0 }
 0x26b   :  { %v717_v11 = vmax.f32 %v671_v7, 0.0 }
 0x26c   :  { %v715_v13 = vmax.f32 %v663_v9, 0.0 }
 0x26d   :  { %v744_v14 = vpack.c.bf16 %v717_v11, %v716_v10 }
 0x26e   :  { %v743_v15 = vpack.c.bf16 %v715_v13, %v714_v12  ;;  %v1452_v16 = vpop.f32.mrb[44].mxu1 }
 0x26f   :  { %v684_v17 = vadd.f32 %v1452_v16, %v1922_v29  ;;  %v675_v18 = vpop.f32.mrb[45].mxu1 }
 0x270   :  { %v676_v19 = vadd.f32 %v1922_v29, %v675_v18  ;;  %v1453_v20 = vpop.f32.mrb[46].mxu1  ;;  %1486 = vmatprep.mubr.msk.bf16.mxu0 %vm480_vm2, %v743_v15 }
 0x271   :  { %v687_v21 = vadd.f32 %v1453_v20, %v1922_v29  ;;  %v678_v22 = vpop.f32.mrb[47].mxu1  ;;  %1487 = vmatmul.mubr.msk.bf16.gmra.mrb[40].mxu0 %vm480_vm2, %v744_v14  ;;  %v720_v24 = vmax.f32 %v684_v17, 0.0 }
 0x272   :  { %v679_v23 = vadd.f32 %v1922_v29, %v678_v22  ;;  %v718_v26 = vmax.f32 %v676_v19, 0.0 }
 0x273   :  { %v721_v25 = vmax.f32 %v687_v21, 0.0 }
 0x274   :  { %v719_v28 = vmax.f32 %v679_v23, 0.0 }
 0x275   :  { %v746_v30 = vpack.c.bf16 %v721_v25, %v720_v24 }
 0x276   :  { %v745_v31 = vpack.c.bf16 %v719_v28, %v718_v26 }
 0x278   :  { %1490 = vmatprep.mubr.msk.bf16.mxu0 %vm480_vm2, %v745_v31 }
 0x279   :  { %1491 = vmatmul.mubr.msk.bf16.gmra.mrb[44].mxu0 %vm480_vm2, %v746_v30 }
 0x314   :  { %v1464_v33 = vpop.f32.mrb[16].mxu0 }
 0x315   :  { %v868_v34 = vadd.f32 %v1464_v33, %v1972_v32  ;;  %v859_v35 = vpop.f32.mrb[17].mxu0 }
 0x316   :  { %v860_v36 = vadd.f32 %v1972_v32, %v859_v35  ;;  %v1465_v37 = vpop.f32.mrb[18].mxu0 }
 0x317   :  { %v988_v29 = vmax.f32 %v868_v34, 0.0  ;;  %v871_v38 = vadd.f32 %v1465_v37, %v1972_v32  ;;  %v862_v39 = vpop.f32.mrb[19].mxu0 }
 0x318   :  { %v986_v40 = vmax.f32 %v860_v36, 0.0  ;;  %v863_v41 = vadd.f32 %v1972_v32, %v862_v39 }
 0x319   :  { %v1293_v42 = vpack.c.bf16 %v988_v29, %v988_v29  ;;  %v989_v43 = vmax.f32 %v871_v38, 0.0 }
 0x31a   :  { %v1291_v44 = vpack.c.bf16 %v986_v40, %v986_v40  ;;  %v987_v57 = vmax.f32 %v863_v41, 0.0 }
 0x31b   :  { %1149 = vst.msk [vmem:[#allocation14 + $0x8] sm:$0xf] %vm1146_vm3, %v1293_v42  ;;  %v1294_v45 = vpack.c.bf16 %v989_v43, %v989_v43 }
 0x31c   :  { %1147 = vst.msk [vmem:[#allocation14] sm:$0xf] %vm1146_vm3, %v1291_v44  ;;  %v1292_v27 = vpack.c.bf16 %v987_v57, %v987_v57  ;;  %v1468_v46 = vpop.f32.mrb[20].mxu0 }
 0x31d   :  { %1150 = vst.msk [vmem:[#allocation14 + $0xc] sm:$0xf] %vm1146_vm3, %v1294_v45  ;;  %v884_v47 = vadd.f32 %v1468_v46, %v1972_v32  ;;  %v875_v48 = vpop.f32.mrb[21].mxu0 }
 0x31e   :  { %1148 = vst.msk [vmem:[#allocation14 + $0x4] sm:$0xf] %vm1146_vm3, %v1292_v27  ;;  %v876_v49 = vadd.f32 %v1972_v32, %v875_v48  ;;  %v1469_v50 = vpop.f32.mrb[22].mxu0 }
 0x31f   :  { %v992_v51 = vmax.f32 %v884_v47, 0.0  ;;  %v887_v52 = vadd.f32 %v1469_v50, %v1972_v32  ;;  %v878_v53 = vpop.f32.mrb[23].mxu0 }
 0x320   :  { %v990_v54 = vmax.f32 %v876_v49, 0.0  ;;  %v879_v55 = vadd.f32 %v1972_v32, %v878_v53 }
 0x321   :  { %v1297_v56 = vpack.c.bf16 %v992_v51, %v992_v51  ;;  %v993_v58 = vmax.f32 %v887_v52, 0.0 }
 0x322   :  { %v1295_v59 = vpack.c.bf16 %v990_v54, %v990_v54  ;;  %v991_v60 = vmax.f32 %v879_v55, 0.0 }
 0x323   :  { %1153 = vst.msk [vmem:[#allocation14 + $0x18] sm:$0xf] %vm1146_vm3, %v1297_v56  ;;  %v1298_v61 = vpack.c.bf16 %v993_v58, %v993_v58 }
 0x324   :  { %1151 = vst.msk [vmem:[#allocation14 + $0x10] sm:$0xf] %vm1146_vm3, %v1295_v59  ;;  %v1296_v62 = vpack.c.bf16 %v991_v60, %v991_v60  ;;  %v1472_v63 = vpop.f32.mrb[24].mxu0 }
 0x325   :  { %1154 = vst.msk [vmem:[#allocation14 + $0x1c] sm:$0xf] %vm1146_vm3, %v1298_v61  ;;  %v900_v0 = vadd.f32 %v1472_v63, %v1972_v32  ;;  %v891_v1 = vpop.f32.mrb[25].mxu0 }
 0x326   :  { %1152 = vst.msk [vmem:[#allocation14 + $0x14] sm:$0xf] %vm1146_vm3, %v1296_v62  ;;  %v892_v2 = vadd.f32 %v1972_v32, %v891_v1  ;;  %v1473_v3 = vpop.f32.mrb[26].mxu0 }
 0x327   :  { %v996_v4 = vmax.f32 %v900_v0, 0.0  ;;  %v903_v5 = vadd.f32 %v1473_v3, %v1972_v32  ;;  %v894_v6 = vpop.f32.mrb[27].mxu0 }
 0x328   :  { %v994_v7 = vmax.f32 %v892_v2, 0.0  ;;  %v895_v8 = vadd.f32 %v1972_v32, %v894_v6 }
 0x329   :  { %v1301_v9 = vpack.c.bf16 %v996_v4, %v996_v4  ;;  %v997_v10 = vmax.f32 %v903_v5, 0.0 }
 0x32a   :  { %v1299_v11 = vpack.c.bf16 %v994_v7, %v994_v7  ;;  %v995_v12 = vmax.f32 %v895_v8, 0.0 }
 0x32b   :  { %1157 = vst.msk [vmem:[#allocation14 + $0x28] sm:$0xf] %vm1146_vm3, %v1301_v9  ;;  %v1302_v13 = vpack.c.bf16 %v997_v10, %v997_v10 }
 0x32c   :  { %1155 = vst.msk [vmem:[#allocation14 + $0x20] sm:$0xf] %vm1146_vm3, %v1299_v11  ;;  %v1300_v14 = vpack.c.bf16 %v995_v12, %v995_v12  ;;  %v1476_v15 = vpop.f32.mrb[28].mxu0 }
 0x32d   :  { %1158 = vst.msk [vmem:[#allocation14 + $0x2c] sm:$0xf] %vm1146_vm3, %v1302_v13  ;;  %v916_v16 = vadd.f32 %v1476_v15, %v1972_v32  ;;  %v907_v17 = vpop.f32.mrb[29].mxu0 }
 0x32e   :  { %1156 = vst.msk [vmem:[#allocation14 + $0x24] sm:$0xf] %vm1146_vm3, %v1300_v14  ;;  %v908_v18 = vadd.f32 %v1972_v32, %v907_v17  ;;  %v1477_v19 = vpop.f32.mrb[30].mxu0 }
 0x32f   :  { %v1000_v20 = vmax.f32 %v916_v16, 0.0  ;;  %v919_v21 = vadd.f32 %v1477_v19, %v1972_v32  ;;  %v910_v22 = vpop.f32.mrb[31].mxu0 }
 0x330   :  { %v998_v23 = vmax.f32 %v908_v18, 0.0  ;;  %v911_v24 = vadd.f32 %v1972_v32, %v910_v22 }
 0x331   :  { %v1305_v25 = vpack.c.bf16 %v1000_v20, %v1000_v20  ;;  %v1001_v26 = vmax.f32 %v919_v21, 0.0 }
 0x332   :  { %v1303_v28 = vpack.c.bf16 %v998_v23, %v998_v23  ;;  %v999_v30 = vmax.f32 %v911_v24, 0.0 }
 0x333   :  { %1161 = vst.msk [vmem:[#allocation14 + $0x38] sm:$0xf] %vm1146_vm3, %v1305_v25  ;;  %v1306_v31 = vpack.c.bf16 %v1001_v26, %v1001_v26 }
 0x334   :  { %1159 = vst.msk [vmem:[#allocation14 + $0x30] sm:$0xf] %vm1146_vm3, %v1303_v28  ;;  %v1304_v33 = vpack.c.bf16 %v999_v30, %v999_v30  ;;  %v1480_v34 = vpop.f32.mrb[32].mxu0 }
 0x335   :  { %1162 = vst.msk [vmem:[#allocation14 + $0x3c] sm:$0xf] %vm1146_vm3, %v1306_v31  ;;  %v932_v35 = vadd.f32 %v1480_v34, %v1972_v32  ;;  %v923_v36 = vpop.f32.mrb[33].mxu0 }
 0x336   :  { %1160 = vst.msk [vmem:[#allocation14 + $0x34] sm:$0xf] %vm1146_vm3, %v1304_v33  ;;  %v924_v37 = vadd.f32 %v1972_v32, %v923_v36  ;;  %v1481_v29 = vpop.f32.mrb[34].mxu0 }
 0x337   :  { %v1004_v38 = vmax.f32 %v932_v35, 0.0  ;;  %v935_v39 = vadd.f32 %v1481_v29, %v1972_v32  ;;  %v926_v40 = vpop.f32.mrb[35].mxu0 }
 0x338   :  { %v1002_v41 = vmax.f32 %v924_v37, 0.0  ;;  %v927_v42 = vadd.f32 %v1972_v32, %v926_v40 }
 0x339   :  { %v1309_v43 = vpack.c.bf16 %v1004_v38, %v1004_v38  ;;  %v1005_v44 = vmax.f32 %v935_v39, 0.0 }
 0x33a   :  { %v1307_v57 = vpack.c.bf16 %v1002_v41, %v1002_v41  ;;  %v1003_v45 = vmax.f32 %v927_v42, 0.0 }
 0x33b   :  { %1165 = vst.msk [vmem:[#allocation14 + $0x48] sm:$0xf] %vm1146_vm3, %v1309_v43  ;;  %v1310_v27 = vpack.c.bf16 %v1005_v44, %v1005_v44 }
 0x33c   :  { %1163 = vst.msk [vmem:[#allocation14 + $0x40] sm:$0xf] %vm1146_vm3, %v1307_v57  ;;  %v1308_v46 = vpack.c.bf16 %v1003_v45, %v1003_v45  ;;  %v1484_v47 = vpop.f32.mrb[36].mxu0 }
 0x33d   :  { %1166 = vst.msk [vmem:[#allocation14 + $0x4c] sm:$0xf] %vm1146_vm3, %v1310_v27  ;;  %v948_v48 = vadd.f32 %v1484_v47, %v1972_v32  ;;  %v939_v49 = vpop.f32.mrb[37].mxu0 }
 0x33e   :  { %1164 = vst.msk [vmem:[#allocation14 + $0x44] sm:$0xf] %vm1146_vm3, %v1308_v46  ;;  %v940_v50 = vadd.f32 %v1972_v32, %v939_v49  ;;  %v1485_v51 = vpop.f32.mrb[38].mxu0 }
 0x33f   :  { %v1008_v52 = vmax.f32 %v948_v48, 0.0  ;;  %v951_v53 = vadd.f32 %v1485_v51, %v1972_v32  ;;  %v942_v54 = vpop.f32.mrb[39].mxu0 }
 0x340   :  { %v1006_v55 = vmax.f32 %v940_v50, 0.0  ;;  %v943_v56 = vadd.f32 %v1972_v32, %v942_v54 }
 0x341   :  { %v1313_v58 = vpack.c.bf16 %v1008_v52, %v1008_v52  ;;  %v1009_v59 = vmax.f32 %v951_v53, 0.0 }
 0x342   :  { %v1311_v60 = vpack.c.bf16 %v1006_v55, %v1006_v55  ;;  %v1007_v61 = vmax.f32 %v943_v56, 0.0 }
 0x343   :  { %1169 = vst.msk [vmem:[#allocation14 + $0x58] sm:$0xf] %vm1146_vm3, %v1313_v58  ;;  %v1314_v62 = vpack.c.bf16 %v1009_v59, %v1009_v59 }
 0x344   :  { %1167 = vst.msk [vmem:[#allocation14 + $0x50] sm:$0xf] %vm1146_vm3, %v1311_v60  ;;  %v1312_v63 = vpack.c.bf16 %v1007_v61, %v1007_v61  ;;  %v1488_v0 = vpop.f32.mrb[40].mxu0 }
 0x345   :  { %1170 = vst.msk [vmem:[#allocation14 + $0x5c] sm:$0xf] %vm1146_vm3, %v1314_v62  ;;  %v964_v1 = vadd.f32 %v1488_v0, %v1972_v32  ;;  %v955_v2 = vpop.f32.mrb[41].mxu0 }
 0x346   :  { %1168 = vst.msk [vmem:[#allocation14 + $0x54] sm:$0xf] %vm1146_vm3, %v1312_v63  ;;  %v956_v3 = vadd.f32 %v1972_v32, %v955_v2  ;;  %v1489_v4 = vpop.f32.mrb[42].mxu0 }
 0x347   :  { %v1012_v5 = vmax.f32 %v964_v1, 0.0  ;;  %v967_v6 = vadd.f32 %v1489_v4, %v1972_v32  ;;  %v958_v7 = vpop.f32.mrb[43].mxu0 }
 0x348   :  { %v1010_v8 = vmax.f32 %v956_v3, 0.0  ;;  %v959_v9 = vadd.f32 %v1972_v32, %v958_v7 }
 0x349   :  { %v1317_v10 = vpack.c.bf16 %v1012_v5, %v1012_v5  ;;  %v1013_v11 = vmax.f32 %v967_v6, 0.0 }
 0x34a   :  { %v1315_v12 = vpack.c.bf16 %v1010_v8, %v1010_v8  ;;  %v1011_v13 = vmax.f32 %v959_v9, 0.0 }
 0x34b   :  { %1173 = vst.msk [vmem:[#allocation14 + $0x68] sm:$0xf] %vm1146_vm3, %v1317_v10  ;;  %v1318_v14 = vpack.c.bf16 %v1013_v11, %v1013_v11 }
 0x34c   :  { %1171 = vst.msk [vmem:[#allocation14 + $0x60] sm:$0xf] %vm1146_vm3, %v1315_v12  ;;  %v1316_v15 = vpack.c.bf16 %v1011_v13, %v1011_v13  ;;  %v1492_v16 = vpop.f32.mrb[44].mxu0 }
 0x34d   :  { %1174 = vst.msk [vmem:[#allocation14 + $0x6c] sm:$0xf] %vm1146_vm3, %v1318_v14  ;;  %v980_v17 = vadd.f32 %v1492_v16, %v1972_v32  ;;  %v971_v18 = vpop.f32.mrb[45].mxu0 }
 0x34e   :  { %1172 = vst.msk [vmem:[#allocation14 + $0x64] sm:$0xf] %vm1146_vm3, %v1316_v15  ;;  %v972_v19 = vadd.f32 %v1972_v32, %v971_v18  ;;  %v1493_v20 = vpop.f32.mrb[46].mxu0 }
 0x34f   :  { %v1016_v21 = vmax.f32 %v980_v17, 0.0  ;;  %v983_v22 = vadd.f32 %v1493_v20, %v1972_v32  ;;  %v974_v23 = vpop.f32.mrb[47].mxu0 }
 0x350   :  { %v1014_v24 = vmax.f32 %v972_v19, 0.0  ;;  %v975_v25 = vadd.f32 %v1972_v32, %v974_v23 }
 0x351   :  { %v1321_v26 = vpack.c.bf16 %v1016_v21, %v1016_v21  ;;  %v1017_v28 = vmax.f32 %v983_v22, 0.0 }
 0x352   :  { %v1319_v30 = vpack.c.bf16 %v1014_v24, %v1014_v24  ;;  %v1015_v31 = vmax.f32 %v975_v25, 0.0 }
 0x353   :  { %1177 = vst.msk [vmem:[#allocation14 + $0x78] sm:$0xf] %vm1146_vm3, %v1321_v26  ;;  %v1322_v33 = vpack.c.bf16 %v1017_v28, %v1017_v28 }
 0x354   :  { %1175 = vst.msk [vmem:[#allocation14 + $0x70] sm:$0xf] %vm1146_vm3, %v1319_v30  ;;  %v1320_v34 = vpack.c.bf16 %v1015_v31, %v1015_v31 }
 0x355   :  { %1178 = vst.msk [vmem:[#allocation14 + $0x7c] sm:$0xf] %vm1146_vm3, %v1322_v33 }
 0x356   :  { %1176 = vst.msk [vmem:[#allocation14 + $0x74] sm:$0xf] %vm1146_vm3, %v1320_v34 }
 0x357   :  { %1684 = shalt.err (!%p1681_p4)
}
 0x358   :  { %s1685_s22 = scalar_lea.hbm %s2060_s7, 2048 }
 0x359   :  { %p1686_p5 = scmp.ne.s32.totalorder %s2060_s7, %s1685_s22  ;;  %p1689_p6 = scmp.lt.u32.totalorder %s1685_s22, %s2060_s7 }
 0x35b   :  { %p1691_p7 = pnand %p1689_p6, %p1686_p5 }
 0x35d   :  { %1694 = shalt.err (!%p1691_p7)
}
 0x35e   :  { %1190 = dma.vmem_to_hbm [thread:$0]  %s1185_s17, 2048, %s2060_s7, [#allocation4], %s1706_s11, %s1706_s11, %s1707_s12  }
 0x35f   :  { %1703 = dma.done.wait [#allocation4], 2048  }
 0x360   :  { %1704 = vsyncadd [#allocation4], 4294965248 }
 0x361   :  { %1194 = vsyncpa [#allocation3], 1 }
 0x362   :  { %1195 = vsyncpa [#allocation6], 1 }
 0x363   :  { %1196 = vsyncpa [#allocation9], 1 }
 0x364   :  { %1197 = vsyncpa [#allocation12], 1 }
 0x365   :  { %1198 = vsyncpa [#allocation4], 1 }

// kernel: foldnet_encoder_forward.7
= control target key start
LH: loop header
LB: loop body
LE: loop exit
PB: predicated region body
PF: predicated region fallthrough
CT: control target
= control target key end

     0   :  { %8 = vsyncpa [#allocation3], 0  ;;  %s1150_s0 = inlined_call_operand.hbm [shape: bf16[256,64], index: 0, kind: input, shape index: {}]   ;;  %s1151_s1 = inlined_call_operand.hbm [shape: bf16[64,128], index: 1, kind: input, shape index: {}]   ;;  %s1152_s2 = inlined_call_operand.hbm [shape: f32[1,128], index: 2, kind: input, shape index: {}]   ;;  %s1153_s3 = inlined_call_operand.hbm [shape: bf16[256,128], index: 3, kind: output, shape index: {}]  }
   0x1   :  { %9 = vsyncpa [#allocation6], 0 }
   0x2   :  { %10 = vsyncpa [#allocation4], 0  ;;  %s1010_s12 = smov [#allocation5]   ;;  %s1011_s14 = smov [#allocation2]  }
   0x3   :  { %s28_s13 = sshll.u32 %s1010_s12, 4  ;;  %s16_s15 = sshll.u32 %s1011_s14, 4  ;;  %s29_s13 = int_to_ptr.vmem [resolvable:$true] %s28_s13  ;;  %s1036_s15 = int_to_ptr.vmem [resolvable:$true] %s16_s15 }
   0x4   :  { %s916_s18 = scalar_lea.hbm %s1151_s1, 512 }
   0x5   :  { %p917_p0 = scmp.ne.s32.totalorder %s1151_s1, %s916_s18  ;;  %p920_p1 = scmp.lt.u32.totalorder %s916_s18, %s1151_s1 }
   0x7   :  { %p922_p2 = pnand %p920_p1, %p917_p0 }
   0x9   :  { %925 = shalt.err (!%p922_p2)
}
   0xa   :  { %s926_s23 = scalar_lea.vmem %s29_s13, 512  ;;  %p931_p4 = scmp.lt.s32.totalorder %s29_s13, %s29_s13 }
   0xb   :  { %p927_p3 = scmp.ne.s32.totalorder %s29_s13, %s926_s23  ;;  %p932_p5 = scmp.lt.s32.totalorder %s926_s23, %s926_s23 }
   0xd   :  { %p933_p6 = por %p932_p5, %p931_p4 }
   0xf   :  { %p934_p7 = pnand %p933_p6, %p927_p3 }
  0x11   :  { %937 = shalt.err (!%p934_p7)
}
  0x12   :  { %s1012_s24 = smov 64   ;;  %s1013_s25 = smov 4  }
  0x13   :  { %34 = dma.hbm_to_vmem [thread:$0]  %s1151_s1, 512, %s29_s13, [#allocation6], %s1012_s24, %s1012_s24, %s1013_s25  }
  0x14   :  { %s938_s30 = scalar_lea.hbm %s1150_s0, 2048 }
  0x15   :  { %p939_p8 = scmp.ne.s32.totalorder %s1150_s0, %s938_s30  ;;  %p942_p9 = scmp.lt.u32.totalorder %s938_s30, %s1150_s0 }
  0x17   :  { %p944_p10 = pnand %p942_p9, %p939_p8 }
  0x19   :  { %947 = shalt.err (!%p944_p10)
}
  0x1a   :  { %s948_s8 = scalar_lea.vmem %s1036_s15, 2048  ;;  %p953_p12 = scmp.lt.s32.totalorder %s1036_s15, %s1036_s15 }
  0x1b   :  { %p949_p11 = scmp.ne.s32.totalorder %s1036_s15, %s948_s8  ;;  %p954_p13 = scmp.lt.s32.totalorder %s948_s8, %s948_s8 }
  0x1d   :  { %p955_p0 = por %p954_p13, %p953_p12 }
  0x1f   :  { %p956_p1 = pnand %p955_p0, %p949_p11 }
  0x21   :  { %959 = shalt.err (!%p956_p1)
}
  0x22   :  { %22 = dma.hbm_to_vmem [thread:$0]  %s1150_s0, 2048, %s1036_s15, [#allocation3], %s1012_s24, %s1012_s24, %s1013_s25  }
  0x23   :  { %s1014_s10 = smov [#allocation7]   ;;  %s960_s14 = scalar_lea.hbm %s1152_s2, 16 }
  0x24   :  { %s41_s11 = sshll.u32 %s1014_s10, 4  ;;  %p961_p2 = scmp.ne.s32.totalorder %s1152_s2, %s960_s14  ;;  %s42_s11 = int_to_ptr.vmem [resolvable:$true] %s41_s11 }
  0x25   :  { %p964_p3 = scmp.lt.u32.totalorder %s960_s14, %s1152_s2 }
  0x27   :  { %p966_p4 = pnand %p964_p3, %p961_p2 }
  0x29   :  { %969 = shalt.err (!%p966_p4)
}
  0x2a   :  { %s970_s20 = scalar_lea.vmem %s42_s11, 16  ;;  %s974_s0 = scalar_lea.vmem %s42_s11, 32 }
  0x2b   :  { %p971_p5 = scmp.ne.s32.totalorder %s42_s11, %s970_s20  ;;  %p975_p6 = scmp.lt.s32.totalorder %s42_s11, %s42_s11 }
  0x2c   :  { %p976_p7 = scmp.lt.s32.totalorder %s974_s0, %s970_s20 }
  0x2e   :  { %p977_p8 = por %p976_p7, %p975_p6 }
  0x30   :  { %p978_p9 = pnand %p977_p8, %p971_p5 }
  0x32   :  { %981 = shalt.err (!%p978_p9)
}
  0x33   :  { %44 = dma.hbm_to_vmem [thread:$0]  %s1152_s2, 16, %s42_s11, [#allocation6]  }
  0x34   :  { %1004 = dma.done.wait [#allocation3], 2048  }
  0x35   :  { %1005 = vsyncadd [#allocation3], 4294965248 }
  0x36   :  { %1006 = dma.done.wait [#allocation6], 528  }
  0x37   :  { %1007 = vsyncadd [#allocation6], 4294966768  ;;  %v896_v0 = vld [vmem:[#allocation5] sm:$0xff]   ;;  %v897_v1 = vld [vmem:[#allocation5 + $0x8] sm:$0xff]   ;;  %vm206_vm0 = vcmask 523264   ;;  %s1015_s2 = smov [#allocation8]  }
  0x38   :  { %842 = vmatprep.subr.bf16.mxu0 %v896_v0  ;;  %882 = vmatprep.subr.bf16.mxu1 %v896_v0  ;;  %v898_v2 = vld [vmem:[#allocation5 + $0x10] sm:$0xff]   ;;  %v900_v3 = vld [vmem:[#allocation2] sm:$0xff]   ;;  %v899_v5 = vld [vmem:[#allocation5 + $0x18] sm:$0xff]   ;;  %s613_s22 = sshll.u32 %s1015_s2, 4  ;;  %s614_s22 = int_to_ptr.vmem [resolvable:$true] %s613_s22 }
  0x39   :  { %843 = vmatpush3.bf16.msra.mxu0 %v896_v0  ;;  %886 = vmatpush3.bf16.msra.mxu1 %v896_v0  ;;  %v901_v4 = vld [vmem:[#allocation2 + $0x40] sm:$0xff]   ;;  %v902_v6 = vld [vmem:[#allocation2 + $0x8] sm:$0xff]   ;;  %v904_v8 = vld [vmem:[#allocation2 + $0x10] sm:$0xff]   ;;  %s982_s23 = scalar_lea.vmem %s614_s22, 2048  ;;  %p987_p11 = scmp.lt.s32.totalorder %s614_s22, %s614_s22 }
  0x3a   :  { %844 = vmatprep.subr.bf16.mxu0 %v897_v1  ;;  %883 = vmatprep.subr.bf16.mxu1 %v897_v1  ;;  %v903_v7 = vld [vmem:[#allocation2 + $0x48] sm:$0xff]   ;;  %v905_v9 = vld [vmem:[#allocation2 + $0x50] sm:$0xff]   ;;  %v906_v10 = vld [vmem:[#allocation2 + $0x18] sm:$0xff]   ;;  %p983_p10 = scmp.ne.s32.totalorder %s614_s22, %s982_s23  ;;  %p988_p12 = scmp.lt.s32.totalorder %s982_s23, %s982_s23 }
  0x3b   :  { %850 = vmatprep.mubr.msk.bf16.mxu0 %vm206_vm0, %v900_v3  ;;  %866 = vmatprep.mubr.msk.bf16.mxu1 %vm206_vm0, %v901_v4  ;;  %v907_v11 = vld [vmem:[#allocation2 + $0x58] sm:$0xff]   ;;  %v908_v12 = vld [vmem:[#allocation2 + $0x20] sm:$0xff]   ;;  %v910_v14 = vld [vmem:[#allocation2 + $0x28] sm:$0xff]  }
  0x3c   :  { %v909_v13 = vld [vmem:[#allocation2 + $0x60] sm:$0xff]   ;;  %v911_v15 = vld [vmem:[#allocation2 + $0x68] sm:$0xff]   ;;  %v912_v16 = vld [vmem:[#allocation2 + $0x30] sm:$0xff]   ;;  %p989_p13 = por %p988_p12, %p987_p11 }
  0x3d   :  { %845 = vmatpush3.bf16.msra.mxu0 %v897_v1  ;;  %887 = vmatpush3.bf16.msra.mxu1 %v897_v1  ;;  %v913_v17 = vld [vmem:[#allocation2 + $0x70] sm:$0xff]   ;;  %v914_v18 = vld [vmem:[#allocation2 + $0x38] sm:$0xff]   ;;  %v1101_v20 = vld [vmem:[#allocation7] ss:$0 sm:$0xff] }
  0x3e   :  { %846 = vmatprep.subr.bf16.mxu0 %v898_v2  ;;  %884 = vmatprep.subr.bf16.mxu1 %v898_v2  ;;  %v915_v19 = vld [vmem:[#allocation2 + $0x78] sm:$0xff]   ;;  %p990_p0 = pnand %p989_p13, %p983_p10 }
  0x41   :  { %847 = vmatpush3.bf16.msra.mxu0 %v898_v2  ;;  %888 = vmatpush3.bf16.msra.mxu1 %v898_v2 }
  0x42   :  { %848 = vmatprep.subr.bf16.mxu0 %v899_v5  ;;  %885 = vmatprep.subr.bf16.mxu1 %v899_v5 }
  0x45   :  { %849 = vmatpush3.bf16.msra.mxu0 %v899_v5  ;;  %889 = vmatpush3.bf16.msra.mxu1 %v899_v5 }
  0x48   :  { %851 = vmatmul.mubr.msk.bf16.vlgmr.msra.gmra.mrb[0].mxu0 %vm206_vm0, %v902_v6  ;;  %867 = vmatmul.mubr.msk.bf16.vlgmr.msra.gmra.mrb[0].mxu1 %vm206_vm0, %v903_v7 }
  0x49   :  { %854 = vmatprep.mubr.msk.bf16.mxu0 %vm206_vm0, %v904_v8  ;;  %870 = vmatprep.mubr.msk.bf16.mxu1 %vm206_vm0, %v905_v9 }
  0x50   :  { %855 = vmatmul.mubr.msk.bf16.gmra.mrb[4].mxu0 %vm206_vm0, %v906_v10  ;;  %871 = vmatmul.mubr.msk.bf16.gmra.mrb[4].mxu1 %vm206_vm0, %v907_v11 }
  0x51   :  { %858 = vmatprep.mubr.msk.bf16.mxu0 %vm206_vm0, %v908_v12  ;;  %874 = vmatprep.mubr.msk.bf16.mxu1 %vm206_vm0, %v909_v13 }
  0x58   :  { %859 = vmatmul.mubr.msk.bf16.gmra.mrb[8].mxu0 %vm206_vm0, %v910_v14  ;;  %875 = vmatmul.mubr.msk.bf16.gmra.mrb[8].mxu1 %vm206_vm0, %v911_v15 }
  0x59   :  { %862 = vmatprep.mubr.msk.bf16.mxu0 %vm206_vm0, %v912_v16  ;;  %878 = vmatprep.mubr.msk.bf16.mxu1 %vm206_vm0, %v913_v17 }
  0x60   :  { %863 = vmatmul.mubr.msk.bf16.gmra.mrb[12].mxu0 %vm206_vm0, %v914_v18  ;;  %879 = vmatmul.mubr.msk.bf16.gmra.mrb[12].mxu1 %vm206_vm0, %v915_v19 }
 0x11b   :  { %v852_v21 = vpop.f32.mrb[0].mxu0  ;;  %v868_v22 = vpop.f32.mrb[0].mxu1 }
 0x11c   :  { %v298_v23 = vadd.f32 %v852_v21, %v1101_v20  ;;  %v362_v24 = vadd.f32 %v868_v22, %v1101_v20  ;;  %v289_v25 = vpop.f32.mrb[1].mxu0  ;;  %v353_v26 = vpop.f32.mrb[1].mxu1 }
 0x11d   :  { %v290_v27 = vadd.f32 %v1101_v20, %v289_v25  ;;  %v354_v28 = vadd.f32 %v1101_v20, %v353_v26  ;;  %v853_v29 = vpop.f32.mrb[2].mxu0  ;;  %v869_v30 = vpop.f32.mrb[2].mxu1 }
 0x11e   :  { %v301_v31 = vadd.f32 %v853_v29, %v1101_v20  ;;  %v365_v32 = vadd.f32 %v869_v30, %v1101_v20  ;;  %v292_v33 = vpop.f32.mrb[3].mxu0  ;;  %v356_v34 = vpop.f32.mrb[3].mxu1  ;;  %v418_v37 = vmax.f32 %v298_v23, 0.0  ;;  %v434_v38 = vmax.f32 %v362_v24, 0.0 }
 0x11f   :  { %v293_v35 = vadd.f32 %v1101_v20, %v292_v33  ;;  %v357_v36 = vadd.f32 %v1101_v20, %v356_v34  ;;  %v416_v41 = vmax.f32 %v290_v27, 0.0  ;;  %v432_v42 = vmax.f32 %v354_v28, 0.0 }
 0x120   :  { %v419_v39 = vmax.f32 %v301_v31, 0.0  ;;  %v435_v40 = vmax.f32 %v365_v32, 0.0 }
 0x121   :  { %v417_v43 = vmax.f32 %v293_v35, 0.0  ;;  %v433_v44 = vmax.f32 %v357_v36, 0.0 }
 0x122   :  { %v735_v45 = vpack.c.bf16 %v419_v39, %v418_v37  ;;  %v775_v46 = vpack.c.bf16 %v435_v40, %v434_v38 }
 0x123   :  { %v730_v47 = vpack.c.bf16 %v417_v43, %v416_v41  ;;  %v770_v48 = vpack.c.bf16 %v433_v44, %v432_v42  ;;  %v856_v49 = vpop.f32.mrb[4].mxu0  ;;  %v872_v50 = vpop.f32.mrb[4].mxu1 }
 0x124   :  { %807 = vst [vmem:[#allocation8 + $0x8] sm:$0xff] %v735_v45   ;;  %815 = vst [vmem:[#allocation8 + $0x48] sm:$0xff] %v775_v46   ;;  %v314_v51 = vadd.f32 %v856_v49, %v1101_v20  ;;  %v378_v52 = vadd.f32 %v872_v50, %v1101_v20  ;;  %v305_v53 = vpop.f32.mrb[5].mxu0  ;;  %v369_v54 = vpop.f32.mrb[5].mxu1 }
 0x125   :  { %731 = vst [vmem:[#allocation8] sm:$0xff] %v730_v47   ;;  %814 = vst [vmem:[#allocation8 + $0x40] sm:$0xff] %v770_v48   ;;  %v306_v55 = vadd.f32 %v1101_v20, %v305_v53  ;;  %v370_v56 = vadd.f32 %v1101_v20, %v369_v54  ;;  %v857_v57 = vpop.f32.mrb[6].mxu0  ;;  %v873_v58 = vpop.f32.mrb[6].mxu1 }
 0x126   :  { %v317_v59 = vadd.f32 %v857_v57, %v1101_v20  ;;  %v381_v60 = vadd.f32 %v873_v58, %v1101_v20  ;;  %v308_v61 = vpop.f32.mrb[7].mxu0  ;;  %v372_v62 = vpop.f32.mrb[7].mxu1  ;;  %v422_v1 = vmax.f32 %v314_v51, 0.0  ;;  %v438_v2 = vmax.f32 %v378_v52, 0.0 }
 0x127   :  { %v309_v63 = vadd.f32 %v1101_v20, %v308_v61  ;;  %v373_v0 = vadd.f32 %v1101_v20, %v372_v62  ;;  %v420_v5 = vmax.f32 %v306_v55, 0.0  ;;  %v436_v6 = vmax.f32 %v370_v56, 0.0 }
 0x128   :  { %v423_v3 = vmax.f32 %v317_v59, 0.0  ;;  %v439_v4 = vmax.f32 %v381_v60, 0.0 }
 0x129   :  { %v421_v7 = vmax.f32 %v309_v63, 0.0  ;;  %v437_v8 = vmax.f32 %v373_v0, 0.0 }
 0x12a   :  { %v745_v9 = vpack.c.bf16 %v423_v3, %v422_v1  ;;  %v785_v10 = vpack.c.bf16 %v439_v4, %v438_v2 }
 0x12b   :  { %v740_v11 = vpack.c.bf16 %v421_v7, %v420_v5  ;;  %v780_v12 = vpack.c.bf16 %v437_v8, %v436_v6  ;;  %v860_v13 = vpop.f32.mrb[8].mxu0  ;;  %v876_v14 = vpop.f32.mrb[8].mxu1 }
 0x12c   :  { %809 = vst [vmem:[#allocation8 + $0x18] sm:$0xff] %v745_v9   ;;  %817 = vst [vmem:[#allocation8 + $0x58] sm:$0xff] %v785_v10   ;;  %v330_v15 = vadd.f32 %v860_v13, %v1101_v20  ;;  %v394_v16 = vadd.f32 %v876_v14, %v1101_v20  ;;  %v321_v17 = vpop.f32.mrb[9].mxu0  ;;  %v385_v18 = vpop.f32.mrb[9].mxu1 }
 0x12d   :  { %808 = vst [vmem:[#allocation8 + $0x10] sm:$0xff] %v740_v11   ;;  %816 = vst [vmem:[#allocation8 + $0x50] sm:$0xff] %v780_v12   ;;  %v322_v19 = vadd.f32 %v1101_v20, %v321_v17  ;;  %v386_v21 = vadd.f32 %v1101_v20, %v385_v18  ;;  %v861_v22 = vpop.f32.mrb[10].mxu0  ;;  %v877_v23 = vpop.f32.mrb[10].mxu1 }
 0x12e   :  { %v333_v24 = vadd.f32 %v861_v22, %v1101_v20  ;;  %v397_v25 = vadd.f32 %v877_v23, %v1101_v20  ;;  %v324_v26 = vpop.f32.mrb[11].mxu0  ;;  %v388_v27 = vpop.f32.mrb[11].mxu1  ;;  %v426_v30 = vmax.f32 %v330_v15, 0.0  ;;  %v442_v31 = vmax.f32 %v394_v16, 0.0 }
 0x12f   :  { %v325_v28 = vadd.f32 %v1101_v20, %v324_v26  ;;  %v389_v29 = vadd.f32 %v1101_v20, %v388_v27  ;;  %v424_v34 = vmax.f32 %v322_v19, 0.0  ;;  %v440_v35 = vmax.f32 %v386_v21, 0.0 }
 0x130   :  { %v427_v32 = vmax.f32 %v333_v24, 0.0  ;;  %v443_v33 = vmax.f32 %v397_v25, 0.0 }
 0x131   :  { %v425_v36 = vmax.f32 %v325_v28, 0.0  ;;  %v441_v37 = vmax.f32 %v389_v29, 0.0 }
 0x132   :  { %v755_v38 = vpack.c.bf16 %v427_v32, %v426_v30  ;;  %v795_v39 = vpack.c.bf16 %v443_v33, %v442_v31 }
 0x133   :  { %v750_v40 = vpack.c.bf16 %v425_v36, %v424_v34  ;;  %v790_v41 = vpack.c.bf16 %v441_v37, %v440_v35  ;;  %v864_v42 = vpop.f32.mrb[12].mxu0  ;;  %v880_v43 = vpop.f32.mrb[12].mxu1 }
 0x134   :  { %811 = vst [vmem:[#allocation8 + $0x28] sm:$0xff] %v755_v38   ;;  %819 = vst [vmem:[#allocation8 + $0x68] sm:$0xff] %v795_v39   ;;  %v346_v44 = vadd.f32 %v864_v42, %v1101_v20  ;;  %v410_v45 = vadd.f32 %v880_v43, %v1101_v20  ;;  %v337_v46 = vpop.f32.mrb[13].mxu0  ;;  %v401_v47 = vpop.f32.mrb[13].mxu1 }
 0x135   :  { %810 = vst [vmem:[#allocation8 + $0x20] sm:$0xff] %v750_v40   ;;  %818 = vst [vmem:[#allocation8 + $0x60] sm:$0xff] %v790_v41   ;;  %v338_v48 = vadd.f32 %v1101_v20, %v337_v46  ;;  %v402_v49 = vadd.f32 %v1101_v20, %v401_v47  ;;  %v865_v50 = vpop.f32.mrb[14].mxu0  ;;  %v881_v51 = vpop.f32.mrb[14].mxu1 }
 0x136   :  { %v349_v52 = vadd.f32 %v865_v50, %v1101_v20  ;;  %v413_v53 = vadd.f32 %v881_v51, %v1101_v20  ;;  %v340_v54 = vpop.f32.mrb[15].mxu0  ;;  %v404_v55 = vpop.f32.mrb[15].mxu1  ;;  %v430_v58 = vmax.f32 %v346_v44, 0.0  ;;  %v446_v59 = vmax.f32 %v410_v45, 0.0 }
 0x137   :  { %v341_v56 = vadd.f32 %v1101_v20, %v340_v54  ;;  %v405_v57 = vadd.f32 %v1101_v20, %v404_v55  ;;  %v428_v62 = vmax.f32 %v338_v48, 0.0  ;;  %v444_v63 = vmax.f32 %v402_v49, 0.0 }
 0x138   :  { %v431_v60 = vmax.f32 %v349_v52, 0.0  ;;  %v447_v61 = vmax.f32 %v413_v53, 0.0 }
 0x139   :  { %v429_v0 = vmax.f32 %v341_v56, 0.0  ;;  %v445_v1 = vmax.f32 %v405_v57, 0.0 }
 0x13a   :  { %v765_v2 = vpack.c.bf16 %v431_v60, %v430_v58  ;;  %v805_v3 = vpack.c.bf16 %v447_v61, %v446_v59 }
 0x13b   :  { %v760_v4 = vpack.c.bf16 %v429_v0, %v428_v62  ;;  %v800_v5 = vpack.c.bf16 %v445_v1, %v444_v63 }
 0x13c   :  { %813 = vst [vmem:[#allocation8 + $0x38] sm:$0xff] %v765_v2   ;;  %821 = vst [vmem:[#allocation8 + $0x78] sm:$0xff] %v805_v3  }
 0x13d   :  { %812 = vst [vmem:[#allocation8 + $0x30] sm:$0xff] %v760_v4   ;;  %820 = vst [vmem:[#allocation8 + $0x70] sm:$0xff] %v800_v5  }
 0x13e   :  { %993 = shalt.err (!%p990_p0)
}
 0x13f   :  { %s994_s28 = scalar_lea.hbm %s1153_s3, 2048 }
 0x140   :  { %p995_p1 = scmp.ne.s32.totalorder %s1153_s3, %s994_s28  ;;  %p998_p2 = scmp.lt.u32.totalorder %s994_s28, %s1153_s3 }
 0x142   :  { %p1000_p3 = pnand %p998_p2, %p995_p1 }
 0x144   :  { %1003 = shalt.err (!%p1000_p3)
}
 0x145   :  { %619 = dma.vmem_to_hbm [thread:$0]  %s614_s22, 2048, %s1153_s3, [#allocation4], %s1012_s24, %s1012_s24, %s1013_s25  }
 0x146   :  { %1008 = dma.done.wait [#allocation4], 2048  }
 0x147   :  { %1009 = vsyncadd [#allocation4], 4294965248 }
 0x148   :  { %623 = vsyncpa [#allocation3], 1 }
 0x149   :  { %624 = vsyncpa [#allocation6], 1 }
 0x14a   :  { %625 = vsyncpa [#allocation4], 1 }

// kernel: foldnet_encoder_forward.8
= control target key start
LH: loop header
LB: loop body
LE: loop exit
PB: predicated region body
PF: predicated region fallthrough
CT: control target
= control target key end

     0   :  { %8 = vsyncpa [#allocation3], 0  ;;  %s2436_s0 = inlined_call_operand.hbm [shape: bf16[2,128,128], index: 0, kind: input, shape index: {}]   ;;  %s2437_s1 = inlined_call_operand.hbm [shape: bf16[128,1024], index: 1, kind: input, shape index: {}]   ;;  %s2438_s2 = inlined_call_operand.hbm [shape: f32[1,1024], index: 2, kind: input, shape index: {}]   ;;  %s2439_s3 = inlined_call_operand.hbm [shape: f32[2,1,1024], index: 3, kind: output, shape index: {}]  }
   0x1   :  { %10 = vsyncpa [#allocation3 + $0x1], 0 }
   0x2   :  { %11 = vsyncpa [#allocation6], 0 }
   0x3   :  { %12 = vsyncpa [#allocation4], 0 }
   0x4   :  { %14 = vsyncpa [#allocation4 + $0x1], 0  ;;  %s1940_s12 = smov 0   ;;  %s1942_s13 = smov 0  }
   0x5   :  { %s1944_s14 = smov 0   ;;  %s1946_s15 = smov 0  }
   0x6   :  { %s1948_s16 = smov 0   ;;  %s1950_s17 = smov 0  }
   0x7 LB: > { %s1545_s18 = sadd.s32 4294967295, %s1908_s17   ;;  %s1546_s19 = sadd.s32 4294967294, %s1908_s17   ;;  %s1908_s17 = sphi %s1950_s17, %s20_s17   ;;  %s1904_s16 = sphi %s1948_s16, %s2461_s16   ;;  %s1900_s15 = sphi %s1946_s15, %s2460_s15   ;;  %s1896_s14 = sphi %s1944_s14, %s2459_s14   ;;  %s1892_s13 = sphi %s1942_s13, %s2458_s13   ;;  %s1888_s12 = sphi %s1940_s12, %s2457_s12  }
   0x8   : > { %p63_p0 = scmp.ne.s32.totalorder %s1892_s13, %s1888_s12  ;;  %p1974_p1 = scmp.eq.s32.totalorder %s1545_s18, 0 }
   0x9   : > { %p1978_p2 = scmp.eq.s32.totalorder %s1545_s18, 1  ;;  %p137_p3 = scmp.eq.s32.totalorder %s1546_s19, 1 }
   0xa   : > { %s2444_s20 = scalar_select %p1974_p1, 1, 0 }
   0xb   : > { %p1984_p4 = por %p1974_p1, %p63_p0  ;;  %p1547_p5 = scmp.ge.s32.totalorder %s1908_s17, 1 }
   0xc   : > { %p1989_p6 = por %p137_p3, %p63_p0  ;;  %p144_p7 = scmp.lt.s32.totalorder %s1908_s17, 3 }
   0xd   : > { %s2446_s22 = scalar_select %p1984_p4, 1, 0 }
   0xe   : > { %s2447_s23 = scalar_select %p1989_p6, 1, 0 }
   0xf   : > { %p1994_p8 = pnand %p1547_p5, %p144_p7  ;;  %s1910_s25 = smov [#allocation5]  }
  0x10   : > { %s156_s26 = sshll.u32 %s1910_s25, 4  ;;  %s1911_s28 = smov [#allocation7]   ;;  %s1998_s26 = int_to_ptr.vmem [resolvable:$true] %s156_s26 }
  0x11   : > { %p1650_p9 = pneg %p1994_p8  ;;  %s170_s29 = sshll.u32 %s1911_s28, 4  ;;  %s2009_s29 = int_to_ptr.vmem [resolvable:$true] %s170_s29 }
  0x12   : > { %s1736_s5 = scalar_lea.hbm %s2437_s1, 8192 }
  0x13   : > { %p2005_p11 = pnand %p1650_p9, %p1974_p1  ;;  %p1737_p12 = scmp.ne.s32.totalorder %s2437_s1, %s1736_s5 }
  0x14   : > { %p1743_p5 = scmp.lt.u32.totalorder %s1736_s5, %s2437_s1 }
  0x15   : > { %p1738_p13 = pneg %p2005_p11 }
  0x17   : > { %p1739_p0 = pnand %p1738_p13, %p1737_p12 }
  0x19   : > { %p1740_p3 = pneg %p1739_p0 }
  0x1b   : > { %p1745_p7 = pnand %p1743_p5, %p1740_p3 }
  0x1d   : > { %1748 = shalt.err (!%p1745_p7)
}
  0x1e   : > { %s1749_s10 = scalar_lea.vmem %s1998_s26, 8192  ;;  %p1757_p1 = scmp.lt.s32.totalorder %s1998_s26, %s1998_s26 }
  0x1f   : > { %p1750_p9 = scmp.ne.s32.totalorder %s1998_s26, %s1749_s10  ;;  %p1758_p12 = scmp.lt.s32.totalorder %s1749_s10, %s1749_s10 }
  0x21   : > { %p1752_p10 = pnand %p1750_p9, %p1738_p13  ;;  %p1759_p0 = por %p1758_p12, %p1757_p1 }
  0x23   : > { %p1753_p6 = pneg %p1752_p10 }
  0x25   : > { %p1760_p4 = pnand %p1759_p0, %p1753_p6 }
  0x27   : > { %1763 = shalt.err (!%p1760_p4)
}
  0x28   : > { %s1912_s11 = smov 512   ;;  %s1913_s18 = smov 32  }
  0x29   : > { %1653 = dma.hbm_to_vmem [thread:$0]  (!%p2005_p11), %s2437_s1, 8192, %s1998_s26, [#allocation6], %s1912_s11, %s1912_s11, %s1913_s18  }
  0x2a   : > { %s1764_s4 = scalar_lea.hbm %s2438_s2, 128 }
  0x2b   : > { %p1765_p1 = scmp.ne.s32.totalorder %s2438_s2, %s1764_s4  ;;  %p1771_p10 = scmp.lt.u32.totalorder %s1764_s4, %s2438_s2 }
  0x2d   : > { %p1767_p4 = pnand %p1765_p1, %p1738_p13 }
  0x2f   : > { %p1768_p6 = pneg %p1767_p4 }
  0x31   : > { %p1773_p3 = pnand %p1771_p10, %p1768_p6 }
  0x33   : > { %1776 = shalt.err (!%p1773_p3)
}
  0x34   : > { %s1777_s26 = scalar_lea.vmem %s2009_s29, 128  ;;  %p1785_p12 = scmp.lt.s32.totalorder %s2009_s29, %s2009_s29 }
  0x35   : > { %p1778_p5 = scmp.ne.s32.totalorder %s2009_s29, %s1777_s26  ;;  %p1786_p0 = scmp.lt.s32.totalorder %s1777_s26, %s1777_s26 }
  0x37   : > { %p1780_p7 = pnand %p1778_p5, %p1738_p13  ;;  %p1787_p1 = por %p1786_p0, %p1785_p12 }
  0x39   : > { %p1781_p9 = pneg %p1780_p7 }
  0x3b   : > { %p1788_p4 = pnand %p1787_p1, %p1781_p9 }
  0x3d   : > { %1791 = shalt.err (!%p1788_p4)
}
  0x3e   : > { %1656 = dma.hbm_to_vmem [thread:$0]  (!%p2005_p11), %s2438_s2, 128, %s2009_s29, [#allocation6]  }
  0x3f   : > { %s39_s11 = sadd.s32 1, %s1904_s16  ;;  %s50_s18 = sadd.s32 1, %s1896_s14 }
  0x40   : > { %p41_p13 = scmp.ge.s32.totalorder %s39_s11, 2  ;;  %p57_p6 = scmp.ne.s32.totalorder %s1896_s14, %s1892_s13 }
  0x41   : > { %p58_p10 = scmp.eq.s32.totalorder %s1908_s17, 0  ;;  %p1667_p3 = scmp.lt.s32.totalorder %s1908_s17, 2 }
  0x42   : > { %s2463_s11 = smov (%p41_p13, %s39_s11), 0  ;;  %p2073_p7 = por %p1978_p2, %p57_p6 }
  0x43   : > { %p59_p5 = por %p58_p10, %p57_p6  ;;  %s45_s19 = ssub.s32 %s1904_s16, %s2463_s11 }
  0x44   : > { %s2450_s27 = scalar_select %p2073_p7, 1, 0 }
  0x45   : > { %s181_s25 = sand.u32 1, %s1896_s14   ;;  %p48_p9 = scmp.eq.s32.totalorder %s45_s19, 0 }
  0x46   : > { %s1551_s29 = sshll.u32 %s181_s25, 6  ;;  %s1636_s28 = sshll.u32 %s1904_s16, 10 }
  0x47   : > { %s2082_s30 = scalar_select %p48_p9, %s1896_s14, %s50_s18  }
  0x48   : > { %s2087_s6 = scalar_lea.hbm %s2436_s0, %s1636_s28  ;;  %s185_s21 = scalar_lea.vmem [#allocation2], %s1551_s29 }
  0x49   : > { %s195_s7 = sshll.u32 %s185_s21, 4  ;;  %p2091_p2 = pnand %p1667_p3, %p59_p5  ;;  %s2095_s7 = int_to_ptr.vmem [resolvable:$true] %s195_s7 }
  0x4a   : > { %s2097_s26 = scalar_lea.sflag [#allocation3], %s181_s25  ;;  %s1792_s9 = scalar_lea.hbm %s2087_s6, 1024 }
  0x4b   : > { %p1793_p11 = scmp.ne.s32.totalorder %s2087_s6, %s1792_s9  ;;  %p1794_p12 = pneg %p2091_p2 }
  0x4c   : > { %s1797_s19 = scalar_lea.hbm %s2436_s0, 2048  ;;  %p1798_p4 = scmp.lt.u32.totalorder %s2087_s6, %s2436_s0 }
  0x4d   : > { %p1795_p0 = pnand %p1794_p12, %p1793_p11  ;;  %p1799_p13 = scmp.lt.u32.totalorder %s1797_s19, %s1792_s9 }
  0x4e   : > { %p1801_p10 = scmp.lt.u32.totalorder %s1792_s9, %s2087_s6 }
  0x4f   : > { %p1796_p1 = pneg %p1795_p0  ;;  %p1800_p6 = por %p1799_p13, %p1798_p4 }
  0x51   : > { %p1802_p3 = por %p1801_p10, %p1800_p6 }
  0x53   : > { %p1803_p5 = pnand %p1802_p3, %p1796_p1 }
  0x55   : > { %1806 = shalt.err (!%p1803_p5)
}
  0x56   : > { %s1807_s25 = scalar_lea.vmem %s2095_s7, 1024  ;;  %s1914_s4 = smov [#allocation2]  }
  0x57   : > { %p1808_p9 = scmp.ne.s32.totalorder %s2095_s7, %s1807_s25  ;;  %s1812_s5 = sshll.u32 %s1914_s4, 4  ;;  %s1813_s5 = int_to_ptr.vmem [resolvable:$false] %s1812_s5 }
  0x58   : > { %s1814_s21 = scalar_lea.vmem %s1813_s5, 2048  ;;  %p1815_p7 = scmp.lt.s32.totalorder %s2095_s7, %s1813_s5 }
  0x59   : > { %p1810_p11 = pnand %p1808_p9, %p1794_p12  ;;  %p1816_p4 = scmp.lt.s32.totalorder %s1814_s21, %s1807_s25 }
  0x5b   : > { %p1811_p0 = pneg %p1810_p11  ;;  %p1817_p13 = por %p1816_p4, %p1815_p7 }
  0x5d   : > { %p1818_p6 = pnand %p1817_p13, %p1811_p0 }
  0x5f   : > { %1821 = shalt.err (!%p1818_p6)
}
  0x60   : > { %s1915_s9 = smov 64   ;;  %s1916_s10 = smov 4  }
  0x61   : > { %1660 = dma.hbm_to_vmem [thread:$0]  (!%p2091_p2), %s2087_s6, 1024, %s2095_s7, %s2097_s26, %s1915_s9, %s1915_s9, %s1916_s10  }
  0x62   : > { %207 = sbr.rel (%p1994_p8) target bundleno = 520 (0x208), region = 32  ;;  %s2128_s18 = sand.u32 (!%p1994_p8), 1, %s1892_s13  }
  0x63   : > { %s1555_s19 = sshll.u32 (!%p1994_p8), %s2128_s18, 6  ;;  %s210_s29 = scalar_lea.sflag (!%p1994_p8), [#allocation3], %s2128_s18 }
  0x64   : > { %s2132_s28 = scalar_lea.vmem (!%p1994_p8), [#allocation2], %s1555_s19  ;;  %p2452_p7 = scmp.ne.s32.totalorder (!%p1994_p8), %s2446_s22, 0 }
  0x69   : > { %1875 = dma.done.wait (%p2452_p7), %s210_s29, 1024  }
  0x6a   : > { %1877 = vsyncadd (%p2452_p7), %s210_s29, 4294966272  ;;  %p2453_p2 = scmp.ne.s32.totalorder %s2444_s20, 0 }
  0x6c   : > { %1879 = dma.done.wait (%p2453_p2), [#allocation6], 8320  }
  0x6d   : > { %1881 = vsyncadd (%p2453_p2), [#allocation6], 4294958976  ;;  %v1917_v0 = vmov 0   ;;  %v264_v1 = vld [vmem:[#allocation5] sm:$0xff]  ;;  %v265_v3 = vld [vmem:[#allocation5 + $0x8] sm:$0xff]  ;;  %s1558_s20 = sshll.u32 %s2128_s18, 3 }
  0x6e   : > { %770 = vmatprep.mubr.bf16.mxu0 %v1917_v0  ;;  %883 = vmatprep.mubr.bf16.mxu1 %v1917_v0  ;;  %v268_v2 = vld [vmem:[#allocation5 + $0x20] sm:$0xff]  ;;  %v269_v5 = vld [vmem:[#allocation5 + $0x28] sm:$0xff]  ;;  %v266_v63 = vld [vmem:[#allocation5 + $0x10] sm:$0xff]  ;;  %s1637_s22 = sshll.u32 %s1900_s15, 7  ;;  %s243_s24 = scalar_lea.vmem [#allocation8], %s1558_s20 }
  0x6f   : > { %v1568_v4 = vcombine.high %v264_v1, %v268_v2  ;;  %v1567_v6 = vcombine.low %v264_v1, %v268_v2  ;;  %v272_v7 = vld [vmem:[#allocation5 + $0x40] sm:$0xff]  ;;  %v1570_v9 = vcombine.high %v265_v3, %v269_v5  ;;  %v1569_v10 = vcombine.low %v265_v3, %v269_v5  ;;  %v273_v12 = vld [vmem:[#allocation5 + $0x48] sm:$0xff]  ;;  %v270_v1 = vld [vmem:[#allocation5 + $0x30] sm:$0xff]  ;;  %s1440_s6 = sshll.u32 %s243_s24, 4  ;;  %s2387_s26 = scalar_lea.hbm %s2439_s3, %s1637_s22  ;;  %s2389_s6 = int_to_ptr.vmem [resolvable:$true] %s1440_s6 }
  0x70   : > { %v276_v8 = vld [vmem:[#allocation5 + $0x60] sm:$0xff]  ;;  %v277_v13 = vld [vmem:[#allocation5 + $0x68] sm:$0xff]  ;;  %v267_v2 = vld [vmem:[#allocation5 + $0x18] sm:$0xff]  ;;  %s1425_s25 = scalar_lea.sflag [#allocation4], %s2128_s18  ;;  %s1822_s4 = scalar_lea.vmem %s2389_s6, 128 }
  0x71   : > { %v1576_v11 = vcombine.high %v272_v7, %v276_v8  ;;  %v280_v14 = vld [vmem:[#allocation5 + $0x80] sm:$0xff]  ;;  %738 = vmatprep.subr.bf16.mxu0 %v1568_v4  ;;  %v1578_v15 = vcombine.high %v273_v12, %v277_v13  ;;  %v281_v17 = vld [vmem:[#allocation5 + $0x88] sm:$0xff]  ;;  %851 = vmatprep.subr.bf16.mxu1 %v1570_v9  ;;  %v1575_v19 = vcombine.low %v272_v7, %v276_v8  ;;  %v271_v3 = vld [vmem:[#allocation5 + $0x38] sm:$0xff]  ;;  %p1823_p8 = scmp.ne.s32.totalorder %s2389_s6, %s1822_s4  ;;  %p2454_p12 = scmp.ne.s32.totalorder %s2450_s27, 0 }
  0x72   : > { %v284_v16 = vld [vmem:[#allocation5 + $0xa0] sm:$0xff]  ;;  %v285_v18 = vld [vmem:[#allocation5 + $0xa8] sm:$0xff]  ;;  %739 = vmatpush1.bf16.msra.mxu0 %v1567_v6  ;;  %852 = vmatpush1.bf16.msra.mxu1 %v1569_v10  ;;  %v1577_v20 = vcombine.low %v273_v12, %v277_v13  ;;  %v1572_v6 = vcombine.high %v266_v63, %v270_v1  ;;  %v1574_v7 = vcombine.high %v267_v2, %v271_v3  ;;  %v274_v9 = vld [vmem:[#allocation5 + $0x50] sm:$0xff]  ;;  %s1919_s15 = smov [#allocation8]  }
  0x73   : > { %740 = vmatprep.subr.bf16.mxu0 %v1576_v11  ;;  %v1584_v21 = vcombine.high %v280_v14, %v284_v16  ;;  %853 = vmatprep.subr.bf16.mxu1 %v1578_v15  ;;  %v1586_v22 = vcombine.high %v281_v17, %v285_v18  ;;  %v288_v23 = vld [vmem:[#allocation5 + $0xc0] sm:$0xff]  ;;  %v289_v25 = vld [vmem:[#allocation5 + $0xc8] sm:$0xff]  ;;  %v1583_v27 = vcombine.low %v280_v14, %v284_v16  ;;  %v278_v10 = vld [vmem:[#allocation5 + $0x70] sm:$0xff]  ;;  %p1824_p1 = pnand %p1823_p8, %p2454_p12  ;;  %s1826_s5 = sshll.u32 %s1919_s15, 4  ;;  %s1827_s5 = int_to_ptr.vmem [resolvable:$false] %s1826_s5 }
  0x74   : > { %v292_v24 = vld [vmem:[#allocation5 + $0xe0] sm:$0xff]  ;;  %v293_v26 = vld [vmem:[#allocation5 + $0xe8] sm:$0xff]  ;;  %v1585_v28 = vcombine.low %v281_v17, %v285_v18  ;;  %v1571_v11 = vcombine.low %v266_v63, %v270_v1  ;;  %v275_v12 = vld [vmem:[#allocation5 + $0x58] sm:$0xff]  ;;  %v1573_v14 = vcombine.low %v267_v2, %v271_v3  ;;  %v1580_v15 = vcombine.high %v274_v9, %v278_v10  ;;  %s1828_s21 = scalar_lea.vmem %s1827_s5, 256  ;;  %p1829_p3 = scmp.lt.s32.totalorder %s2389_s6, %s1827_s5 }
  0x75   : > { %v1592_v29 = vcombine.high %v288_v23, %v292_v24  ;;  %v1594_v30 = vcombine.high %v289_v25, %v293_v26  ;;  %v296_v31 = vld [vmem:[#allocation5 + $0x100] sm:$0xff]  ;;  %v297_v33 = vld [vmem:[#allocation5 + $0x108] sm:$0xff]  ;;  %v1591_v35 = vcombine.low %v288_v23, %v292_v24  ;;  %v1593_v36 = vcombine.low %v289_v25, %v293_v26  ;;  %v279_v13 = vld [vmem:[#allocation5 + $0x78] sm:$0xff]  ;;  %p1825_p10 = pneg %p1824_p1  ;;  %p1830_p5 = scmp.lt.s32.totalorder %s1828_s21, %s1822_s4 }
  0x76   : > { %741 = vmatpush1.bf16.msra.mxu0 %v1575_v19  ;;  %854 = vmatpush1.bf16.msra.mxu1 %v1577_v20  ;;  %v300_v32 = vld [vmem:[#allocation5 + $0x120] sm:$0xff]  ;;  %v301_v34 = vld [vmem:[#allocation5 + $0x128] sm:$0xff]  ;;  %v282_v16 = vld [vmem:[#allocation5 + $0x90] sm:$0xff]  ;;  %v1582_v18 = vcombine.high %v275_v12, %v279_v13 }
  0x77   : > { %742 = vmatprep.subr.bf16.mxu0 %v1584_v21  ;;  %855 = vmatprep.subr.bf16.mxu1 %v1586_v22  ;;  %v1600_v37 = vcombine.high %v296_v31, %v300_v32  ;;  %v1602_v38 = vcombine.high %v297_v33, %v301_v34  ;;  %v304_v39 = vld [vmem:[#allocation5 + $0x140] sm:$0xff]  ;;  %v305_v41 = vld [vmem:[#allocation5 + $0x148] sm:$0xff]  ;;  %v1599_v43 = vcombine.low %v296_v31, %v300_v32  ;;  %v286_v17 = vld [vmem:[#allocation5 + $0xb0] sm:$0xff]  ;;  %p1831_p9 = por %p1830_p5, %p1829_p3 }
  0x78   : > { %v308_v40 = vld [vmem:[#allocation5 + $0x160] sm:$0xff]  ;;  %v309_v42 = vld [vmem:[#allocation5 + $0x168] sm:$0xff]  ;;  %v1601_v44 = vcombine.low %v297_v33, %v301_v34  ;;  %v283_v19 = vld [vmem:[#allocation5 + $0x98] sm:$0xff]  ;;  %v1579_v21 = vcombine.low %v274_v9, %v278_v10  ;;  %v1581_v22 = vcombine.low %v275_v12, %v279_v13  ;;  %v1588_v23 = vcombine.high %v282_v16, %v286_v17 }
  0x79   : > { %v1608_v45 = vcombine.high %v304_v39, %v308_v40  ;;  %v1610_v46 = vcombine.high %v305_v41, %v309_v42  ;;  %v312_v47 = vld [vmem:[#allocation5 + $0x180] sm:$0xff]  ;;  %v313_v49 = vld [vmem:[#allocation5 + $0x188] sm:$0xff]  ;;  %v1607_v51 = vcombine.low %v304_v39, %v308_v40  ;;  %v1609_v52 = vcombine.low %v305_v41, %v309_v42  ;;  %v287_v20 = vld [vmem:[#allocation5 + $0xb8] sm:$0xff]  ;;  %p1832_p11 = pnand %p1831_p9, %p1825_p10 }
  0x7a   : > { %743 = vmatpush1.bf16.msra.mxu0 %v1583_v27  ;;  %856 = vmatpush1.bf16.msra.mxu1 %v1585_v28  ;;  %v316_v48 = vld [vmem:[#allocation5 + $0x1a0] sm:$0xff]  ;;  %v317_v50 = vld [vmem:[#allocation5 + $0x1a8] sm:$0xff]  ;;  %v1590_v24 = vcombine.high %v283_v19, %v287_v20  ;;  %v290_v26 = vld [vmem:[#allocation5 + $0xd0] sm:$0xff]  ;;  %v1589_v31 = vcombine.low %v283_v19, %v287_v20 }
  0x7b   : > { %744 = vmatprep.subr.bf16.mxu0 %v1592_v29  ;;  %857 = vmatprep.subr.bf16.mxu1 %v1594_v30  ;;  %v1616_v53 = vcombine.high %v312_v47, %v316_v48  ;;  %v320_v54 = vld [vmem:[#allocation5 + $0x1c0] sm:$0xff]  ;;  %v1618_v55 = vcombine.high %v313_v49, %v317_v50  ;;  %v321_v57 = vld [vmem:[#allocation5 + $0x1c8] sm:$0xff]  ;;  %v1615_v59 = vcombine.low %v312_v47, %v316_v48  ;;  %v294_v27 = vld [vmem:[#allocation5 + $0xf0] sm:$0xff] }
  0x7c   : > { %v324_v56 = vld [vmem:[#allocation5 + $0x1e0] sm:$0xff]  ;;  %v325_v58 = vld [vmem:[#allocation5 + $0x1e8] sm:$0xff]  ;;  %v1617_v60 = vcombine.low %v313_v49, %v317_v50  ;;  %v291_v28 = vld [vmem:[#allocation5 + $0xd8] sm:$0xff]  ;;  %v1587_v30 = vcombine.low %v282_v16, %v286_v17  ;;  %v1596_v32 = vcombine.high %v290_v26, %v294_v27 }
  0x7d   : > { %v1624_v61 = vcombine.high %v320_v54, %v324_v56  ;;  %v1626_v62 = vcombine.high %v321_v57, %v325_v58  ;;  %v1623_v4 = vcombine.low %v320_v54, %v324_v56  ;;  %v1625_v5 = vcombine.low %v321_v57, %v325_v58  ;;  %v2145_v8 = vld [vmem:[%s2132_s28] sm:$0xff]   ;;  %v2152_v25 = vld [vmem:[%s2132_s28 + $0x8] sm:$0xff]   ;;  %v295_v29 = vld [vmem:[#allocation5 + $0xf8] sm:$0xff] }
  0x7e   : > { %745 = vmatpush1.bf16.msra.mxu0 %v1591_v35  ;;  %858 = vmatpush1.bf16.msra.mxu1 %v1593_v36  ;;  %v1598_v33 = vcombine.high %v291_v28, %v295_v29  ;;  %v298_v34 = vld [vmem:[#allocation5 + $0x110] sm:$0xff]  ;;  %v299_v36 = vld [vmem:[#allocation5 + $0x118] sm:$0xff]  ;;  %v1597_v39 = vcombine.low %v291_v28, %v295_v29  ;;  %v1733_v9 = vld [vmem:[%s2132_s28 + $0x28] sm:$0xff]  }
  0x7f   : > { %746 = vmatprep.subr.bf16.mxu0 %v1600_v37  ;;  %859 = vmatprep.subr.bf16.mxu1 %v1602_v38  ;;  %v302_v35 = vld [vmem:[#allocation5 + $0x130] sm:$0xff]  ;;  %v303_v37 = vld [vmem:[#allocation5 + $0x138] sm:$0xff]  ;;  %v1595_v38 = vcombine.low %v290_v26, %v294_v27 }
  0x80   : > { %v1604_v40 = vcombine.high %v298_v34, %v302_v35  ;;  %v2159_v41 = vld [vmem:[%s2132_s28 + $0x10] sm:$0xff]   ;;  %v1606_v42 = vcombine.high %v299_v36, %v303_v37  ;;  %v1603_v47 = vcombine.low %v298_v34, %v302_v35  ;;  %v1605_v48 = vcombine.low %v299_v36, %v303_v37  ;;  %v319_v54 = vld [vmem:[#allocation5 + $0x1b8] sm:$0xff] }
  0x81   : > { %v1731_v58 = vld [vmem:[%s2132_s28 + $0x18] sm:$0xff]   ;;  %v1734_v10 = vld [vmem:[%s2132_s28 + $0x30] sm:$0xff]  }
  0x82   : > { %747 = vmatpush1.bf16.msra.mxu0 %v1599_v43  ;;  %860 = vmatpush1.bf16.msra.mxu1 %v1601_v44  ;;  %v306_v43 = vld [vmem:[#allocation5 + $0x150] sm:$0xff]  ;;  %v327_v63 = vld [vmem:[#allocation5 + $0x1f8] sm:$0xff] }
  0x83   : > { %748 = vmatprep.subr.bf16.mxu0 %v1608_v45  ;;  %861 = vmatprep.subr.bf16.mxu1 %v1610_v46  ;;  %v310_v44 = vld [vmem:[#allocation5 + $0x170] sm:$0xff]  ;;  %v307_v45 = vld [vmem:[#allocation5 + $0x158] sm:$0xff] }
  0x84   : > { %v311_v46 = vld [vmem:[#allocation5 + $0x178] sm:$0xff]  ;;  %v1612_v49 = vcombine.high %v306_v43, %v310_v44 }
  0x85   : > { %v1614_v50 = vcombine.high %v307_v45, %v311_v46  ;;  %v1613_v56 = vcombine.low %v307_v45, %v311_v46 }
  0x86   : > { %749 = vmatpush1.bf16.msra.mxu0 %v1607_v51  ;;  %862 = vmatpush1.bf16.msra.mxu1 %v1609_v52  ;;  %v314_v51 = vld [vmem:[#allocation5 + $0x190] sm:$0xff] }
  0x87   : > { %750 = vmatprep.subr.bf16.mxu0 %v1616_v53  ;;  %863 = vmatprep.subr.bf16.mxu1 %v1618_v55  ;;  %v318_v52 = vld [vmem:[#allocation5 + $0x1b0] sm:$0xff]  ;;  %v315_v53 = vld [vmem:[#allocation5 + $0x198] sm:$0xff]  ;;  %v1611_v55 = vcombine.low %v306_v43, %v310_v44 }
  0x88   : > { %v1620_v57 = vcombine.high %v314_v51, %v318_v52  ;;  %v1619_v1 = vcombine.low %v314_v51, %v318_v52  ;;  %v1621_v2 = vcombine.low %v315_v53, %v319_v54 }
  0x8a   : > { %751 = vmatpush1.bf16.msra.mxu0 %v1615_v59  ;;  %864 = vmatpush1.bf16.msra.mxu1 %v1617_v60  ;;  %v1622_v59 = vcombine.high %v315_v53, %v319_v54  ;;  %v322_v60 = vld [vmem:[#allocation5 + $0x1d0] sm:$0xff] }
  0x8b   : > { %752 = vmatprep.subr.bf16.mxu0 %v1624_v61  ;;  %865 = vmatprep.subr.bf16.mxu1 %v1626_v62  ;;  %v326_v61 = vld [vmem:[#allocation5 + $0x1f0] sm:$0xff]  ;;  %v323_v62 = vld [vmem:[#allocation5 + $0x1d8] sm:$0xff] }
  0x8c   : > { %v1628_v3 = vcombine.high %v322_v60, %v326_v61 }
  0x8e   : > { %753 = vmatpush1.bf16.msra.mxu0 %v1623_v4  ;;  %866 = vmatpush1.bf16.msra.mxu1 %v1625_v5  ;;  %v1630_v4 = vcombine.high %v323_v62, %v327_v63  ;;  %v1627_v5 = vcombine.low %v322_v60, %v326_v61 }
  0x8f   : > { %964 = vmatprep.subr.bf16.mxu0 %v1572_v6  ;;  %1077 = vmatprep.subr.bf16.mxu1 %v1574_v7  ;;  %v1629_v6 = vcombine.low %v323_v62, %v327_v63  ;;  %v1732_v7 = vld [vmem:[%s2132_s28 + $0x20] sm:$0xff]  }
  0x91   : > { %771 = vmatmul.mubr.bf16.vlgmr.msra.gmra.mrb[0].mxu0 %v2145_v8  ;;  %884 = vmatmul.mubr.bf16.vlgmr.msra.gmra.mrb[0].mxu1 %v2145_v8 }
  0x92   : > { %965 = vmatpush1.bf16.msra.mxu0 %v1571_v11  ;;  %1078 = vmatpush1.bf16.msra.mxu1 %v1573_v14  ;;  %v1735_v11 = vld [vmem:[%s2132_s28 + $0x38] sm:$0xff]   ;;  %v2203_v14 = vld [vmem:[#allocation7] sm:$0xff] }
  0x93   : > { %780 = vmatprep.mubr.bf16.mxu0 %v1917_v0  ;;  %893 = vmatprep.mubr.bf16.mxu1 %v1917_v0 }
  0x94   : > { %966 = vmatprep.subr.bf16.mxu0 %v1580_v15  ;;  %1079 = vmatprep.subr.bf16.mxu1 %v1582_v18 }
  0x96   : > { %967 = vmatpush1.bf16.msra.mxu0 %v1579_v21  ;;  %1080 = vmatpush1.bf16.msra.mxu1 %v1581_v22 }
  0x97   : > { %968 = vmatprep.subr.bf16.mxu0 %v1588_v23  ;;  %1081 = vmatprep.subr.bf16.mxu1 %v1590_v24 }
  0x99   : > { %781 = vmatmul.mubr.bf16.gmra.mrb[4].mxu0 %v2152_v25  ;;  %894 = vmatmul.mubr.bf16.gmra.mrb[4].mxu1 %v2152_v25 }
  0x9a   : > { %790 = vmatprep.mubr.bf16.mxu0 %v1917_v0  ;;  %903 = vmatprep.mubr.bf16.mxu1 %v1917_v0 }
  0x9b   : > { %969 = vmatpush1.bf16.msra.mxu0 %v1587_v30  ;;  %1082 = vmatpush1.bf16.msra.mxu1 %v1589_v31 }
  0x9c   : > { %970 = vmatprep.subr.bf16.mxu0 %v1596_v32  ;;  %1083 = vmatprep.subr.bf16.mxu1 %v1598_v33 }
  0x9f   : > { %971 = vmatpush1.bf16.msra.mxu0 %v1595_v38  ;;  %1084 = vmatpush1.bf16.msra.mxu1 %v1597_v39 }
  0xa0   : > { %972 = vmatprep.subr.bf16.mxu0 %v1604_v40  ;;  %1085 = vmatprep.subr.bf16.mxu1 %v1606_v42 }
  0xa1   : > { %791 = vmatmul.mubr.bf16.gmra.mrb[8].mxu0 %v2159_v41  ;;  %904 = vmatmul.mubr.bf16.gmra.mrb[8].mxu1 %v2159_v41 }
  0xa2   : > { %800 = vmatprep.mubr.bf16.mxu0 %v1917_v0  ;;  %913 = vmatprep.mubr.bf16.mxu1 %v1917_v0 }
  0xa3   : > { %973 = vmatpush1.bf16.msra.mxu0 %v1603_v47  ;;  %1086 = vmatpush1.bf16.msra.mxu1 %v1605_v48 }
  0xa4   : > { %974 = vmatprep.subr.bf16.mxu0 %v1612_v49  ;;  %1087 = vmatprep.subr.bf16.mxu1 %v1614_v50 }
  0xa7   : > { %975 = vmatpush1.bf16.msra.mxu0 %v1611_v55  ;;  %1088 = vmatpush1.bf16.msra.mxu1 %v1613_v56 }
  0xa8   : > { %976 = vmatprep.subr.bf16.mxu0 %v1620_v57  ;;  %1089 = vmatprep.subr.bf16.mxu1 %v1622_v59 }
  0xa9   : > { %801 = vmatmul.mubr.bf16.gmra.mrb[12].mxu0 %v1731_v58  ;;  %914 = vmatmul.mubr.bf16.gmra.mrb[12].mxu1 %v1731_v58 }
  0xaa   : > { %810 = vmatprep.mubr.bf16.mxu0 %v1917_v0  ;;  %923 = vmatprep.mubr.bf16.mxu1 %v1917_v0 }
  0xab   : > { %977 = vmatpush1.bf16.msra.mxu0 %v1619_v1  ;;  %1090 = vmatpush1.bf16.msra.mxu1 %v1621_v2 }
  0xac   : > { %978 = vmatprep.subr.bf16.mxu0 %v1628_v3  ;;  %1091 = vmatprep.subr.bf16.mxu1 %v1630_v4 }
  0xaf   : > { %979 = vmatpush1.bf16.msra.mxu0 %v1627_v5  ;;  %1092 = vmatpush1.bf16.msra.mxu1 %v1629_v6 }
  0xb1   : > { %811 = vmatmul.mubr.bf16.gmra.mrb[16].mxu0 %v1732_v7  ;;  %924 = vmatmul.mubr.bf16.gmra.mrb[16].mxu1 %v1732_v7 }
  0xb2   : > { %820 = vmatprep.mubr.bf16.mxu0 %v1917_v0  ;;  %933 = vmatprep.mubr.bf16.mxu1 %v1917_v0 }
  0xb9   : > { %821 = vmatmul.mubr.bf16.gmra.mrb[20].mxu0 %v1733_v9  ;;  %934 = vmatmul.mubr.bf16.gmra.mrb[20].mxu1 %v1733_v9 }
  0xba   : > { %830 = vmatprep.mubr.bf16.mxu0 %v1917_v0  ;;  %943 = vmatprep.mubr.bf16.mxu1 %v1917_v0 }
  0xc1   : > { %831 = vmatmul.mubr.bf16.gmra.mrb[24].mxu0 %v1734_v10  ;;  %944 = vmatmul.mubr.bf16.gmra.mrb[24].mxu1 %v1734_v10 }
  0xc2   : > { %840 = vmatprep.mubr.bf16.mxu0 %v1917_v0  ;;  %953 = vmatprep.mubr.bf16.mxu1 %v1917_v0 }
  0xc9   : > { %841 = vmatmul.mubr.bf16.gmra.mrb[28].mxu0 %v1735_v11  ;;  %954 = vmatmul.mubr.bf16.gmra.mrb[28].mxu1 %v1735_v11 }
  0xca   : > { %996 = vmatprep.mubr.bf16.mxu0 %v1917_v0  ;;  %1109 = vmatprep.mubr.bf16.mxu1 %v1917_v0 }
  0xd1   : > { %997 = vmatmul.mubr.bf16.vlgmr.msra.gmra.mrb[32].mxu0 %v2145_v8  ;;  %1110 = vmatmul.mubr.bf16.vlgmr.msra.gmra.mrb[32].mxu1 %v2145_v8  ;;  %v330_v8 = vlaneseq }
  0xd2   : > { %1006 = vmatprep.mubr.bf16.mxu0 %v1917_v0  ;;  %1119 = vmatprep.mubr.bf16.mxu1 %v1917_v0 }
  0xd3   : > { %v2200_v12 = vshrl.u32 %v330_v8, 7 }
  0xd5   : > { %v332_v13 = vsub.s32 0, %v2200_v12  ;;  %v340_v15 = vsub.s32 2, %v2200_v12  ;;  %v336_v16 = vsub.s32 1, %v2200_v12  ;;  %v344_v17 = vsub.s32 3, %v2200_v12 }
  0xd7   : > { %v2209_v18 = vrot.slane %v2203_v14, %v332_v13  ;;  %v2215_v20 = vrot.slane %v2203_v14, %v336_v16  ;;  %v2218_v23 = vrot.slane %v2203_v14, %v344_v17 }
  0xd9   : > { %1007 = vmatmul.mubr.bf16.gmra.mrb[36].mxu0 %v2152_v25  ;;  %1120 = vmatmul.mubr.bf16.gmra.mrb[36].mxu1 %v2152_v25 }
  0xda   : > { %1016 = vmatprep.mubr.bf16.mxu0 %v1917_v0  ;;  %1129 = vmatprep.mubr.bf16.mxu1 %v1917_v0 }
  0xe1   : > { %1017 = vmatmul.mubr.bf16.gmra.mrb[40].mxu0 %v2159_v41  ;;  %1130 = vmatmul.mubr.bf16.gmra.mrb[40].mxu1 %v2159_v41 }
  0xe2   : > { %1026 = vmatprep.mubr.bf16.mxu0 %v1917_v0  ;;  %1139 = vmatprep.mubr.bf16.mxu1 %v1917_v0 }
  0xe9   : > { %1027 = vmatmul.mubr.bf16.gmra.mrb[44].mxu0 %v1731_v58  ;;  %1140 = vmatmul.mubr.bf16.gmra.mrb[44].mxu1 %v1731_v58 }
  0xea   : > { %1036 = vmatprep.mubr.bf16.mxu0 %v1917_v0  ;;  %1149 = vmatprep.mubr.bf16.mxu1 %v1917_v0 }
  0xf1   : > { %1037 = vmatmul.mubr.bf16.gmra.mrb[48].mxu0 %v1732_v7  ;;  %1150 = vmatmul.mubr.bf16.gmra.mrb[48].mxu1 %v1732_v7 }
  0xf2   : > { %1046 = vmatprep.mubr.bf16.mxu0 %v1917_v0  ;;  %1159 = vmatprep.mubr.bf16.mxu1 %v1917_v0 }
  0xf9   : > { %1047 = vmatmul.mubr.bf16.gmra.mrb[52].mxu0 %v1733_v9  ;;  %1160 = vmatmul.mubr.bf16.gmra.mrb[52].mxu1 %v1733_v9 }
  0xfa   : > { %1056 = vmatprep.mubr.bf16.mxu0 %v1917_v0  ;;  %1169 = vmatprep.mubr.bf16.mxu1 %v1917_v0 }
 0x101   : > { %1057 = vmatmul.mubr.bf16.gmra.mrb[56].mxu0 %v1734_v10  ;;  %1170 = vmatmul.mubr.bf16.gmra.mrb[56].mxu1 %v1734_v10 }
 0x102   : > { %1066 = vmatprep.mubr.bf16.mxu0 %v1917_v0  ;;  %1179 = vmatprep.mubr.bf16.mxu1 %v1917_v0  ;;  %v2212_v0 = vrot.slane %v2203_v14, %v340_v15 }
 0x109   : > { %1067 = vmatmul.mubr.bf16.gmra.mrb[60].mxu0 %v1735_v11  ;;  %1180 = vmatmul.mubr.bf16.gmra.mrb[60].mxu1 %v1735_v11 }
 0x164   : > { %v772_v19 = vpop.f32.mrb[0].mxu0  ;;  %v885_v21 = vpop.f32.mrb[0].mxu1 }
 0x165   : > { %v774_v22 = vpop.f32.mrb[1].mxu0  ;;  %v887_v24 = vpop.f32.mrb[1].mxu1  ;;  %v773_v26 = vadd.f32 %v772_v19, %v2209_v18  ;;  %v886_v30 = vadd.f32 %v885_v21, %v2212_v0 }
 0x166   : > { %v776_v25 = vpop.f32.mrb[2].mxu0  ;;  %v889_v28 = vpop.f32.mrb[2].mxu1  ;;  %v775_v31 = vadd.f32 %v774_v22, %v2215_v20  ;;  %v888_v35 = vadd.f32 %v887_v24, %v2218_v23 }
 0x167   : > { %v777_v27 = vadd.f32 %v776_v25, %v2209_v18  ;;  %v778_v29 = vpop.f32.mrb[3].mxu0  ;;  %v890_v32 = vadd.f32 %v889_v28, %v2212_v0  ;;  %v891_v34 = vpop.f32.mrb[3].mxu1 }
 0x168   : > { %v779_v33 = vadd.f32 %v778_v29, %v2215_v20  ;;  %v892_v37 = vadd.f32 %v891_v34, %v2218_v23 }
 0x169   : > { %v1190_v36 = vmax.f32 %v773_v26, %v777_v27  ;;  %v1232_v38 = vmax.f32 %v886_v30, %v890_v32 }
 0x16a   : > { %v1211_v39 = vmax.f32 %v775_v31, %v779_v33  ;;  %v1253_v40 = vmax.f32 %v888_v35, %v892_v37 }
 0x16c   : > { %v782_v41 = vpop.f32.mrb[4].mxu0  ;;  %v895_v43 = vpop.f32.mrb[4].mxu1 }
 0x16d   : > { %v783_v42 = vadd.f32 %v782_v41, %v2209_v18  ;;  %v784_v44 = vpop.f32.mrb[5].mxu0  ;;  %v896_v45 = vadd.f32 %v895_v43, %v2212_v0  ;;  %v897_v47 = vpop.f32.mrb[5].mxu1 }
 0x16e   : > { %v785_v46 = vadd.f32 %v784_v44, %v2215_v20  ;;  %v786_v48 = vpop.f32.mrb[6].mxu0  ;;  %v898_v50 = vadd.f32 %v897_v47, %v2218_v23  ;;  %v899_v52 = vpop.f32.mrb[6].mxu1 }
 0x16f   : > { %v1191_v49 = vmax.f32 %v1190_v36, %v783_v42  ;;  %v787_v51 = vadd.f32 %v786_v48, %v2209_v18  ;;  %v788_v53 = vpop.f32.mrb[7].mxu0  ;;  %v1233_v54 = vmax.f32 %v1232_v38, %v896_v45  ;;  %v900_v56 = vadd.f32 %v899_v52, %v2212_v0  ;;  %v901_v58 = vpop.f32.mrb[7].mxu1 }
 0x170   : > { %v1212_v55 = vmax.f32 %v1211_v39, %v785_v46  ;;  %v789_v57 = vadd.f32 %v788_v53, %v2215_v20  ;;  %v1254_v59 = vmax.f32 %v1253_v40, %v898_v50  ;;  %v902_v61 = vadd.f32 %v901_v58, %v2218_v23 }
 0x171   : > { %v1192_v60 = vmax.f32 %v1191_v49, %v787_v51  ;;  %v1234_v62 = vmax.f32 %v1233_v54, %v900_v56 }
 0x172   : > { %v1213_v63 = vmax.f32 %v1212_v55, %v789_v57  ;;  %v1255_v1 = vmax.f32 %v1254_v59, %v902_v61 }
 0x174   : > { %v792_v2 = vpop.f32.mrb[8].mxu0  ;;  %v905_v4 = vpop.f32.mrb[8].mxu1 }
 0x175   : > { %v793_v3 = vadd.f32 %v792_v2, %v2209_v18  ;;  %v794_v5 = vpop.f32.mrb[9].mxu0  ;;  %v906_v6 = vadd.f32 %v905_v4, %v2212_v0  ;;  %v907_v9 = vpop.f32.mrb[9].mxu1 }
 0x176   : > { %v795_v7 = vadd.f32 %v794_v5, %v2215_v20  ;;  %v796_v10 = vpop.f32.mrb[10].mxu0  ;;  %v908_v8 = vadd.f32 %v907_v9, %v2218_v23  ;;  %v909_v15 = vpop.f32.mrb[10].mxu1 }
 0x177   : > { %v1193_v11 = vmax.f32 %v1192_v60, %v793_v3  ;;  %v797_v13 = vadd.f32 %v796_v10, %v2209_v18  ;;  %v798_v16 = vpop.f32.mrb[11].mxu0  ;;  %v1235_v17 = vmax.f32 %v1234_v62, %v906_v6  ;;  %v910_v21 = vadd.f32 %v909_v15, %v2212_v0  ;;  %v911_v24 = vpop.f32.mrb[11].mxu1 }
 0x178   : > { %v1214_v19 = vmax.f32 %v1213_v63, %v795_v7  ;;  %v799_v22 = vadd.f32 %v798_v16, %v2215_v20  ;;  %v1256_v25 = vmax.f32 %v1255_v1, %v908_v8  ;;  %v912_v27 = vadd.f32 %v911_v24, %v2218_v23 }
 0x179   : > { %v1194_v26 = vmax.f32 %v1193_v11, %v797_v13  ;;  %v1236_v28 = vmax.f32 %v1235_v17, %v910_v21 }
 0x17a   : > { %v1215_v29 = vmax.f32 %v1214_v19, %v799_v22  ;;  %v1257_v30 = vmax.f32 %v1256_v25, %v912_v27 }
 0x17c   : > { %v802_v31 = vpop.f32.mrb[12].mxu0  ;;  %v915_v33 = vpop.f32.mrb[12].mxu1 }
 0x17d   : > { %v803_v32 = vadd.f32 %v802_v31, %v2209_v18  ;;  %v804_v34 = vpop.f32.mrb[13].mxu0  ;;  %v916_v35 = vadd.f32 %v915_v33, %v2212_v0  ;;  %v917_v37 = vpop.f32.mrb[13].mxu1 }
 0x17e   : > { %v805_v36 = vadd.f32 %v804_v34, %v2215_v20  ;;  %v806_v38 = vpop.f32.mrb[14].mxu0  ;;  %v918_v40 = vadd.f32 %v917_v37, %v2218_v23  ;;  %v919_v42 = vpop.f32.mrb[14].mxu1 }
 0x17f   : > { %v1195_v39 = vmax.f32 %v1194_v26, %v803_v32  ;;  %v807_v41 = vadd.f32 %v806_v38, %v2209_v18  ;;  %v808_v43 = vpop.f32.mrb[15].mxu0  ;;  %v1237_v44 = vmax.f32 %v1236_v28, %v916_v35  ;;  %v920_v46 = vadd.f32 %v919_v42, %v2212_v0  ;;  %v921_v48 = vpop.f32.mrb[15].mxu1 }
 0x180   : > { %v1216_v45 = vmax.f32 %v1215_v29, %v805_v36  ;;  %v809_v47 = vadd.f32 %v808_v43, %v2215_v20  ;;  %v1258_v49 = vmax.f32 %v1257_v30, %v918_v40  ;;  %v922_v51 = vadd.f32 %v921_v48, %v2218_v23 }
 0x181   : > { %v1196_v50 = vmax.f32 %v1195_v39, %v807_v41  ;;  %v1238_v52 = vmax.f32 %v1237_v44, %v920_v46 }
 0x182   : > { %v1217_v53 = vmax.f32 %v1216_v45, %v809_v47  ;;  %v1259_v54 = vmax.f32 %v1258_v49, %v922_v51 }
 0x184   : > { %v812_v55 = vpop.f32.mrb[16].mxu0  ;;  %v925_v57 = vpop.f32.mrb[16].mxu1 }
 0x185   : > { %v813_v56 = vadd.f32 %v812_v55, %v2209_v18  ;;  %v814_v58 = vpop.f32.mrb[17].mxu0  ;;  %v926_v59 = vadd.f32 %v925_v57, %v2212_v0  ;;  %v927_v61 = vpop.f32.mrb[17].mxu1 }
 0x186   : > { %v815_v60 = vadd.f32 %v814_v58, %v2215_v20  ;;  %v816_v62 = vpop.f32.mrb[18].mxu0  ;;  %v928_v1 = vadd.f32 %v927_v61, %v2218_v23  ;;  %v929_v3 = vpop.f32.mrb[18].mxu1 }
 0x187   : > { %v1197_v63 = vmax.f32 %v1196_v50, %v813_v56  ;;  %v817_v2 = vadd.f32 %v816_v62, %v2209_v18  ;;  %v818_v4 = vpop.f32.mrb[19].mxu0  ;;  %v1239_v5 = vmax.f32 %v1238_v52, %v926_v59  ;;  %v930_v7 = vadd.f32 %v929_v3, %v2212_v0  ;;  %v931_v10 = vpop.f32.mrb[19].mxu1 }
 0x188   : > { %v1218_v6 = vmax.f32 %v1217_v53, %v815_v60  ;;  %v819_v9 = vadd.f32 %v818_v4, %v2215_v20  ;;  %v1260_v11 = vmax.f32 %v1259_v54, %v928_v1  ;;  %v932_v13 = vadd.f32 %v931_v10, %v2218_v23 }
 0x189   : > { %v1198_v8 = vmax.f32 %v1197_v63, %v817_v2  ;;  %v1240_v15 = vmax.f32 %v1239_v5, %v930_v7 }
 0x18a   : > { %v1219_v16 = vmax.f32 %v1218_v6, %v819_v9  ;;  %v1261_v17 = vmax.f32 %v1260_v11, %v932_v13  ;;  %v348_v6 = vsub.s32 4, %v2200_v12  ;;  %v352_v13 = vsub.s32 5, %v2200_v12 }
 0x18c   : > { %v822_v19 = vpop.f32.mrb[20].mxu0  ;;  %v935_v22 = vpop.f32.mrb[20].mxu1 }
 0x18d   : > { %v823_v21 = vadd.f32 %v822_v19, %v2209_v18  ;;  %v824_v24 = vpop.f32.mrb[21].mxu0  ;;  %v936_v25 = vadd.f32 %v935_v22, %v2212_v0  ;;  %v937_v27 = vpop.f32.mrb[21].mxu1 }
 0x18e   : > { %v825_v26 = vadd.f32 %v824_v24, %v2215_v20  ;;  %v826_v28 = vpop.f32.mrb[22].mxu0  ;;  %v938_v30 = vadd.f32 %v937_v27, %v2218_v23  ;;  %v939_v32 = vpop.f32.mrb[22].mxu1 }
 0x18f   : > { %v1199_v29 = vmax.f32 %v1198_v8, %v823_v21  ;;  %v827_v31 = vadd.f32 %v826_v28, %v2209_v18  ;;  %v828_v33 = vpop.f32.mrb[23].mxu0  ;;  %v1241_v34 = vmax.f32 %v1240_v15, %v936_v25  ;;  %v940_v36 = vadd.f32 %v939_v32, %v2212_v0  ;;  %v941_v38 = vpop.f32.mrb[23].mxu1 }
 0x190   : > { %v1220_v35 = vmax.f32 %v1219_v16, %v825_v26  ;;  %v829_v37 = vadd.f32 %v828_v33, %v2215_v20  ;;  %v1262_v39 = vmax.f32 %v1261_v17, %v938_v30  ;;  %v942_v41 = vadd.f32 %v941_v38, %v2218_v23 }
 0x191   : > { %v1200_v40 = vmax.f32 %v1199_v29, %v827_v31  ;;  %v1242_v42 = vmax.f32 %v1241_v34, %v940_v36  ;;  %v356_v8 = vsub.s32 6, %v2200_v12  ;;  %v360_v21 = vsub.s32 7, %v2200_v12 }
 0x192   : > { %v1221_v43 = vmax.f32 %v1220_v35, %v829_v37  ;;  %v1263_v44 = vmax.f32 %v1262_v39, %v942_v41  ;;  %v2286_v28 = vrot.slane %v2203_v14, %v348_v6  ;;  %v1918_v36 = vmov 1966171168  }
 0x193   : > { %v1377_v37 = vunpack.c.l.s4 %v1918_v36  ;;  %v2295_v41 = vrot.slane %v2203_v14, %v352_v13 }
 0x194   : > { %v832_v45 = vpop.f32.mrb[24].mxu0  ;;  %v945_v47 = vpop.f32.mrb[24].mxu1 }
 0x195   : > { %v833_v46 = vadd.f32 %v832_v45, %v2209_v18  ;;  %v834_v48 = vpop.f32.mrb[25].mxu0  ;;  %v946_v49 = vadd.f32 %v945_v47, %v2212_v0  ;;  %v947_v51 = vpop.f32.mrb[25].mxu1  ;;  %v1378_v47 = vunpack.c.0.s8 %v1377_v37 }
 0x196   : > { %v835_v50 = vadd.f32 %v834_v48, %v2215_v20  ;;  %v836_v52 = vpop.f32.mrb[26].mxu0  ;;  %v948_v54 = vadd.f32 %v947_v51, %v2218_v23  ;;  %v949_v56 = vpop.f32.mrb[26].mxu1 }
 0x197   : > { %v1201_v53 = vmax.f32 %v1200_v40, %v833_v46  ;;  %v837_v55 = vadd.f32 %v836_v52, %v2209_v18  ;;  %v838_v57 = vpop.f32.mrb[27].mxu0  ;;  %v1243_v58 = vmax.f32 %v1242_v42, %v946_v49  ;;  %v950_v60 = vadd.f32 %v949_v56, %v2212_v0  ;;  %v951_v62 = vpop.f32.mrb[27].mxu1 }
 0x198   : > { %v1222_v59 = vmax.f32 %v1221_v43, %v835_v50  ;;  %v839_v61 = vadd.f32 %v838_v57, %v2215_v20  ;;  %v1264_v63 = vmax.f32 %v1263_v44, %v948_v54  ;;  %v952_v2 = vadd.f32 %v951_v62, %v2218_v23 }
 0x199   : > { %v1202_v1 = vmax.f32 %v1201_v53, %v837_v55  ;;  %v1244_v3 = vmax.f32 %v1243_v58, %v950_v60  ;;  %v2292_v40 = vrot.slane %v2203_v14, %v356_v8 }
 0x19a   : > { %v1223_v4 = vmax.f32 %v1222_v59, %v839_v61  ;;  %v1265_v5 = vmax.f32 %v1264_v63, %v952_v2 }
 0x19c   : > { %v842_v7 = vpop.f32.mrb[28].mxu0  ;;  %v955_v10 = vpop.f32.mrb[28].mxu1 }
 0x19d   : > { %v843_v9 = vadd.f32 %v842_v7, %v2209_v18  ;;  %v844_v11 = vpop.f32.mrb[29].mxu0  ;;  %v956_v15 = vadd.f32 %v955_v10, %v2212_v0  ;;  %v957_v17 = vpop.f32.mrb[29].mxu1 }
 0x19e   : > { %v845_v16 = vadd.f32 %v844_v11, %v2215_v20  ;;  %v846_v19 = vpop.f32.mrb[30].mxu0  ;;  %v958_v24 = vadd.f32 %v957_v17, %v2218_v23  ;;  %v959_v26 = vpop.f32.mrb[30].mxu1 }
 0x19f   : > { %v1203_v22 = vmax.f32 %v1202_v1, %v843_v9  ;;  %v847_v25 = vadd.f32 %v846_v19, %v2209_v18  ;;  %v848_v27 = vpop.f32.mrb[31].mxu0  ;;  %v1245_v29 = vmax.f32 %v1244_v3, %v956_v15  ;;  %v960_v31 = vadd.f32 %v959_v26, %v2212_v0  ;;  %v961_v33 = vpop.f32.mrb[31].mxu1 }
 0x1a0   : > { %v1224_v30 = vmax.f32 %v1223_v4, %v845_v16  ;;  %v849_v32 = vadd.f32 %v848_v27, %v2215_v20  ;;  %v1266_v34 = vmax.f32 %v1265_v5, %v958_v24  ;;  %v962_v38 = vadd.f32 %v961_v33, %v2218_v23 }
 0x1a1   : > { %v1204_v35 = vmax.f32 %v1203_v22, %v847_v25  ;;  %v1246_v39 = vmax.f32 %v1245_v29, %v960_v31  ;;  %v2298_v0 = vrot.slane %v2203_v14, %v360_v21  ;;  %v2309_v24 = vsub.s32 %v1378_v47, %v2200_v12 }
 0x1a2   : > { %v1225_v18 = vmax.f32 %v1224_v30, %v849_v32  ;;  %v1267_v43 = vmax.f32 %v1266_v34, %v962_v38 }
 0x1a3   : > { %v1205_v42 = vrot.slane %v1204_v35, 4  ;;  %v1247_v20 = vrot.slane %v1246_v39, 4 }
 0x1a4   : > { %v1226_v44 = vrot.slane %v1225_v18, 4  ;;  %v998_v45 = vpop.f32.mrb[32].mxu0  ;;  %v1268_v48 = vrot.slane %v1267_v43, 4  ;;  %v1111_v49 = vpop.f32.mrb[32].mxu1 }
 0x1a5   : > { %v1206_v46 = vmax.f32 %v1204_v35, %v1205_v42  ;;  %v999_v23 = vadd.f32 %v998_v45, %v2286_v28  ;;  %v1000_v50 = vpop.f32.mrb[33].mxu0  ;;  %v1248_v51 = vmax.f32 %v1246_v39, %v1247_v20  ;;  %v1112_v53 = vadd.f32 %v1111_v49, %v2292_v40  ;;  %v1113_v55 = vpop.f32.mrb[33].mxu1 }
 0x1a6   : > { %v1227_v52 = vmax.f32 %v1225_v18, %v1226_v44  ;;  %v1001_v54 = vadd.f32 %v1000_v50, %v2295_v41  ;;  %v1002_v56 = vpop.f32.mrb[34].mxu0  ;;  %v1269_v57 = vmax.f32 %v1267_v43, %v1268_v48  ;;  %v1114_v58 = vadd.f32 %v1113_v55, %v2298_v0  ;;  %v1115_v60 = vpop.f32.mrb[34].mxu1 }
 0x1a7   : > { %v1207_v14 = vrot.slane %v1206_v46, 2  ;;  %v1003_v59 = vadd.f32 %v1002_v56, %v2286_v28  ;;  %v1004_v61 = vpop.f32.mrb[35].mxu0  ;;  %v1249_v62 = vrot.slane %v1248_v51, 2  ;;  %v1116_v1 = vadd.f32 %v1115_v60, %v2292_v40  ;;  %v1117_v3 = vpop.f32.mrb[35].mxu1 }
 0x1a8   : > { %v1228_v63 = vrot.slane %v1227_v52, 2  ;;  %v1005_v2 = vadd.f32 %v1004_v61, %v2295_v41  ;;  %v1270_v5 = vrot.slane %v1269_v57, 2  ;;  %v1118_v7 = vadd.f32 %v1117_v3, %v2298_v0 }
 0x1a9   : > { %v1208_v4 = vmax.f32 %v1206_v46, %v1207_v14  ;;  %v1274_v6 = vmax.f32 %v999_v23, %v1003_v59  ;;  %v1250_v9 = vmax.f32 %v1248_v51, %v1249_v62  ;;  %v1316_v11 = vmax.f32 %v1112_v53, %v1116_v1 }
 0x1aa   : > { %v1229_v10 = vmax.f32 %v1227_v52, %v1228_v63  ;;  %v1295_v8 = vmax.f32 %v1001_v54, %v1005_v2  ;;  %v1271_v15 = vmax.f32 %v1269_v57, %v1270_v5  ;;  %v1337_v16 = vmax.f32 %v1114_v58, %v1118_v7 }
 0x1ab   : > { %v1209_v13 = vrot.slane %v1208_v4, 1  ;;  %v1251_v17 = vrot.slane %v1250_v9, 1 }
 0x1ac   : > { %v1230_v19 = vrot.slane %v1229_v10, 1  ;;  %v1008_v21 = vpop.f32.mrb[36].mxu0  ;;  %v1272_v25 = vrot.slane %v1271_v15, 1  ;;  %v1121_v27 = vpop.f32.mrb[36].mxu1 }
 0x1ad   : > { %v1210_v22 = vmax.f32 %v1208_v4, %v1209_v13  ;;  %v1009_v26 = vadd.f32 %v1008_v21, %v2286_v28  ;;  %v1010_v29 = vpop.f32.mrb[37].mxu0  ;;  %v1252_v30 = vmax.f32 %v1250_v9, %v1251_v17  ;;  %v1122_v32 = vadd.f32 %v1121_v27, %v2292_v40  ;;  %v1123_v34 = vpop.f32.mrb[37].mxu1 }
 0x1ae   : > { %v1231_v31 = vmax.f32 %v1229_v10, %v1230_v19  ;;  %v1011_v33 = vadd.f32 %v1010_v29, %v2295_v41  ;;  %v1012_v35 = vpop.f32.mrb[38].mxu0  ;;  %v1273_v36 = vmax.f32 %v1271_v15, %v1272_v25  ;;  %v1124_v38 = vadd.f32 %v1123_v34, %v2298_v0  ;;  %v1125_v39 = vpop.f32.mrb[38].mxu1 }
 0x1af   : > { %v1275_v37 = vmax.f32 %v1274_v6, %v1009_v26  ;;  %v1013_v12 = vadd.f32 %v1012_v35, %v2286_v28  ;;  %v1014_v18 = vpop.f32.mrb[39].mxu0  ;;  %v1317_v43 = vmax.f32 %v1316_v11, %v1122_v32  ;;  %v1126_v44 = vadd.f32 %v1125_v39, %v2292_v40  ;;  %v1127_v45 = vpop.f32.mrb[39].mxu1 }
 0x1b0   : > { %v1372_v42 = vcombine.low %v1210_v22, %v1231_v31  ;;  %v1296_v20 = vmax.f32 %v1295_v8, %v1011_v33  ;;  %v1373_v46 = vcombine.low %v1252_v30, %v1273_v36  ;;  %v1338_v47 = vmax.f32 %v1337_v16, %v1124_v38 }
 0x1b1   : > { %v1276_v48 = vmax.f32 %v1275_v37, %v1013_v12  ;;  %v1015_v23 = vadd.f32 %v1014_v18, %v2295_v41  ;;  %v1318_v50 = vmax.f32 %v1317_v43, %v1126_v44  ;;  %v1128_v51 = vadd.f32 %v1127_v45, %v2298_v0 }
 0x1b2   : > { %v2319_v49 = vrot.slane %v1372_v42, %v2309_v24  ;;  %v2323_v52 = vrot.slane %v1373_v46, %v2309_v24 }
 0x1b3   : > { %v1297_v53 = vmax.f32 %v1296_v20, %v1015_v23  ;;  %v1339_v54 = vmax.f32 %v1338_v47, %v1128_v51 }
 0x1b4   : > { %v1018_v55 = vpop.f32.mrb[40].mxu0  ;;  %v1404_v56 = vcombine.low %v2319_v49, %v2323_v52  ;;  %v1131_v57 = vpop.f32.mrb[40].mxu1 }
 0x1b5   : > { %v1019_v14 = vadd.f32 %v1018_v55, %v2286_v28  ;;  %v1020_v58 = vpop.f32.mrb[41].mxu0  ;;  %v1132_v59 = vadd.f32 %v1131_v57, %v2292_v40  ;;  %v1133_v61 = vpop.f32.mrb[41].mxu1 }
 0x1b6   : > { %v1021_v60 = vadd.f32 %v1020_v58, %v2295_v41  ;;  %v1022_v62 = vpop.f32.mrb[42].mxu0  ;;  %v1134_v1 = vadd.f32 %v1133_v61, %v2298_v0  ;;  %v1135_v3 = vpop.f32.mrb[42].mxu1 }
 0x1b7   : > { %v1277_v63 = vmax.f32 %v1276_v48, %v1019_v14  ;;  %v1023_v2 = vadd.f32 %v1022_v62, %v2286_v28  ;;  %v1024_v4 = vpop.f32.mrb[43].mxu0  ;;  %v1319_v5 = vmax.f32 %v1318_v50, %v1132_v59  ;;  %v1136_v7 = vadd.f32 %v1135_v3, %v2292_v40  ;;  %v1137_v10 = vpop.f32.mrb[43].mxu1 }
 0x1b8   : > { %v1298_v6 = vmax.f32 %v1297_v53, %v1021_v60  ;;  %v1025_v9 = vadd.f32 %v1024_v4, %v2295_v41  ;;  %v1340_v11 = vmax.f32 %v1339_v54, %v1134_v1  ;;  %v1138_v13 = vadd.f32 %v1137_v10, %v2298_v0 }
 0x1b9   : > { %v1278_v8 = vmax.f32 %v1277_v63, %v1023_v2  ;;  %v1320_v15 = vmax.f32 %v1319_v5, %v1136_v7 }
 0x1ba   : > { %v1299_v16 = vmax.f32 %v1298_v6, %v1025_v9  ;;  %v1341_v17 = vmax.f32 %v1340_v11, %v1138_v13 }
 0x1bc   : > { %v1028_v19 = vpop.f32.mrb[44].mxu0  ;;  %v1141_v22 = vpop.f32.mrb[44].mxu1 }
 0x1bd   : > { %v1029_v21 = vadd.f32 %v1028_v19, %v2286_v28  ;;  %v1030_v25 = vpop.f32.mrb[45].mxu0  ;;  %v1142_v26 = vadd.f32 %v1141_v22, %v2292_v40  ;;  %v1143_v29 = vpop.f32.mrb[45].mxu1 }
 0x1be   : > { %v1031_v27 = vadd.f32 %v1030_v25, %v2295_v41  ;;  %v1032_v30 = vpop.f32.mrb[46].mxu0  ;;  %v1144_v32 = vadd.f32 %v1143_v29, %v2298_v0  ;;  %v1145_v34 = vpop.f32.mrb[46].mxu1 }
 0x1bf   : > { %v1279_v31 = vmax.f32 %v1278_v8, %v1029_v21  ;;  %v1033_v33 = vadd.f32 %v1032_v30, %v2286_v28  ;;  %v1034_v35 = vpop.f32.mrb[47].mxu0  ;;  %v1321_v36 = vmax.f32 %v1320_v15, %v1142_v26  ;;  %v1146_v38 = vadd.f32 %v1145_v34, %v2292_v40  ;;  %v1147_v39 = vpop.f32.mrb[47].mxu1 }
 0x1c0   : > { %v1300_v37 = vmax.f32 %v1299_v16, %v1031_v27  ;;  %v1035_v12 = vadd.f32 %v1034_v35, %v2295_v41  ;;  %v1342_v18 = vmax.f32 %v1341_v17, %v1144_v32  ;;  %v1148_v43 = vadd.f32 %v1147_v39, %v2298_v0 }
 0x1c1   : > { %v1280_v42 = vmax.f32 %v1279_v31, %v1033_v33  ;;  %v1322_v20 = vmax.f32 %v1321_v36, %v1146_v38 }
 0x1c2   : > { %v1301_v44 = vmax.f32 %v1300_v37, %v1035_v12  ;;  %v1343_v45 = vmax.f32 %v1342_v18, %v1148_v43 }
 0x1c4   : > { %v1038_v46 = vpop.f32.mrb[48].mxu0  ;;  %v1151_v48 = vpop.f32.mrb[48].mxu1 }
 0x1c5   : > { %v1039_v47 = vadd.f32 %v1038_v46, %v2286_v28  ;;  %v1040_v23 = vpop.f32.mrb[49].mxu0  ;;  %v1152_v50 = vadd.f32 %v1151_v48, %v2292_v40  ;;  %v1153_v53 = vpop.f32.mrb[49].mxu1 }
 0x1c6   : > { %v1041_v51 = vadd.f32 %v1040_v23, %v2295_v41  ;;  %v1042_v54 = vpop.f32.mrb[50].mxu0  ;;  %v1154_v14 = vadd.f32 %v1153_v53, %v2298_v0  ;;  %v1155_v58 = vpop.f32.mrb[50].mxu1 }
 0x1c7   : > { %v1281_v55 = vmax.f32 %v1280_v42, %v1039_v47  ;;  %v1043_v57 = vadd.f32 %v1042_v54, %v2286_v28  ;;  %v1044_v59 = vpop.f32.mrb[51].mxu0  ;;  %v1323_v60 = vmax.f32 %v1322_v20, %v1152_v50  ;;  %v1156_v62 = vadd.f32 %v1155_v58, %v2292_v40  ;;  %v1157_v1 = vpop.f32.mrb[51].mxu1 }
 0x1c8   : > { %v1302_v61 = vmax.f32 %v1301_v44, %v1041_v51  ;;  %v1045_v63 = vadd.f32 %v1044_v59, %v2295_v41  ;;  %v1344_v2 = vmax.f32 %v1343_v45, %v1154_v14  ;;  %v1158_v4 = vadd.f32 %v1157_v1, %v2298_v0 }
 0x1c9   : > { %v1282_v3 = vmax.f32 %v1281_v55, %v1043_v57  ;;  %v1324_v5 = vmax.f32 %v1323_v60, %v1156_v62 }
 0x1ca   : > { %v1303_v6 = vmax.f32 %v1302_v61, %v1045_v63  ;;  %v1345_v7 = vmax.f32 %v1344_v2, %v1158_v4 }
 0x1cc   : > { %v1048_v9 = vpop.f32.mrb[52].mxu0  ;;  %v1161_v11 = vpop.f32.mrb[52].mxu1 }
 0x1cd   : > { %v1049_v10 = vadd.f32 %v1048_v9, %v2286_v28  ;;  %v1050_v8 = vpop.f32.mrb[53].mxu0  ;;  %v1162_v13 = vadd.f32 %v1161_v11, %v2292_v40  ;;  %v1163_v16 = vpop.f32.mrb[53].mxu1 }
 0x1ce   : > { %v1051_v15 = vadd.f32 %v1050_v8, %v2295_v41  ;;  %v1052_v17 = vpop.f32.mrb[54].mxu0  ;;  %v1164_v21 = vadd.f32 %v1163_v16, %v2298_v0  ;;  %v1165_v25 = vpop.f32.mrb[54].mxu1 }
 0x1cf   : > { %v1283_v19 = vmax.f32 %v1282_v3, %v1049_v10  ;;  %v1053_v22 = vadd.f32 %v1052_v17, %v2286_v28  ;;  %v1054_v26 = vpop.f32.mrb[55].mxu0  ;;  %v1325_v27 = vmax.f32 %v1324_v5, %v1162_v13  ;;  %v1166_v30 = vadd.f32 %v1165_v25, %v2292_v40  ;;  %v1167_v32 = vpop.f32.mrb[55].mxu1 }
 0x1d0   : > { %v1304_v29 = vmax.f32 %v1303_v6, %v1051_v15  ;;  %v1055_v31 = vadd.f32 %v1054_v26, %v2295_v41  ;;  %v1346_v33 = vmax.f32 %v1345_v7, %v1164_v21  ;;  %v1168_v35 = vadd.f32 %v1167_v32, %v2298_v0 }
 0x1d1   : > { %v1284_v34 = vmax.f32 %v1283_v19, %v1053_v22  ;;  %v1326_v36 = vmax.f32 %v1325_v27, %v1166_v30 }
 0x1d2   : > { %v1305_v37 = vmax.f32 %v1304_v29, %v1055_v31  ;;  %v1347_v38 = vmax.f32 %v1346_v33, %v1168_v35 }
 0x1d4   : > { %v1058_v12 = vpop.f32.mrb[56].mxu0  ;;  %v1171_v18 = vpop.f32.mrb[56].mxu1 }
 0x1d5   : > { %v1059_v39 = vadd.f32 %v1058_v12, %v2286_v28  ;;  %v1060_v42 = vpop.f32.mrb[57].mxu0  ;;  %v1172_v43 = vadd.f32 %v1171_v18, %v2292_v40  ;;  %v1173_v44 = vpop.f32.mrb[57].mxu1 }
 0x1d6   : > { %v1061_v20 = vadd.f32 %v1060_v42, %v2295_v41  ;;  %v1062_v45 = vpop.f32.mrb[58].mxu0  ;;  %v1174_v47 = vadd.f32 %v1173_v44, %v2298_v0  ;;  %v1175_v23 = vpop.f32.mrb[58].mxu1 }
 0x1d7   : > { %v1285_v46 = vmax.f32 %v1284_v34, %v1059_v39  ;;  %v1063_v48 = vadd.f32 %v1062_v45, %v2286_v28  ;;  %v1064_v50 = vpop.f32.mrb[59].mxu0  ;;  %v1327_v51 = vmax.f32 %v1326_v36, %v1172_v43  ;;  %v1176_v54 = vadd.f32 %v1175_v23, %v2292_v40  ;;  %v1177_v14 = vpop.f32.mrb[59].mxu1 }
 0x1d8   : > { %v1306_v53 = vmax.f32 %v1305_v37, %v1061_v20  ;;  %v1065_v55 = vadd.f32 %v1064_v50, %v2295_v41  ;;  %v1348_v57 = vmax.f32 %v1347_v38, %v1174_v47  ;;  %v1178_v59 = vadd.f32 %v1177_v14, %v2298_v0 }
 0x1d9   : > { %v1286_v58 = vmax.f32 %v1285_v46, %v1063_v48  ;;  %v1328_v60 = vmax.f32 %v1327_v51, %v1176_v54  ;;  %v1412_v14 = vrot.slane %v1404_v56, %v2309_v24 }
 0x1da   : > { %v1307_v61 = vmax.f32 %v1306_v53, %v1065_v55  ;;  %v1349_v62 = vmax.f32 %v1348_v57, %v1178_v59 }
 0x1dc   : > { %v1068_v63 = vpop.f32.mrb[60].mxu0  ;;  %v1181_v2 = vpop.f32.mrb[60].mxu1 }
 0x1dd   : > { %v1069_v1 = vadd.f32 %v1068_v63, %v2286_v28  ;;  %v1070_v3 = vpop.f32.mrb[61].mxu0  ;;  %v1182_v4 = vadd.f32 %v1181_v2, %v2292_v40  ;;  %v1183_v6 = vpop.f32.mrb[61].mxu1 }
 0x1de   : > { %v1071_v5 = vadd.f32 %v1070_v3, %v2295_v41  ;;  %v1072_v7 = vpop.f32.mrb[62].mxu0  ;;  %v1184_v10 = vadd.f32 %v1183_v6, %v2298_v0  ;;  %v1185_v8 = vpop.f32.mrb[62].mxu1 }
 0x1df   : > { %v1287_v9 = vmax.f32 %v1286_v58, %v1069_v1  ;;  %v1073_v11 = vadd.f32 %v1072_v7, %v2286_v28  ;;  %v1074_v13 = vpop.f32.mrb[63].mxu0  ;;  %v1329_v15 = vmax.f32 %v1328_v60, %v1182_v4  ;;  %v1186_v17 = vadd.f32 %v1185_v8, %v2292_v40  ;;  %v1187_v21 = vpop.f32.mrb[63].mxu1 }
 0x1e0   : > { %v1308_v16 = vmax.f32 %v1307_v61, %v1071_v5  ;;  %v1075_v19 = vadd.f32 %v1074_v13, %v2295_v41  ;;  %v1350_v22 = vmax.f32 %v1349_v62, %v1184_v10  ;;  %v1188_v26 = vadd.f32 %v1187_v21, %v2298_v0 }
 0x1e1   : > { %v1288_v25 = vmax.f32 %v1287_v9, %v1073_v11  ;;  %v1330_v27 = vmax.f32 %v1329_v15, %v1186_v17 }
 0x1e2   : > { %v1309_v29 = vmax.f32 %v1308_v16, %v1075_v19  ;;  %v1351_v31 = vmax.f32 %v1350_v22, %v1188_v26 }
 0x1e3   : > { %v1289_v30 = vrot.slane %v1288_v25, 4  ;;  %v1331_v32 = vrot.slane %v1330_v27, 4 }
 0x1e4   : > { %v1310_v33 = vrot.slane %v1309_v29, 4  ;;  %v1352_v34 = vrot.slane %v1351_v31, 4 }
 0x1e5   : > { %v1290_v28 = vmax.f32 %v1288_v25, %v1289_v30  ;;  %v1332_v35 = vmax.f32 %v1330_v27, %v1331_v32 }
 0x1e6   : > { %v1311_v36 = vmax.f32 %v1309_v29, %v1310_v33  ;;  %v1353_v38 = vmax.f32 %v1351_v31, %v1352_v34 }
 0x1e7   : > { %v1291_v37 = vrot.slane %v1290_v28, 2  ;;  %v1333_v40 = vrot.slane %v1332_v35, 2 }
 0x1e8   : > { %v1312_v12 = vrot.slane %v1311_v36, 2  ;;  %v1354_v39 = vrot.slane %v1353_v38, 2 }
 0x1e9   : > { %v1292_v41 = vmax.f32 %v1290_v28, %v1291_v37  ;;  %v1334_v18 = vmax.f32 %v1332_v35, %v1333_v40 }
 0x1ea   : > { %v1313_v42 = vmax.f32 %v1311_v36, %v1312_v12  ;;  %v1355_v43 = vmax.f32 %v1353_v38, %v1354_v39 }
 0x1eb   : > { %v1293_v0 = vrot.slane %v1292_v41, 1  ;;  %v1335_v20 = vrot.slane %v1334_v18, 1 }
 0x1ec   : > { %v1314_v44 = vrot.slane %v1313_v42, 1  ;;  %v1356_v46 = vrot.slane %v1355_v43, 1 }
 0x1ed   : > { %v1294_v45 = vmax.f32 %v1292_v41, %v1293_v0  ;;  %v1336_v47 = vmax.f32 %v1334_v18, %v1335_v20 }
 0x1ee   : > { %v1315_v48 = vmax.f32 %v1313_v42, %v1314_v44  ;;  %v1357_v23 = vmax.f32 %v1355_v43, %v1356_v46 }
 0x1f0   : > { %v1374_v50 = vcombine.low %v1294_v45, %v1315_v48  ;;  %v1375_v51 = vcombine.low %v1336_v47, %v1357_v23 }
 0x1f2   : > { %v1396_v53 = vrot.slane %v1374_v50, %v2309_v24  ;;  %v1403_v54 = vrot.slane %v1375_v51, %v2309_v24 }
 0x1f4   : > { %v1405_v55 = vcombine.low %v1396_v53, %v1403_v54 }
 0x1f6   : > { %v1419_v57 = vrot.slane %v1405_v55, %v2309_v24 }
 0x1f8   : > { %v1420_v58 = vcombine.low %v1412_v14, %v1419_v57 }
 0x1fa   : > { %1423 = vst [vmem:[%s243_s24] sm:$0xff] %v1420_v58 }
 0x1fb   : > { %1835 = shalt.err (!%p1832_p11)
}
 0x1fc   : > { %s1836_s9 = scalar_lea.hbm %s2387_s26, 128  ;;  %s1840_s19 = scalar_lea.hbm %s2439_s3, 256 }
 0x1fd   : > { %p1837_p0 = scmp.ne.s32.totalorder %s2387_s26, %s1836_s9  ;;  %p1841_p6 = scmp.lt.u32.totalorder %s2387_s26, %s2439_s3 }
 0x1fe   : > { %p1842_p7 = scmp.lt.u32.totalorder %s1840_s19, %s1836_s9  ;;  %p1844_p8 = scmp.lt.u32.totalorder %s1836_s9, %s2387_s26 }
 0x1ff   : > { %p1838_p4 = pnand %p1837_p0, %p2454_p12 }
 0x200   : > { %p1843_p2 = por %p1842_p7, %p1841_p6 }
 0x201   : > { %p1839_p13 = pneg %p1838_p4 }
 0x202   : > { %p1845_p1 = por %p1844_p8, %p1843_p2 }
 0x204   : > { %p1846_p10 = pnand %p1845_p1, %p1839_p13 }
 0x206   : > { %1849 = shalt.err (!%p1846_p10)
}
 0x207   : > { %1648 = dma.vmem_to_hbm [thread:$0]  (%p2454_p12), %s2389_s6, 128, %s2387_s26, %s1425_s25  }
 0x208 PF: > { %s1452_s20 = sand.u32 1, %s1888_s12   ;;  %p2455_p3 = scmp.ne.s32.totalorder %s2447_s23, 0 }
 0x209   : > { %p2456_p5 = scmp.ge.s32.totalorder %s1908_s17, 2  ;;  %s1453_s22 = scalar_lea.sflag [#allocation4], %s1452_s20 }
 0x20b   : > { %p1662_p9 = pnand %p2456_p5, %p2455_p3 }
 0x20d   : > { %1883 = dma.done.wait (!%p1662_p9), %s1453_s22, 128  }
 0x20e   : > { %1885 = vsyncadd (!%p1662_p9), %s1453_s22, 4294967168  ;;  %s20_s17 = sadd.s32 1, %s1908_s17   ;;  %s2457_s12 = smov %s1892_s13 }
 0x20f   : > { %p17_p11 = scmp.ge.s32.totalorder %s20_s17, 4   ;;  %s2458_s13 = smov %s1896_s14 }
 0x210   : > { %s2459_s14 = smov %s2082_s30  ;;  %s2460_s15 = smov %s1904_s16 }
 0x211   : > { %s2461_s16 = smov %s2463_s11  ;;  %19 = sbr.rel (!%p17_p11) target bundleno = 7 (0x7), region = 89 }
 0x218   :  { %1458 = vsyncpa [#allocation3], 1 }
 0x219   :  { %1460 = vsyncpa [#allocation3 + $0x1], 1 }
 0x21a   :  { %1461 = vsyncpa [#allocation6], 1 }
 0x21b   :  { %1462 = vsyncpa [#allocation4], 1 }
 0x21c   :  { %1464 = vsyncpa [#allocation4 + $0x1], 1 }

// kernel: foldnet_encoder_forward.9
= control target key start
LH: loop header
LB: loop body
LE: loop exit
PB: predicated region body
PF: predicated region fallthrough
CT: control target
= control target key end

     0   :  { %12 = vsyncpa [#allocation3], 0  ;;  %s4884_s0 = inlined_call_operand.hbm [shape: f32[16,1024], index: 0, kind: input, shape index: {}]   ;;  %s4885_s1 = inlined_call_operand.hbm [shape: bf16[1024,512], index: 1, kind: input, shape index: {}]   ;;  %s4886_s2 = inlined_call_operand.hbm [shape: f32[1,512], index: 2, kind: input, shape index: {}]   ;;  %s4887_s3 = inlined_call_operand.hbm [shape: bf16[512,512], index: 3, kind: input, shape index: {}]   ;;  %s4888_s4 = inlined_call_operand.hbm [shape: f32[1,512], index: 4, kind: input, shape index: {}]   ;;  %s4889_s5 = inlined_call_operand.hbm [shape: bf16[512,32], index: 5, kind: input, shape index: {}]   ;;  %s4890_s6 = inlined_call_operand.hbm [shape: f32[1,32], index: 6, kind: input, shape index: {}]   ;;  %s4891_s7 = inlined_call_operand.hbm [shape: f32[16,32], index: 7, kind: output, shape index: {}]  }
   0x1   :  { %13 = vsyncpa [#allocation6], 0 }
   0x2   :  { %14 = vsyncpa [#allocation9], 0 }
   0x3   :  { %15 = vsyncpa [#allocation12], 0 }
   0x4   :  { %16 = vsyncpa [#allocation4], 0  ;;  %s4707_s24 = smov [#allocation5]   ;;  %s4521_s28 = scalar_lea.hbm %s4885_s1, 32768 }
   0x5   :  { %s34_s25 = sshll.u32 %s4707_s24, 4  ;;  %p4522_p0 = scmp.ne.s32.totalorder %s4885_s1, %s4521_s28  ;;  %s35_s25 = int_to_ptr.vmem [resolvable:$true] %s34_s25 }
   0x6   :  { %p4525_p1 = scmp.lt.u32.totalorder %s4521_s28, %s4885_s1 }
   0x8   :  { %p4527_p2 = pnand %p4525_p1, %p4522_p0 }
   0xa   :  { %4530 = shalt.err (!%p4527_p2)
}
   0xb   :  { %s4531_s10 = scalar_lea.vmem %s35_s25, 32768  ;;  %p4536_p4 = scmp.lt.s32.totalorder %s35_s25, %s35_s25 }
   0xc   :  { %p4532_p3 = scmp.ne.s32.totalorder %s35_s25, %s4531_s10  ;;  %p4537_p5 = scmp.lt.s32.totalorder %s4531_s10, %s4531_s10 }
   0xe   :  { %p4538_p6 = por %p4537_p5, %p4536_p4 }
  0x10   :  { %p4539_p7 = pnand %p4538_p6, %p4532_p3 }
  0x12   :  { %4542 = shalt.err (!%p4539_p7)
}
  0x13   :  { %s4708_s11 = smov 256   ;;  %s4709_s12 = smov 16  }
  0x14   :  { %40 = dma.hbm_to_vmem [thread:$0]  %s4885_s1, 32768, %s35_s25, [#allocation6], %s4708_s11, %s4708_s11, %s4709_s12  }
  0x15   :  { %s4710_s15 = smov [#allocation8]   ;;  %s4543_s19 = scalar_lea.hbm %s4887_s3, 16384 }
  0x16   :  { %s56_s16 = sshll.u32 %s4710_s15, 4  ;;  %p4544_p8 = scmp.ne.s32.totalorder %s4887_s3, %s4543_s19  ;;  %s57_s16 = int_to_ptr.vmem [resolvable:$true] %s56_s16 }
  0x17   :  { %p4547_p9 = scmp.lt.u32.totalorder %s4543_s19, %s4887_s3 }
  0x19   :  { %p4549_p10 = pnand %p4547_p9, %p4544_p8 }
  0x1b   :  { %4552 = shalt.err (!%p4549_p10)
}
  0x1c   :  { %s4553_s24 = scalar_lea.vmem %s57_s16, 16384  ;;  %p4558_p12 = scmp.lt.s32.totalorder %s57_s16, %s57_s16 }
  0x1d   :  { %p4554_p11 = scmp.ne.s32.totalorder %s57_s16, %s4553_s24  ;;  %p4559_p13 = scmp.lt.s32.totalorder %s4553_s24, %s4553_s24 }
  0x1f   :  { %p4560_p0 = por %p4559_p13, %p4558_p12 }
  0x21   :  { %p4561_p1 = pnand %p4560_p0, %p4554_p11 }
  0x23   :  { %4564 = shalt.err (!%p4561_p1)
}
  0x24   :  { %62 = dma.hbm_to_vmem [thread:$0]  %s4887_s3, 16384, %s57_s16, [#allocation9], %s4708_s11, %s4708_s11, %s4709_s12  }
  0x25   :  { %s4711_s26 = smov [#allocation11]   ;;  %s4565_s30 = scalar_lea.hbm %s4889_s5, 4096 }
  0x26   :  { %s78_s27 = sshll.u32 %s4711_s26, 4  ;;  %p4566_p2 = scmp.ne.s32.totalorder %s4889_s5, %s4565_s30  ;;  %s79_s27 = int_to_ptr.vmem [resolvable:$true] %s78_s27 }
  0x27   :  { %p4569_p3 = scmp.lt.u32.totalorder %s4565_s30, %s4889_s5 }
  0x29   :  { %p4571_p4 = pnand %p4569_p3, %p4566_p2 }
  0x2b   :  { %4574 = shalt.err (!%p4571_p4)
}
  0x2c   :  { %s4575_s14 = scalar_lea.vmem %s79_s27, 4096  ;;  %p4580_p6 = scmp.lt.s32.totalorder %s79_s27, %s79_s27 }
  0x2d   :  { %p4576_p5 = scmp.ne.s32.totalorder %s79_s27, %s4575_s14  ;;  %p4581_p7 = scmp.lt.s32.totalorder %s4575_s14, %s4575_s14 }
  0x2f   :  { %p4582_p8 = por %p4581_p7, %p4580_p6 }
  0x31   :  { %p4583_p9 = pnand %p4582_p8, %p4576_p5 }
  0x33   :  { %4586 = shalt.err (!%p4583_p9)
}
  0x34   :  { %s4712_s3 = smov 64   ;;  %s4713_s11 = smov 4  }
  0x35   :  { %84 = dma.hbm_to_vmem [thread:$0]  %s4889_s5, 4096, %s79_s27, [#allocation12], %s4712_s3, %s4712_s3, %s4713_s11  }
  0x36   :  { %s4714_s16 = smov [#allocation2]   ;;  %s4587_s20 = scalar_lea.hbm %s4884_s0, 2048 }
  0x37   :  { %s22_s17 = sshll.u32 %s4714_s16, 4  ;;  %p4588_p10 = scmp.ne.s32.totalorder %s4884_s0, %s4587_s20  ;;  %s23_s17 = int_to_ptr.vmem [resolvable:$true] %s22_s17 }
  0x38   :  { %p4591_p11 = scmp.lt.u32.totalorder %s4587_s20, %s4884_s0 }
  0x3a   :  { %p4593_p12 = pnand %p4591_p11, %p4588_p10 }
  0x3c   :  { %4596 = shalt.err (!%p4593_p12)
}
  0x3d   :  { %s4597_s1 = scalar_lea.vmem %s23_s17, 2048  ;;  %p4602_p0 = scmp.lt.s32.totalorder %s23_s17, %s23_s17 }
  0x3e   :  { %p4598_p13 = scmp.ne.s32.totalorder %s23_s17, %s4597_s1  ;;  %p4603_p1 = scmp.lt.s32.totalorder %s4597_s1, %s4597_s1 }
  0x40   :  { %p4604_p2 = por %p4603_p1, %p4602_p0 }
  0x42   :  { %p4605_p3 = pnand %p4604_p2, %p4598_p13 }
  0x44   :  { %4608 = shalt.err (!%p4605_p3)
}
  0x45   :  { %s4715_s5 = smov 1024   ;;  %s4716_s27 = smov [#allocation7]  }
  0x46   :  { %28 = dma.hbm_to_vmem [thread:$0]  %s4884_s0, 2048, %s23_s17, [#allocation3], %s4715_s5, %s4715_s5, %s4712_s3  }
  0x47   :  { %s47_s28 = sshll.u32 %s4716_s27, 4  ;;  %s4717_s29 = smov [#allocation10]   ;;  %s48_s28 = int_to_ptr.vmem [resolvable:$true] %s47_s28 }
  0x48   :  { %s69_s30 = sshll.u32 %s4717_s29, 4  ;;  %s4609_s10 = scalar_lea.hbm %s4886_s2, 64  ;;  %s70_s30 = int_to_ptr.vmem [resolvable:$true] %s69_s30 }
  0x49   :  { %p4610_p4 = scmp.ne.s32.totalorder %s4886_s2, %s4609_s10  ;;  %p4613_p5 = scmp.lt.u32.totalorder %s4609_s10, %s4886_s2 }
  0x4b   :  { %p4615_p6 = pnand %p4613_p5, %p4610_p4 }
  0x4d   :  { %4618 = shalt.err (!%p4615_p6)
}
  0x4e   :  { %s4619_s0 = scalar_lea.vmem %s48_s28, 64  ;;  %p4624_p8 = scmp.lt.s32.totalorder %s48_s28, %s48_s28 }
  0x4f   :  { %p4620_p7 = scmp.ne.s32.totalorder %s48_s28, %s4619_s0  ;;  %p4625_p9 = scmp.lt.s32.totalorder %s4619_s0, %s4619_s0 }
  0x51   :  { %p4626_p10 = por %p4625_p9, %p4624_p8 }
  0x53   :  { %p4627_p11 = pnand %p4626_p10, %p4620_p7 }
  0x55   :  { %4630 = shalt.err (!%p4627_p11)
}
  0x56   :  { %50 = dma.hbm_to_vmem [thread:$0]  %s4886_s2, 64, %s48_s28, [#allocation6]  }
  0x57   :  { %s4631_s18 = scalar_lea.hbm %s4888_s4, 64 }
  0x58   :  { %p4632_p12 = scmp.ne.s32.totalorder %s4888_s4, %s4631_s18  ;;  %p4635_p13 = scmp.lt.u32.totalorder %s4631_s18, %s4888_s4 }
  0x5a   :  { %p4637_p0 = pnand %p4635_p13, %p4632_p12 }
  0x5c   :  { %4640 = shalt.err (!%p4637_p0)
}
  0x5d   :  { %s4641_s23 = scalar_lea.vmem %s70_s30, 64  ;;  %p4646_p2 = scmp.lt.s32.totalorder %s70_s30, %s70_s30 }
  0x5e   :  { %p4642_p1 = scmp.ne.s32.totalorder %s70_s30, %s4641_s23  ;;  %p4647_p3 = scmp.lt.s32.totalorder %s4641_s23, %s4641_s23 }
  0x60   :  { %p4648_p4 = por %p4647_p3, %p4646_p2 }
  0x62   :  { %p4649_p5 = pnand %p4648_p4, %p4642_p1 }
  0x64   :  { %4652 = shalt.err (!%p4649_p5)
}
  0x65   :  { %72 = dma.hbm_to_vmem [thread:$0]  %s4888_s4, 64, %s70_s30, [#allocation9]  }
  0x66   :  { %s4718_s1 = smov [#allocation13]   ;;  %s4653_s27 = scalar_lea.hbm %s4890_s6, 16 }
  0x67   :  { %s91_s5 = sshll.u32 %s4718_s1, 4  ;;  %p4654_p6 = scmp.ne.s32.totalorder %s4890_s6, %s4653_s27  ;;  %s92_s5 = int_to_ptr.vmem [resolvable:$true] %s91_s5 }
  0x68   :  { %p4657_p7 = scmp.lt.u32.totalorder %s4653_s27, %s4890_s6 }
  0x6a   :  { %p4659_p8 = pnand %p4657_p7, %p4654_p6 }
  0x6c   :  { %4662 = shalt.err (!%p4659_p8)
}
  0x6d   :  { %s4663_s10 = scalar_lea.vmem %s92_s5, 16  ;;  %s4667_s4 = scalar_lea.vmem %s92_s5, 32 }
  0x6e   :  { %p4664_p9 = scmp.ne.s32.totalorder %s92_s5, %s4663_s10  ;;  %p4668_p10 = scmp.lt.s32.totalorder %s92_s5, %s92_s5 }
  0x6f   :  { %p4669_p11 = scmp.lt.s32.totalorder %s4667_s4, %s4663_s10 }
  0x71   :  { %p4670_p12 = por %p4669_p11, %p4668_p10 }
  0x73   :  { %p4671_p13 = pnand %p4670_p12, %p4664_p9 }
  0x75   :  { %4674 = shalt.err (!%p4671_p13)
}
  0x76   :  { %94 = dma.hbm_to_vmem [thread:$0]  %s4890_s6, 16, %s92_s5, [#allocation12]  }
  0x77   :  { %4697 = dma.done.wait [#allocation3], 2048  }
  0x78   :  { %4698 = vsyncadd [#allocation3], 4294965248 }
  0x79   :  { %4699 = dma.done.wait [#allocation6], 32832  }
  0x7a   :  { %4700 = vsyncadd [#allocation6], 4294934464 }
  0x7b   :  { %4701 = dma.done.wait [#allocation9], 16448  }
  0x7c   :  { %4702 = vsyncadd [#allocation9], 4294950848 }
  0x7d   :  { %4703 = dma.done.wait [#allocation12], 4112  }
  0x7e   :  { %4704 = vsyncadd [#allocation12], 4294963184  ;;  %v3913_v0 = vld [vmem:[#allocation5 + $0x4] ss:$16 sps:$4 sm:$0xff]   ;;  %v3915_v1 = vld [vmem:[#allocation5 + $0xc] ss:$16 sps:$4 sm:$0xff]  }
  0x7f   :  { %1699 = vmatprep.subr.bf16.mxu0 %v3913_v0  ;;  %v3917_v2 = vld [vmem:[#allocation5] ss:$16 sps:$4 sm:$0xff]   ;;  %v3918_v3 = vld [vmem:[#allocation5 + $0x8] ss:$16 sps:$4 sm:$0xff]   ;;  %1871 = vmatprep.subr.bf16.mxu1 %v3915_v1  ;;  %v3919_v4 = vld [vmem:[#allocation5 + $0x24] ss:$16 sps:$4 sm:$0xff]  }
  0x80   :  { %1700 = vmatpush1.bf16.msra.mxu0 %v3917_v2  ;;  %1872 = vmatpush1.bf16.msra.mxu1 %v3918_v3  ;;  %v3921_v5 = vld [vmem:[#allocation5 + $0x2c] ss:$16 sps:$4 sm:$0xff]   ;;  %v3923_v6 = vld [vmem:[#allocation5 + $0x20] ss:$16 sps:$4 sm:$0xff]   ;;  %v3924_v7 = vld [vmem:[#allocation5 + $0x28] ss:$16 sps:$4 sm:$0xff]  }
  0x81   :  { %1701 = vmatprep.subr.bf16.mxu0 %v3919_v4  ;;  %1873 = vmatprep.subr.bf16.mxu1 %v3921_v5  ;;  %v3925_v8 = vld [vmem:[#allocation5 + $0x44] ss:$16 sps:$4 sm:$0xff]   ;;  %v3927_v9 = vld [vmem:[#allocation5 + $0x4c] ss:$16 sps:$4 sm:$0xff]   ;;  %v3929_v10 = vld [vmem:[#allocation5 + $0x40] ss:$16 sps:$4 sm:$0xff]  }
  0x82   :  { %v3930_v11 = vld [vmem:[#allocation5 + $0x48] ss:$16 sps:$4 sm:$0xff]   ;;  %v3931_v12 = vld [vmem:[#allocation5 + $0x64] ss:$16 sps:$4 sm:$0xff]   ;;  %v3933_v13 = vld [vmem:[#allocation5 + $0x6c] ss:$16 sps:$4 sm:$0xff]  }
  0x83   :  { %v3935_v14 = vld [vmem:[#allocation5 + $0x60] ss:$16 sps:$4 sm:$0xff]   ;;  %v3936_v15 = vld [vmem:[#allocation5 + $0x68] ss:$16 sps:$4 sm:$0xff]   ;;  %v3937_v16 = vld [vmem:[#allocation5 + $0x84] ss:$16 sps:$4 sm:$0xff]  }
  0x84   :  { %1702 = vmatpush1.bf16.msra.mxu0 %v3923_v6  ;;  %1874 = vmatpush1.bf16.msra.mxu1 %v3924_v7  ;;  %v3939_v17 = vld [vmem:[#allocation5 + $0x8c] ss:$16 sps:$4 sm:$0xff]   ;;  %v3941_v18 = vld [vmem:[#allocation5 + $0x80] ss:$16 sps:$4 sm:$0xff]   ;;  %v3942_v19 = vld [vmem:[#allocation5 + $0x88] ss:$16 sps:$4 sm:$0xff]  }
  0x85   :  { %1703 = vmatprep.subr.bf16.mxu0 %v3925_v8  ;;  %1875 = vmatprep.subr.bf16.mxu1 %v3927_v9  ;;  %v3943_v20 = vld [vmem:[#allocation5 + $0xa4] ss:$16 sps:$4 sm:$0xff]   ;;  %v3945_v21 = vld [vmem:[#allocation5 + $0xac] ss:$16 sps:$4 sm:$0xff]   ;;  %v3947_v22 = vld [vmem:[#allocation5 + $0xa0] ss:$16 sps:$4 sm:$0xff]  }
  0x86   :  { %v3948_v23 = vld [vmem:[#allocation5 + $0xa8] ss:$16 sps:$4 sm:$0xff]   ;;  %v3949_v24 = vld [vmem:[#allocation5 + $0xc4] ss:$16 sps:$4 sm:$0xff]   ;;  %v3951_v25 = vld [vmem:[#allocation5 + $0xcc] ss:$16 sps:$4 sm:$0xff]  }
  0x87   :  { %v3953_v26 = vld [vmem:[#allocation5 + $0xc0] ss:$16 sps:$4 sm:$0xff]   ;;  %v3954_v27 = vld [vmem:[#allocation5 + $0xc8] ss:$16 sps:$4 sm:$0xff]   ;;  %v3955_v28 = vld [vmem:[#allocation5 + $0xe4] ss:$16 sps:$4 sm:$0xff]  }
  0x88   :  { %1704 = vmatpush1.bf16.msra.mxu0 %v3929_v10  ;;  %1876 = vmatpush1.bf16.msra.mxu1 %v3930_v11  ;;  %v3957_v29 = vld [vmem:[#allocation5 + $0xec] ss:$16 sps:$4 sm:$0xff]   ;;  %v3959_v30 = vld [vmem:[#allocation5 + $0xe0] ss:$16 sps:$4 sm:$0xff]   ;;  %v3960_v31 = vld [vmem:[#allocation5 + $0xe8] ss:$16 sps:$4 sm:$0xff]  }
  0x89   :  { %1705 = vmatprep.subr.bf16.mxu0 %v3931_v12  ;;  %1877 = vmatprep.subr.bf16.mxu1 %v3933_v13  ;;  %v3961_v32 = vld [vmem:[#allocation5 + $0x104] ss:$16 sps:$4 sm:$0xff]   ;;  %v3963_v33 = vld [vmem:[#allocation5 + $0x10c] ss:$16 sps:$4 sm:$0xff]   ;;  %v3965_v34 = vld [vmem:[#allocation5 + $0x100] ss:$16 sps:$4 sm:$0xff]  }
  0x8a   :  { %v3966_v35 = vld [vmem:[#allocation5 + $0x108] ss:$16 sps:$4 sm:$0xff]   ;;  %v3967_v36 = vld [vmem:[#allocation5 + $0x124] ss:$16 sps:$4 sm:$0xff]   ;;  %v3969_v37 = vld [vmem:[#allocation5 + $0x12c] ss:$16 sps:$4 sm:$0xff]  }
  0x8b   :  { %v3971_v38 = vld [vmem:[#allocation5 + $0x120] ss:$16 sps:$4 sm:$0xff]   ;;  %v3972_v39 = vld [vmem:[#allocation5 + $0x128] ss:$16 sps:$4 sm:$0xff]   ;;  %v3973_v40 = vld [vmem:[#allocation5 + $0x144] ss:$16 sps:$4 sm:$0xff]  }
  0x8c   :  { %1706 = vmatpush1.bf16.msra.mxu0 %v3935_v14  ;;  %1878 = vmatpush1.bf16.msra.mxu1 %v3936_v15  ;;  %v3975_v41 = vld [vmem:[#allocation5 + $0x14c] ss:$16 sps:$4 sm:$0xff]   ;;  %v3977_v42 = vld [vmem:[#allocation5 + $0x140] ss:$16 sps:$4 sm:$0xff]   ;;  %v3978_v43 = vld [vmem:[#allocation5 + $0x148] ss:$16 sps:$4 sm:$0xff]  }
  0x8d   :  { %1707 = vmatprep.subr.bf16.mxu0 %v3937_v16  ;;  %1879 = vmatprep.subr.bf16.mxu1 %v3939_v17  ;;  %v3979_v44 = vld [vmem:[#allocation5 + $0x164] ss:$16 sps:$4 sm:$0xff]   ;;  %v3981_v45 = vld [vmem:[#allocation5 + $0x16c] ss:$16 sps:$4 sm:$0xff]   ;;  %v3983_v48 = vld [vmem:[#allocation5 + $0x160] ss:$16 sps:$4 sm:$0xff]  }
  0x8e   :  { %v118_v46 = vld [vmem:[#allocation2 + $0x8] sm:$0xff]  ;;  %v3985_v51 = vld [vmem:[#allocation5 + $0x184] ss:$16 sps:$4 sm:$0xff]   ;;  %v3989_v53 = vld [vmem:[#allocation5 + $0x180] ss:$16 sps:$4 sm:$0xff]   ;;  %s4719_s6 = smov [#allocation14]  }
  0x8f   :  { %v126_v47 = vld [vmem:[#allocation2 + $0x48] sm:$0xff]  ;;  %v3991_v55 = vld [vmem:[#allocation5 + $0x1a4] ss:$16 sps:$4 sm:$0xff]   ;;  %v3995_v57 = vld [vmem:[#allocation5 + $0x1a0] ss:$16 sps:$4 sm:$0xff]   ;;  %s3374_s14 = sshll.u32 %s4719_s6, 4  ;;  %s3375_s14 = int_to_ptr.vmem [resolvable:$true] %s3374_s14 }
  0x90   :  { %1708 = vmatpush1.bf16.msra.mxu0 %v3941_v18  ;;  %1880 = vmatpush1.bf16.msra.mxu1 %v3942_v19  ;;  %v3984_v49 = vld [vmem:[#allocation5 + $0x168] ss:$16 sps:$4 sm:$0xff]   ;;  %v391_v50 = vpack.c.bf16 %v126_v47, %v118_v46  ;;  %v3987_v52 = vld [vmem:[#allocation5 + $0x18c] ss:$16 sps:$4 sm:$0xff]   ;;  %v3997_v59 = vld [vmem:[#allocation5 + $0x1c4] ss:$16 sps:$4 sm:$0xff]   ;;  %p4680_p1 = scmp.lt.s32.totalorder %s3375_s14, %s3375_s14 }
  0x91   :  { %1709 = vmatprep.subr.bf16.mxu0 %v3943_v20  ;;  %1881 = vmatprep.subr.bf16.mxu1 %v3945_v21  ;;  %v3990_v54 = vld [vmem:[#allocation5 + $0x188] ss:$16 sps:$4 sm:$0xff]   ;;  %v3993_v56 = vld [vmem:[#allocation5 + $0x1ac] ss:$16 sps:$4 sm:$0xff]   ;;  %v4001_v61 = vld [vmem:[#allocation5 + $0x1c0] ss:$16 sps:$4 sm:$0xff]  }
  0x92   :  { %1731 = vmatprep.mubr.bf16.mxu0 %v391_v50  ;;  %1903 = vmatprep.mubr.bf16.mxu1 %v391_v50  ;;  %v3996_v58 = vld [vmem:[#allocation5 + $0x1a8] ss:$16 sps:$4 sm:$0xff]   ;;  %v3999_v60 = vld [vmem:[#allocation5 + $0x1cc] ss:$16 sps:$4 sm:$0xff]   ;;  %v4003_v63 = vld [vmem:[#allocation5 + $0x1e4] ss:$16 sps:$4 sm:$0xff]  }
  0x93   :  { %v4002_v62 = vld [vmem:[#allocation5 + $0x1c8] ss:$16 sps:$4 sm:$0xff]   ;;  %v4005_v0 = vld [vmem:[#allocation5 + $0x1ec] ss:$16 sps:$4 sm:$0xff]   ;;  %v4007_v1 = vld [vmem:[#allocation5 + $0x1e0] ss:$16 sps:$4 sm:$0xff]  }
  0x94   :  { %1710 = vmatpush1.bf16.msra.mxu0 %v3947_v22  ;;  %1882 = vmatpush1.bf16.msra.mxu1 %v3948_v23  ;;  %v4008_v2 = vld [vmem:[#allocation5 + $0x1e8] ss:$16 sps:$4 sm:$0xff]   ;;  %v4011_v3 = vld [vmem:[#allocation5 + $0x204] ss:$16 sps:$4 sm:$0xff]   ;;  %v4014_v6 = vld [vmem:[#allocation5 + $0x20c] ss:$16 sps:$4 sm:$0xff]  }
  0x95   :  { %1711 = vmatprep.subr.bf16.mxu0 %v3949_v24  ;;  %1883 = vmatprep.subr.bf16.mxu1 %v3951_v25  ;;  %v117_v4 = vld [vmem:[#allocation2] sm:$0xff]  ;;  %v4012_v8 = vld [vmem:[#allocation5 + $0x208] ss:$16 sps:$4 sm:$0xff]   ;;  %v4020_v11 = vld [vmem:[#allocation5 + $0x22c] ss:$16 sps:$4 sm:$0xff]   ;;  %vm3366_vm0 = vcmask 261120  }
  0x96   :  { %v125_v5 = vld [vmem:[#allocation2 + $0x40] sm:$0xff]  ;;  %v4018_v13 = vld [vmem:[#allocation5 + $0x228] ss:$16 sps:$4 sm:$0xff]   ;;  %v4026_v15 = vld [vmem:[#allocation5 + $0x24c] ss:$16 sps:$4 sm:$0xff]   ;;  %s4675_s11 = scalar_lea.vmem %s3375_s14, 256 }
  0x97   :  { %v4009_v7 = vld [vmem:[#allocation5 + $0x200] ss:$16 sps:$4 sm:$0xff]   ;;  %v390_v9 = vpack.c.bf16 %v125_v5, %v117_v4  ;;  %v4017_v10 = vld [vmem:[#allocation5 + $0x224] ss:$16 sps:$4 sm:$0xff]   ;;  %v4024_v17 = vld [vmem:[#allocation5 + $0x248] ss:$16 sps:$4 sm:$0xff]   ;;  %p4676_p0 = scmp.ne.s32.totalorder %s3375_s14, %s4675_s11  ;;  %p4681_p2 = scmp.lt.s32.totalorder %s4675_s11, %s4675_s11 }
  0x98   :  { %1712 = vmatpush1.bf16.msra.mxu0 %v3953_v26  ;;  %1884 = vmatpush1.bf16.msra.mxu1 %v3954_v27  ;;  %v4015_v12 = vld [vmem:[#allocation5 + $0x220] ss:$16 sps:$4 sm:$0xff]   ;;  %v4023_v14 = vld [vmem:[#allocation5 + $0x244] ss:$16 sps:$4 sm:$0xff]   ;;  %v4032_v19 = vld [vmem:[#allocation5 + $0x26c] ss:$16 sps:$4 sm:$0xff]  }
  0x99   :  { %1713 = vmatprep.subr.bf16.mxu0 %v3955_v28  ;;  %1885 = vmatprep.subr.bf16.mxu1 %v3957_v29  ;;  %v4021_v16 = vld [vmem:[#allocation5 + $0x240] ss:$16 sps:$4 sm:$0xff]   ;;  %v4029_v18 = vld [vmem:[#allocation5 + $0x264] ss:$16 sps:$4 sm:$0xff]   ;;  %v4030_v21 = vld [vmem:[#allocation5 + $0x268] ss:$16 sps:$4 sm:$0xff]   ;;  %p4682_p3 = por %p4681_p2, %p4680_p1 }
  0x9a   :  { %v4027_v20 = vld [vmem:[#allocation5 + $0x260] ss:$16 sps:$4 sm:$0xff]   ;;  %v4035_v22 = vld [vmem:[#allocation5 + $0x284] ss:$16 sps:$4 sm:$0xff]   ;;  %v4038_v23 = vld [vmem:[#allocation5 + $0x28c] ss:$16 sps:$4 sm:$0xff]  }
  0x9b   :  { %v4033_v24 = vld [vmem:[#allocation5 + $0x280] ss:$16 sps:$4 sm:$0xff]   ;;  %v4036_v25 = vld [vmem:[#allocation5 + $0x288] ss:$16 sps:$4 sm:$0xff]   ;;  %v4041_v26 = vld [vmem:[#allocation5 + $0x2a4] ss:$16 sps:$4 sm:$0xff]   ;;  %p4683_p4 = pnand %p4682_p3, %p4676_p0 }
  0x9c   :  { %1714 = vmatpush1.bf16.msra.mxu0 %v3959_v30  ;;  %1886 = vmatpush1.bf16.msra.mxu1 %v3960_v31  ;;  %v4044_v27 = vld [vmem:[#allocation5 + $0x2ac] ss:$16 sps:$4 sm:$0xff]   ;;  %v4039_v28 = vld [vmem:[#allocation5 + $0x2a0] ss:$16 sps:$4 sm:$0xff]   ;;  %v4042_v29 = vld [vmem:[#allocation5 + $0x2a8] ss:$16 sps:$4 sm:$0xff]  }
  0x9d   :  { %1715 = vmatprep.subr.bf16.mxu0 %v3961_v32  ;;  %1887 = vmatprep.subr.bf16.mxu1 %v3963_v33  ;;  %v4047_v30 = vld [vmem:[#allocation5 + $0x2c4] ss:$16 sps:$4 sm:$0xff]   ;;  %v4050_v31 = vld [vmem:[#allocation5 + $0x2cc] ss:$16 sps:$4 sm:$0xff]   ;;  %v4063_v47 = vld [vmem:[#allocation5 + $0x320] ss:$16 sps:$4 sm:$0xff]  }
  0x9e   :  { %v120_v32 = vld [vmem:[#allocation2 + $0x18] sm:$0xff]  ;;  %v4101_v5 = vld [vmem:[#allocation5 + $0x3e4] ss:$16 sps:$4 sm:$0xff]  }
  0x9f   :  { %v128_v33 = vld [vmem:[#allocation2 + $0x58] sm:$0xff] }
  0xa0   :  { %1716 = vmatpush1.bf16.msra.mxu0 %v3965_v34  ;;  %1888 = vmatpush1.bf16.msra.mxu1 %v3966_v35  ;;  %v4045_v34 = vld [vmem:[#allocation5 + $0x2c0] ss:$16 sps:$4 sm:$0xff]   ;;  %v4048_v35 = vld [vmem:[#allocation5 + $0x2c8] ss:$16 sps:$4 sm:$0xff]   ;;  %v4068_v46 = vld [vmem:[#allocation5 + $0x32c] ss:$16 sps:$4 sm:$0xff]  }
  0xa1   :  { %1717 = vmatprep.subr.bf16.mxu0 %v3967_v36  ;;  %1889 = vmatprep.subr.bf16.mxu1 %v3969_v37  ;;  %v393_v36 = vpack.c.bf16 %v128_v33, %v120_v32  ;;  %v4053_v37 = vld [vmem:[#allocation5 + $0x2e4] ss:$16 sps:$4 sm:$0xff]   ;;  %v4074_v50 = vld [vmem:[#allocation5 + $0x34c] ss:$16 sps:$4 sm:$0xff]   ;;  %v4096_v4 = vld [vmem:[#allocation5 + $0x3c8] ss:$16 sps:$4 sm:$0xff]  }
  0xa2   :  { %v4134_v32 = vld [vmem:[#allocation5 + $0x48c] ss:$16 sps:$4 sm:$0xff]   ;;  %v4129_v33 = vld [vmem:[#allocation5 + $0x480] ss:$16 sps:$4 sm:$0xff]  }
  0xa4   :  { %1718 = vmatpush1.bf16.msra.mxu0 %v3971_v38  ;;  %1890 = vmatpush1.bf16.msra.mxu1 %v3972_v39  ;;  %v4056_v38 = vld [vmem:[#allocation5 + $0x2ec] ss:$16 sps:$4 sm:$0xff]   ;;  %v4051_v39 = vld [vmem:[#allocation5 + $0x2e0] ss:$16 sps:$4 sm:$0xff]  }
  0xa5   :  { %1719 = vmatprep.subr.bf16.mxu0 %v3973_v40  ;;  %1891 = vmatprep.subr.bf16.mxu1 %v3975_v41  ;;  %v4054_v40 = vld [vmem:[#allocation5 + $0x2e8] ss:$16 sps:$4 sm:$0xff]   ;;  %v4059_v41 = vld [vmem:[#allocation5 + $0x304] ss:$16 sps:$4 sm:$0xff]  }
  0xa8   :  { %1720 = vmatpush1.bf16.msra.mxu0 %v3977_v42  ;;  %1892 = vmatpush1.bf16.msra.mxu1 %v3978_v43  ;;  %v4062_v42 = vld [vmem:[#allocation5 + $0x30c] ss:$16 sps:$4 sm:$0xff]   ;;  %v4057_v43 = vld [vmem:[#allocation5 + $0x300] ss:$16 sps:$4 sm:$0xff]  }
  0xa9   :  { %1721 = vmatprep.subr.bf16.mxu0 %v3979_v44  ;;  %1893 = vmatprep.subr.bf16.mxu1 %v3981_v45  ;;  %v4060_v44 = vld [vmem:[#allocation5 + $0x308] ss:$16 sps:$4 sm:$0xff]   ;;  %v4065_v45 = vld [vmem:[#allocation5 + $0x324] ss:$16 sps:$4 sm:$0xff]  }
  0xac   :  { %1722 = vmatpush1.bf16.msra.mxu0 %v3983_v48  ;;  %1894 = vmatpush1.bf16.msra.mxu1 %v3984_v49  ;;  %v4066_v48 = vld [vmem:[#allocation5 + $0x328] ss:$16 sps:$4 sm:$0xff]   ;;  %v4071_v49 = vld [vmem:[#allocation5 + $0x344] ss:$16 sps:$4 sm:$0xff]  }
  0xad   :  { %1723 = vmatprep.subr.bf16.mxu0 %v3985_v51  ;;  %1895 = vmatprep.subr.bf16.mxu1 %v3987_v52  ;;  %v4069_v51 = vld [vmem:[#allocation5 + $0x340] ss:$16 sps:$4 sm:$0xff]   ;;  %v4072_v52 = vld [vmem:[#allocation5 + $0x348] ss:$16 sps:$4 sm:$0xff]  }
  0xb0   :  { %1724 = vmatpush1.bf16.msra.mxu0 %v3989_v53  ;;  %1896 = vmatpush1.bf16.msra.mxu1 %v3990_v54  ;;  %v4077_v53 = vld [vmem:[#allocation5 + $0x364] ss:$16 sps:$4 sm:$0xff]   ;;  %v4080_v54 = vld [vmem:[#allocation5 + $0x36c] ss:$16 sps:$4 sm:$0xff]  }
  0xb1   :  { %1725 = vmatprep.subr.bf16.mxu0 %v3991_v55  ;;  %1897 = vmatprep.subr.bf16.mxu1 %v3993_v56  ;;  %v4075_v55 = vld [vmem:[#allocation5 + $0x360] ss:$16 sps:$4 sm:$0xff]   ;;  %v4078_v56 = vld [vmem:[#allocation5 + $0x368] ss:$16 sps:$4 sm:$0xff]  }
  0xb4   :  { %1726 = vmatpush1.bf16.msra.mxu0 %v3995_v57  ;;  %1898 = vmatpush1.bf16.msra.mxu1 %v3996_v58  ;;  %v4083_v57 = vld [vmem:[#allocation5 + $0x384] ss:$16 sps:$4 sm:$0xff]   ;;  %v4086_v58 = vld [vmem:[#allocation5 + $0x38c] ss:$16 sps:$4 sm:$0xff]  }
  0xb5   :  { %1727 = vmatprep.subr.bf16.mxu0 %v3997_v59  ;;  %1899 = vmatprep.subr.bf16.mxu1 %v3999_v60  ;;  %v4081_v59 = vld [vmem:[#allocation5 + $0x380] ss:$16 sps:$4 sm:$0xff]   ;;  %v4084_v60 = vld [vmem:[#allocation5 + $0x388] ss:$16 sps:$4 sm:$0xff]  }
  0xb8   :  { %1728 = vmatpush1.bf16.msra.mxu0 %v4001_v61  ;;  %1900 = vmatpush1.bf16.msra.mxu1 %v4002_v62  ;;  %v4089_v61 = vld [vmem:[#allocation5 + $0x3a4] ss:$16 sps:$4 sm:$0xff]   ;;  %v4092_v62 = vld [vmem:[#allocation5 + $0x3ac] ss:$16 sps:$4 sm:$0xff]  }
  0xb9   :  { %1729 = vmatprep.subr.bf16.mxu0 %v4003_v63  ;;  %1901 = vmatprep.subr.bf16.mxu1 %v4005_v0  ;;  %v4087_v63 = vld [vmem:[#allocation5 + $0x3a0] ss:$16 sps:$4 sm:$0xff]   ;;  %v4090_v0 = vld [vmem:[#allocation5 + $0x3a8] ss:$16 sps:$4 sm:$0xff]  }
  0xbc   :  { %1730 = vmatpush1.bf16.msra.mxu0 %v4007_v1  ;;  %1902 = vmatpush1.bf16.msra.mxu1 %v4008_v2  ;;  %v4095_v1 = vld [vmem:[#allocation5 + $0x3c4] ss:$16 sps:$4 sm:$0xff]   ;;  %v4098_v2 = vld [vmem:[#allocation5 + $0x3cc] ss:$16 sps:$4 sm:$0xff]  }
  0xbd   :  { %1742 = vmatprep.subr.bf16.mxu0 %v4011_v3  ;;  %1914 = vmatprep.subr.bf16.mxu1 %v4014_v6  ;;  %v4093_v3 = vld [vmem:[#allocation5 + $0x3c0] ss:$16 sps:$4 sm:$0xff]   ;;  %v4104_v6 = vld [vmem:[#allocation5 + $0x3ec] ss:$16 sps:$4 sm:$0xff]  }
  0xbf   :  { %1732 = vmatmul.mubr.bf16.vlgmr.msra.gmra.mrb[0].mxu0 %v390_v9  ;;  %1904 = vmatmul.mubr.bf16.vlgmr.msra.gmra.mrb[0].mxu1 %v390_v9  ;;  %v4107_v9 = vld [vmem:[#allocation5 + $0x404] ss:$16 sps:$4 sm:$0xff]  }
  0xc0   :  { %1743 = vmatpush1.bf16.msra.mxu0 %v4009_v7  ;;  %1915 = vmatpush1.bf16.msra.mxu1 %v4012_v8  ;;  %v4099_v7 = vld [vmem:[#allocation5 + $0x3e0] ss:$16 sps:$4 sm:$0xff]   ;;  %v4102_v8 = vld [vmem:[#allocation5 + $0x3e8] ss:$16 sps:$4 sm:$0xff]  }
  0xc1   :  { %1744 = vmatprep.subr.bf16.mxu0 %v4017_v10  ;;  %1916 = vmatprep.subr.bf16.mxu1 %v4020_v11  ;;  %v119_v10 = vld [vmem:[#allocation2 + $0x10] sm:$0xff] }
  0xc2   :  { %1774 = vmatprep.mubr.bf16.mxu0 %v393_v36  ;;  %1946 = vmatprep.mubr.bf16.mxu1 %v393_v36  ;;  %v127_v11 = vld [vmem:[#allocation2 + $0x50] sm:$0xff]  ;;  %v4140_v36 = vld [vmem:[#allocation5 + $0x4ac] ss:$16 sps:$4 sm:$0xff]  }
  0xc4   :  { %1745 = vmatpush1.bf16.msra.mxu0 %v4015_v12  ;;  %1917 = vmatpush1.bf16.msra.mxu1 %v4018_v13  ;;  %v4110_v12 = vld [vmem:[#allocation5 + $0x40c] ss:$16 sps:$4 sm:$0xff]   ;;  %v4105_v13 = vld [vmem:[#allocation5 + $0x400] ss:$16 sps:$4 sm:$0xff]  }
  0xc5   :  { %1746 = vmatprep.subr.bf16.mxu0 %v4023_v14  ;;  %1918 = vmatprep.subr.bf16.mxu1 %v4026_v15  ;;  %v4108_v14 = vld [vmem:[#allocation5 + $0x408] ss:$16 sps:$4 sm:$0xff]   ;;  %v392_v15 = vpack.c.bf16 %v127_v11, %v119_v10  ;;  %v4197_v11 = vld [vmem:[#allocation5 + $0x5e4] ss:$16 sps:$4 sm:$0xff]  }
  0xc6   :  { %v4192_v10 = vld [vmem:[#allocation5 + $0x5c8] ss:$16 sps:$4 sm:$0xff]  }
  0xc8   :  { %1747 = vmatpush1.bf16.msra.mxu0 %v4021_v16  ;;  %1919 = vmatpush1.bf16.msra.mxu1 %v4024_v17  ;;  %v4113_v16 = vld [vmem:[#allocation5 + $0x424] ss:$16 sps:$4 sm:$0xff]   ;;  %v4116_v17 = vld [vmem:[#allocation5 + $0x42c] ss:$16 sps:$4 sm:$0xff]  }
  0xc9   :  { %1748 = vmatprep.subr.bf16.mxu0 %v4029_v18  ;;  %1920 = vmatprep.subr.bf16.mxu1 %v4032_v19  ;;  %v122_v18 = vld [vmem:[#allocation2 + $0x28] sm:$0xff] }
  0xca   :  { %v130_v19 = vld [vmem:[#allocation2 + $0x68] sm:$0xff] }
  0xcc   :  { %1749 = vmatpush1.bf16.msra.mxu0 %v4027_v20  ;;  %1921 = vmatpush1.bf16.msra.mxu1 %v4030_v21  ;;  %v4111_v20 = vld [vmem:[#allocation5 + $0x420] ss:$16 sps:$4 sm:$0xff]   ;;  %v4114_v21 = vld [vmem:[#allocation5 + $0x428] ss:$16 sps:$4 sm:$0xff]  }
  0xcd   :  { %1750 = vmatprep.subr.bf16.mxu0 %v4035_v22  ;;  %1922 = vmatprep.subr.bf16.mxu1 %v4038_v23  ;;  %v395_v22 = vpack.c.bf16 %v130_v19, %v122_v18  ;;  %v4119_v23 = vld [vmem:[#allocation5 + $0x444] ss:$16 sps:$4 sm:$0xff]   ;;  %v4206_v18 = vld [vmem:[#allocation5 + $0x60c] ss:$16 sps:$4 sm:$0xff]   ;;  %v4201_v19 = vld [vmem:[#allocation5 + $0x600] ss:$16 sps:$4 sm:$0xff]  }
  0xd0   :  { %1751 = vmatpush1.bf16.msra.mxu0 %v4033_v24  ;;  %1923 = vmatpush1.bf16.msra.mxu1 %v4036_v25  ;;  %v4122_v24 = vld [vmem:[#allocation5 + $0x44c] ss:$16 sps:$4 sm:$0xff]   ;;  %v4117_v25 = vld [vmem:[#allocation5 + $0x440] ss:$16 sps:$4 sm:$0xff]  }
  0xd1   :  { %1752 = vmatprep.subr.bf16.mxu0 %v4041_v26  ;;  %1924 = vmatprep.subr.bf16.mxu1 %v4044_v27  ;;  %v4120_v26 = vld [vmem:[#allocation5 + $0x448] ss:$16 sps:$4 sm:$0xff]   ;;  %v4125_v27 = vld [vmem:[#allocation5 + $0x464] ss:$16 sps:$4 sm:$0xff]  }
  0xd4   :  { %1753 = vmatpush1.bf16.msra.mxu0 %v4039_v28  ;;  %1925 = vmatpush1.bf16.msra.mxu1 %v4042_v29  ;;  %v4128_v28 = vld [vmem:[#allocation5 + $0x46c] ss:$16 sps:$4 sm:$0xff]   ;;  %v4123_v29 = vld [vmem:[#allocation5 + $0x460] ss:$16 sps:$4 sm:$0xff]  }
  0xd5   :  { %1754 = vmatprep.subr.bf16.mxu0 %v4047_v30  ;;  %1926 = vmatprep.subr.bf16.mxu1 %v4050_v31  ;;  %v4126_v30 = vld [vmem:[#allocation5 + $0x468] ss:$16 sps:$4 sm:$0xff]   ;;  %v4131_v31 = vld [vmem:[#allocation5 + $0x484] ss:$16 sps:$4 sm:$0xff]  }
  0xd8   :  { %1755 = vmatpush1.bf16.msra.mxu0 %v4045_v34  ;;  %1927 = vmatpush1.bf16.msra.mxu1 %v4048_v35  ;;  %v4132_v34 = vld [vmem:[#allocation5 + $0x488] ss:$16 sps:$4 sm:$0xff]   ;;  %v4137_v35 = vld [vmem:[#allocation5 + $0x4a4] ss:$16 sps:$4 sm:$0xff]  }
  0xd9   :  { %1756 = vmatprep.subr.bf16.mxu0 %v4053_v37  ;;  %1928 = vmatprep.subr.bf16.mxu1 %v4056_v38  ;;  %v4135_v37 = vld [vmem:[#allocation5 + $0x4a0] ss:$16 sps:$4 sm:$0xff]   ;;  %v4138_v38 = vld [vmem:[#allocation5 + $0x4a8] ss:$16 sps:$4 sm:$0xff]  }
  0xdc   :  { %1757 = vmatpush1.bf16.msra.mxu0 %v4051_v39  ;;  %1929 = vmatpush1.bf16.msra.mxu1 %v4054_v40  ;;  %v4143_v39 = vld [vmem:[#allocation5 + $0x4c4] ss:$16 sps:$4 sm:$0xff]   ;;  %v4146_v40 = vld [vmem:[#allocation5 + $0x4cc] ss:$16 sps:$4 sm:$0xff]  }
  0xdd   :  { %1758 = vmatprep.subr.bf16.mxu0 %v4059_v41  ;;  %1930 = vmatprep.subr.bf16.mxu1 %v4062_v42  ;;  %v4141_v41 = vld [vmem:[#allocation5 + $0x4c0] ss:$16 sps:$4 sm:$0xff]   ;;  %v4144_v42 = vld [vmem:[#allocation5 + $0x4c8] ss:$16 sps:$4 sm:$0xff]  }
  0xe0   :  { %1759 = vmatpush1.bf16.msra.mxu0 %v4057_v43  ;;  %1931 = vmatpush1.bf16.msra.mxu1 %v4060_v44  ;;  %v4149_v43 = vld [vmem:[#allocation5 + $0x4e4] ss:$16 sps:$4 sm:$0xff]   ;;  %v4152_v44 = vld [vmem:[#allocation5 + $0x4ec] ss:$16 sps:$4 sm:$0xff]  }
  0xe1   :  { %1760 = vmatprep.subr.bf16.mxu0 %v4065_v45  ;;  %1932 = vmatprep.subr.bf16.mxu1 %v4068_v46  ;;  %v4147_v45 = vld [vmem:[#allocation5 + $0x4e0] ss:$16 sps:$4 sm:$0xff]   ;;  %v4150_v46 = vld [vmem:[#allocation5 + $0x4e8] ss:$16 sps:$4 sm:$0xff]  }
  0xe4   :  { %1761 = vmatpush1.bf16.msra.mxu0 %v4063_v47  ;;  %1933 = vmatpush1.bf16.msra.mxu1 %v4066_v48  ;;  %v4155_v47 = vld [vmem:[#allocation5 + $0x504] ss:$16 sps:$4 sm:$0xff]   ;;  %v4158_v48 = vld [vmem:[#allocation5 + $0x50c] ss:$16 sps:$4 sm:$0xff]  }
  0xe5   :  { %1762 = vmatprep.subr.bf16.mxu0 %v4071_v49  ;;  %1934 = vmatprep.subr.bf16.mxu1 %v4074_v50  ;;  %v4153_v49 = vld [vmem:[#allocation5 + $0x500] ss:$16 sps:$4 sm:$0xff]   ;;  %v4156_v50 = vld [vmem:[#allocation5 + $0x508] ss:$16 sps:$4 sm:$0xff]  }
  0xe8   :  { %1763 = vmatpush1.bf16.msra.mxu0 %v4069_v51  ;;  %1935 = vmatpush1.bf16.msra.mxu1 %v4072_v52  ;;  %v4161_v51 = vld [vmem:[#allocation5 + $0x524] ss:$16 sps:$4 sm:$0xff]   ;;  %v4164_v52 = vld [vmem:[#allocation5 + $0x52c] ss:$16 sps:$4 sm:$0xff]  }
  0xe9   :  { %1764 = vmatprep.subr.bf16.mxu0 %v4077_v53  ;;  %1936 = vmatprep.subr.bf16.mxu1 %v4080_v54  ;;  %v4159_v53 = vld [vmem:[#allocation5 + $0x520] ss:$16 sps:$4 sm:$0xff]   ;;  %v4162_v54 = vld [vmem:[#allocation5 + $0x528] ss:$16 sps:$4 sm:$0xff]  }
  0xec   :  { %1765 = vmatpush1.bf16.msra.mxu0 %v4075_v55  ;;  %1937 = vmatpush1.bf16.msra.mxu1 %v4078_v56  ;;  %v4167_v55 = vld [vmem:[#allocation5 + $0x544] ss:$16 sps:$4 sm:$0xff]   ;;  %v4170_v56 = vld [vmem:[#allocation5 + $0x54c] ss:$16 sps:$4 sm:$0xff]  }
  0xed   :  { %1766 = vmatprep.subr.bf16.mxu0 %v4083_v57  ;;  %1938 = vmatprep.subr.bf16.mxu1 %v4086_v58  ;;  %v4165_v57 = vld [vmem:[#allocation5 + $0x540] ss:$16 sps:$4 sm:$0xff]   ;;  %v4168_v58 = vld [vmem:[#allocation5 + $0x548] ss:$16 sps:$4 sm:$0xff]  }
  0xf0   :  { %1767 = vmatpush1.bf16.msra.mxu0 %v4081_v59  ;;  %1939 = vmatpush1.bf16.msra.mxu1 %v4084_v60  ;;  %v4173_v59 = vld [vmem:[#allocation5 + $0x564] ss:$16 sps:$4 sm:$0xff]   ;;  %v4176_v60 = vld [vmem:[#allocation5 + $0x56c] ss:$16 sps:$4 sm:$0xff]  }
  0xf1   :  { %1768 = vmatprep.subr.bf16.mxu0 %v4089_v61  ;;  %1940 = vmatprep.subr.bf16.mxu1 %v4092_v62  ;;  %v4171_v61 = vld [vmem:[#allocation5 + $0x560] ss:$16 sps:$4 sm:$0xff]   ;;  %v4174_v62 = vld [vmem:[#allocation5 + $0x568] ss:$16 sps:$4 sm:$0xff]  }
  0xf4   :  { %1769 = vmatpush1.bf16.msra.mxu0 %v4087_v63  ;;  %1941 = vmatpush1.bf16.msra.mxu1 %v4090_v0  ;;  %v4179_v63 = vld [vmem:[#allocation5 + $0x584] ss:$16 sps:$4 sm:$0xff]   ;;  %v4182_v0 = vld [vmem:[#allocation5 + $0x58c] ss:$16 sps:$4 sm:$0xff]  }
  0xf5   :  { %1770 = vmatprep.subr.bf16.mxu0 %v4095_v1  ;;  %1942 = vmatprep.subr.bf16.mxu1 %v4098_v2  ;;  %v4177_v1 = vld [vmem:[#allocation5 + $0x580] ss:$16 sps:$4 sm:$0xff]   ;;  %v4180_v2 = vld [vmem:[#allocation5 + $0x588] ss:$16 sps:$4 sm:$0xff]  }
  0xf8   :  { %1771 = vmatpush1.bf16.msra.mxu0 %v4093_v3  ;;  %1943 = vmatpush1.bf16.msra.mxu1 %v4096_v4  ;;  %v4185_v3 = vld [vmem:[#allocation5 + $0x5a4] ss:$16 sps:$4 sm:$0xff]   ;;  %v4188_v4 = vld [vmem:[#allocation5 + $0x5ac] ss:$16 sps:$4 sm:$0xff]  }
  0xf9   :  { %1772 = vmatprep.subr.bf16.mxu0 %v4101_v5  ;;  %1944 = vmatprep.subr.bf16.mxu1 %v4104_v6  ;;  %v4183_v5 = vld [vmem:[#allocation5 + $0x5a0] ss:$16 sps:$4 sm:$0xff]   ;;  %v4186_v6 = vld [vmem:[#allocation5 + $0x5a8] ss:$16 sps:$4 sm:$0xff]  }
  0xfc   :  { %1773 = vmatpush1.bf16.msra.mxu0 %v4099_v7  ;;  %1945 = vmatpush1.bf16.msra.mxu1 %v4102_v8  ;;  %v4191_v7 = vld [vmem:[#allocation5 + $0x5c4] ss:$16 sps:$4 sm:$0xff]   ;;  %v4194_v8 = vld [vmem:[#allocation5 + $0x5cc] ss:$16 sps:$4 sm:$0xff]  }
  0xfd   :  { %1785 = vmatprep.subr.bf16.mxu0 %v4107_v9  ;;  %1957 = vmatprep.subr.bf16.mxu1 %v4110_v12  ;;  %v4189_v9 = vld [vmem:[#allocation5 + $0x5c0] ss:$16 sps:$4 sm:$0xff]   ;;  %v4200_v12 = vld [vmem:[#allocation5 + $0x5ec] ss:$16 sps:$4 sm:$0xff]  }
  0xff   :  { %1775 = vmatmul.mubr.bf16.vlgmr.msra.gmra.mrb[0].mxu0 %v392_v15  ;;  %1947 = vmatmul.mubr.bf16.vlgmr.msra.gmra.mrb[0].mxu1 %v392_v15  ;;  %v4203_v15 = vld [vmem:[#allocation5 + $0x604] ss:$16 sps:$4 sm:$0xff]  }
 0x100   :  { %1786 = vmatpush1.bf16.msra.mxu0 %v4105_v13  ;;  %1958 = vmatpush1.bf16.msra.mxu1 %v4108_v14  ;;  %v4195_v13 = vld [vmem:[#allocation5 + $0x5e0] ss:$16 sps:$4 sm:$0xff]   ;;  %v4198_v14 = vld [vmem:[#allocation5 + $0x5e8] ss:$16 sps:$4 sm:$0xff]  }
 0x101   :  { %1787 = vmatprep.subr.bf16.mxu0 %v4113_v16  ;;  %1959 = vmatprep.subr.bf16.mxu1 %v4116_v17  ;;  %v121_v16 = vld [vmem:[#allocation2 + $0x20] sm:$0xff] }
 0x102   :  { %1817 = vmatprep.mubr.bf16.mxu0 %v395_v22  ;;  %1989 = vmatprep.mubr.bf16.mxu1 %v395_v22  ;;  %v129_v17 = vld [vmem:[#allocation2 + $0x60] sm:$0xff]  ;;  %v124_v22 = vld [vmem:[#allocation2 + $0x38] sm:$0xff] }
 0x104   :  { %1788 = vmatpush1.bf16.msra.mxu0 %v4111_v20  ;;  %1960 = vmatpush1.bf16.msra.mxu1 %v4114_v21  ;;  %v4204_v20 = vld [vmem:[#allocation5 + $0x608] ss:$16 sps:$4 sm:$0xff]   ;;  %v394_v21 = vpack.c.bf16 %v129_v17, %v121_v16  ;;  %v4293_v17 = vld [vmem:[#allocation5 + $0x7e4] ss:$16 sps:$4 sm:$0xff]  }
 0x105   :  { %1789 = vmatprep.subr.bf16.mxu0 %v4119_v23  ;;  %1961 = vmatprep.subr.bf16.mxu1 %v4122_v24  ;;  %v132_v23 = vld [vmem:[#allocation2 + $0x78] sm:$0xff]  ;;  %v4209_v24 = vld [vmem:[#allocation5 + $0x624] ss:$16 sps:$4 sm:$0xff]  }
 0x106   :  { %v4288_v16 = vld [vmem:[#allocation5 + $0x7c8] ss:$16 sps:$4 sm:$0xff]  }
 0x108   :  { %1790 = vmatpush1.bf16.msra.mxu0 %v4117_v25  ;;  %1962 = vmatpush1.bf16.msra.mxu1 %v4120_v26  ;;  %v4212_v25 = vld [vmem:[#allocation5 + $0x62c] ss:$16 sps:$4 sm:$0xff]   ;;  %v397_v26 = vpack.c.bf16 %v132_v23, %v124_v22  ;;  %v131_v22 = vld [vmem:[#allocation2 + $0x70] sm:$0xff]  ;;  %v4299_v23 = vld [vmem:[#allocation8 + $0x4] ss:$16 sps:$4 sm:$0xff]  }
 0x109   :  { %1791 = vmatprep.subr.bf16.mxu0 %v4125_v27  ;;  %1963 = vmatprep.subr.bf16.mxu1 %v4128_v28  ;;  %v4207_v27 = vld [vmem:[#allocation5 + $0x620] ss:$16 sps:$4 sm:$0xff]   ;;  %v4210_v28 = vld [vmem:[#allocation5 + $0x628] ss:$16 sps:$4 sm:$0xff]  }
 0x10c   :  { %1792 = vmatpush1.bf16.msra.mxu0 %v4123_v29  ;;  %1964 = vmatpush1.bf16.msra.mxu1 %v4126_v30  ;;  %v4215_v29 = vld [vmem:[#allocation5 + $0x644] ss:$16 sps:$4 sm:$0xff]   ;;  %v4218_v30 = vld [vmem:[#allocation5 + $0x64c] ss:$16 sps:$4 sm:$0xff]  }
 0x10d   :  { %1793 = vmatprep.subr.bf16.mxu0 %v4131_v31  ;;  %1965 = vmatprep.subr.bf16.mxu1 %v4134_v32  ;;  %v4213_v31 = vld [vmem:[#allocation5 + $0x640] ss:$16 sps:$4 sm:$0xff]   ;;  %v4216_v32 = vld [vmem:[#allocation5 + $0x648] ss:$16 sps:$4 sm:$0xff]  }
 0x110   :  { %1794 = vmatpush1.bf16.msra.mxu0 %v4129_v33  ;;  %1966 = vmatpush1.bf16.msra.mxu1 %v4132_v34  ;;  %v4221_v33 = vld [vmem:[#allocation5 + $0x664] ss:$16 sps:$4 sm:$0xff]   ;;  %v4224_v34 = vld [vmem:[#allocation5 + $0x66c] ss:$16 sps:$4 sm:$0xff]  }
 0x111   :  { %1795 = vmatprep.subr.bf16.mxu0 %v4137_v35  ;;  %1967 = vmatprep.subr.bf16.mxu1 %v4140_v36  ;;  %v4219_v35 = vld [vmem:[#allocation5 + $0x660] ss:$16 sps:$4 sm:$0xff]   ;;  %v4222_v36 = vld [vmem:[#allocation5 + $0x668] ss:$16 sps:$4 sm:$0xff]  }
 0x114   :  { %1796 = vmatpush1.bf16.msra.mxu0 %v4135_v37  ;;  %1968 = vmatpush1.bf16.msra.mxu1 %v4138_v38  ;;  %v4227_v37 = vld [vmem:[#allocation5 + $0x684] ss:$16 sps:$4 sm:$0xff]   ;;  %v4230_v38 = vld [vmem:[#allocation5 + $0x68c] ss:$16 sps:$4 sm:$0xff]  }
 0x115   :  { %1797 = vmatprep.subr.bf16.mxu0 %v4143_v39  ;;  %1969 = vmatprep.subr.bf16.mxu1 %v4146_v40  ;;  %v4225_v39 = vld [vmem:[#allocation5 + $0x680] ss:$16 sps:$4 sm:$0xff]   ;;  %v4228_v40 = vld [vmem:[#allocation5 + $0x688] ss:$16 sps:$4 sm:$0xff]  }
 0x118   :  { %1798 = vmatpush1.bf16.msra.mxu0 %v4141_v41  ;;  %1970 = vmatpush1.bf16.msra.mxu1 %v4144_v42  ;;  %v4233_v41 = vld [vmem:[#allocation5 + $0x6a4] ss:$16 sps:$4 sm:$0xff]   ;;  %v4236_v42 = vld [vmem:[#allocation5 + $0x6ac] ss:$16 sps:$4 sm:$0xff]  }
 0x119   :  { %1799 = vmatprep.subr.bf16.mxu0 %v4149_v43  ;;  %1971 = vmatprep.subr.bf16.mxu1 %v4152_v44  ;;  %v4231_v43 = vld [vmem:[#allocation5 + $0x6a0] ss:$16 sps:$4 sm:$0xff]   ;;  %v4234_v44 = vld [vmem:[#allocation5 + $0x6a8] ss:$16 sps:$4 sm:$0xff]  }
 0x11c   :  { %1800 = vmatpush1.bf16.msra.mxu0 %v4147_v45  ;;  %1972 = vmatpush1.bf16.msra.mxu1 %v4150_v46  ;;  %v4239_v45 = vld [vmem:[#allocation5 + $0x6c4] ss:$16 sps:$4 sm:$0xff]   ;;  %v4242_v46 = vld [vmem:[#allocation5 + $0x6cc] ss:$16 sps:$4 sm:$0xff]  }
 0x11d   :  { %1801 = vmatprep.subr.bf16.mxu0 %v4155_v47  ;;  %1973 = vmatprep.subr.bf16.mxu1 %v4158_v48  ;;  %v4237_v47 = vld [vmem:[#allocation5 + $0x6c0] ss:$16 sps:$4 sm:$0xff]   ;;  %v4240_v48 = vld [vmem:[#allocation5 + $0x6c8] ss:$16 sps:$4 sm:$0xff]  }
 0x120   :  { %1802 = vmatpush1.bf16.msra.mxu0 %v4153_v49  ;;  %1974 = vmatpush1.bf16.msra.mxu1 %v4156_v50  ;;  %v4245_v49 = vld [vmem:[#allocation5 + $0x6e4] ss:$16 sps:$4 sm:$0xff]   ;;  %v4248_v50 = vld [vmem:[#allocation5 + $0x6ec] ss:$16 sps:$4 sm:$0xff]  }
 0x121   :  { %1803 = vmatprep.subr.bf16.mxu0 %v4161_v51  ;;  %1975 = vmatprep.subr.bf16.mxu1 %v4164_v52  ;;  %v4243_v51 = vld [vmem:[#allocation5 + $0x6e0] ss:$16 sps:$4 sm:$0xff]   ;;  %v4246_v52 = vld [vmem:[#allocation5 + $0x6e8] ss:$16 sps:$4 sm:$0xff]  }
 0x124   :  { %1804 = vmatpush1.bf16.msra.mxu0 %v4159_v53  ;;  %1976 = vmatpush1.bf16.msra.mxu1 %v4162_v54  ;;  %v4251_v53 = vld [vmem:[#allocation5 + $0x704] ss:$16 sps:$4 sm:$0xff]   ;;  %v4254_v54 = vld [vmem:[#allocation5 + $0x70c] ss:$16 sps:$4 sm:$0xff]  }
 0x125   :  { %1805 = vmatprep.subr.bf16.mxu0 %v4167_v55  ;;  %1977 = vmatprep.subr.bf16.mxu1 %v4170_v56  ;;  %v4249_v55 = vld [vmem:[#allocation5 + $0x700] ss:$16 sps:$4 sm:$0xff]   ;;  %v4252_v56 = vld [vmem:[#allocation5 + $0x708] ss:$16 sps:$4 sm:$0xff]  }
 0x128   :  { %1806 = vmatpush1.bf16.msra.mxu0 %v4165_v57  ;;  %1978 = vmatpush1.bf16.msra.mxu1 %v4168_v58  ;;  %v4257_v57 = vld [vmem:[#allocation5 + $0x724] ss:$16 sps:$4 sm:$0xff]   ;;  %v4260_v58 = vld [vmem:[#allocation5 + $0x72c] ss:$16 sps:$4 sm:$0xff]  }
 0x129   :  { %1807 = vmatprep.subr.bf16.mxu0 %v4173_v59  ;;  %1979 = vmatprep.subr.bf16.mxu1 %v4176_v60  ;;  %v4255_v59 = vld [vmem:[#allocation5 + $0x720] ss:$16 sps:$4 sm:$0xff]   ;;  %v4258_v60 = vld [vmem:[#allocation5 + $0x728] ss:$16 sps:$4 sm:$0xff]  }
 0x12c   :  { %1808 = vmatpush1.bf16.msra.mxu0 %v4171_v61  ;;  %1980 = vmatpush1.bf16.msra.mxu1 %v4174_v62  ;;  %v4263_v61 = vld [vmem:[#allocation5 + $0x744] ss:$16 sps:$4 sm:$0xff]   ;;  %v4266_v62 = vld [vmem:[#allocation5 + $0x74c] ss:$16 sps:$4 sm:$0xff]  }
 0x12d   :  { %1809 = vmatprep.subr.bf16.mxu0 %v4179_v63  ;;  %1981 = vmatprep.subr.bf16.mxu1 %v4182_v0  ;;  %v4261_v63 = vld [vmem:[#allocation5 + $0x740] ss:$16 sps:$4 sm:$0xff]   ;;  %v4264_v0 = vld [vmem:[#allocation5 + $0x748] ss:$16 sps:$4 sm:$0xff]  }
 0x130   :  { %1810 = vmatpush1.bf16.msra.mxu0 %v4177_v1  ;;  %1982 = vmatpush1.bf16.msra.mxu1 %v4180_v2  ;;  %v4269_v1 = vld [vmem:[#allocation5 + $0x764] ss:$16 sps:$4 sm:$0xff]   ;;  %v4272_v2 = vld [vmem:[#allocation5 + $0x76c] ss:$16 sps:$4 sm:$0xff]  }
 0x131   :  { %1811 = vmatprep.subr.bf16.mxu0 %v4185_v3  ;;  %1983 = vmatprep.subr.bf16.mxu1 %v4188_v4  ;;  %v4267_v3 = vld [vmem:[#allocation5 + $0x760] ss:$16 sps:$4 sm:$0xff]   ;;  %v4270_v4 = vld [vmem:[#allocation5 + $0x768] ss:$16 sps:$4 sm:$0xff]  }
 0x134   :  { %1812 = vmatpush1.bf16.msra.mxu0 %v4183_v5  ;;  %1984 = vmatpush1.bf16.msra.mxu1 %v4186_v6  ;;  %v4275_v5 = vld [vmem:[#allocation5 + $0x784] ss:$16 sps:$4 sm:$0xff]   ;;  %v4278_v6 = vld [vmem:[#allocation5 + $0x78c] ss:$16 sps:$4 sm:$0xff]  }
 0x135   :  { %1813 = vmatprep.subr.bf16.mxu0 %v4191_v7  ;;  %1985 = vmatprep.subr.bf16.mxu1 %v4194_v8  ;;  %v4273_v7 = vld [vmem:[#allocation5 + $0x780] ss:$16 sps:$4 sm:$0xff]   ;;  %v4276_v8 = vld [vmem:[#allocation5 + $0x788] ss:$16 sps:$4 sm:$0xff]  }
 0x138   :  { %1814 = vmatpush1.bf16.msra.mxu0 %v4189_v9  ;;  %1986 = vmatpush1.bf16.msra.mxu1 %v4192_v10  ;;  %v4281_v9 = vld [vmem:[#allocation5 + $0x7a4] ss:$16 sps:$4 sm:$0xff]   ;;  %v4284_v10 = vld [vmem:[#allocation5 + $0x7ac] ss:$16 sps:$4 sm:$0xff]  }
 0x139   :  { %1815 = vmatprep.subr.bf16.mxu0 %v4197_v11  ;;  %1987 = vmatprep.subr.bf16.mxu1 %v4200_v12  ;;  %v4279_v11 = vld [vmem:[#allocation5 + $0x7a0] ss:$16 sps:$4 sm:$0xff]   ;;  %v4282_v12 = vld [vmem:[#allocation5 + $0x7a8] ss:$16 sps:$4 sm:$0xff]  }
 0x13c   :  { %1816 = vmatpush1.bf16.msra.mxu0 %v4195_v13  ;;  %1988 = vmatpush1.bf16.msra.mxu1 %v4198_v14  ;;  %v4287_v13 = vld [vmem:[#allocation5 + $0x7c4] ss:$16 sps:$4 sm:$0xff]   ;;  %v4290_v14 = vld [vmem:[#allocation5 + $0x7cc] ss:$16 sps:$4 sm:$0xff]  }
 0x13d   :  { %1828 = vmatprep.subr.bf16.mxu0 %v4203_v15  ;;  %2000 = vmatprep.subr.bf16.mxu1 %v4206_v18  ;;  %v4285_v15 = vld [vmem:[#allocation5 + $0x7c0] ss:$16 sps:$4 sm:$0xff]   ;;  %v4296_v18 = vld [vmem:[#allocation5 + $0x7ec] ss:$16 sps:$4 sm:$0xff]  }
 0x13f   :  { %1818 = vmatmul.mubr.bf16.vlgmr.msra.gmra.mrb[0].mxu0 %v394_v21  ;;  %1990 = vmatmul.mubr.bf16.vlgmr.msra.gmra.mrb[0].mxu1 %v394_v21  ;;  %v123_v21 = vld [vmem:[#allocation2 + $0x30] sm:$0xff] }
 0x140   :  { %1829 = vmatpush1.bf16.msra.mxu0 %v4201_v19  ;;  %2001 = vmatpush1.bf16.msra.mxu1 %v4204_v20  ;;  %v4291_v19 = vld [vmem:[#allocation5 + $0x7e0] ss:$16 sps:$4 sm:$0xff]   ;;  %v4294_v20 = vld [vmem:[#allocation5 + $0x7e8] ss:$16 sps:$4 sm:$0xff]  }
 0x141   :  { %1830 = vmatprep.subr.bf16.mxu0 %v4209_v24  ;;  %2002 = vmatprep.subr.bf16.mxu1 %v4212_v25  ;;  %v4302_v24 = vld [vmem:[#allocation8 + $0xc] ss:$16 sps:$4 sm:$0xff]   ;;  %v4297_v25 = vld [vmem:[#allocation8] ss:$16 sps:$4 sm:$0xff]  }
 0x142   :  { %1860 = vmatprep.mubr.bf16.mxu0 %v397_v26  ;;  %2032 = vmatprep.mubr.bf16.mxu1 %v397_v26  ;;  %v4300_v26 = vld [vmem:[#allocation8 + $0x8] ss:$16 sps:$4 sm:$0xff]  }
 0x144   :  { %1831 = vmatpush1.bf16.msra.mxu0 %v4207_v27  ;;  %2003 = vmatpush1.bf16.msra.mxu1 %v4210_v28  ;;  %v396_v27 = vpack.c.bf16 %v131_v22, %v123_v21  ;;  %v4305_v28 = vld [vmem:[#allocation8 + $0x24] ss:$16 sps:$4 sm:$0xff]   ;;  %v4392_v21 = vld [vmem:[#allocation8 + $0x1ec] ss:$16 sps:$4 sm:$0xff]   ;;  %v4387_v22 = vld [vmem:[#allocation8 + $0x1e0] ss:$16 sps:$4 sm:$0xff]  }
 0x145   :  { %1832 = vmatprep.subr.bf16.mxu0 %v4215_v29  ;;  %2004 = vmatprep.subr.bf16.mxu1 %v4218_v30  ;;  %v4308_v29 = vld [vmem:[#allocation8 + $0x2c] ss:$16 sps:$4 sm:$0xff]   ;;  %v4303_v30 = vld [vmem:[#allocation8 + $0x20] ss:$16 sps:$4 sm:$0xff]  }
 0x148   :  { %1833 = vmatpush1.bf16.msra.mxu0 %v4213_v31  ;;  %2005 = vmatpush1.bf16.msra.mxu1 %v4216_v32  ;;  %v4306_v31 = vld [vmem:[#allocation8 + $0x28] ss:$16 sps:$4 sm:$0xff]   ;;  %v4311_v32 = vld [vmem:[#allocation8 + $0x44] ss:$16 sps:$4 sm:$0xff]  }
 0x149   :  { %1834 = vmatprep.subr.bf16.mxu0 %v4221_v33  ;;  %2006 = vmatprep.subr.bf16.mxu1 %v4224_v34  ;;  %v4314_v33 = vld [vmem:[#allocation8 + $0x4c] ss:$16 sps:$4 sm:$0xff]   ;;  %v4309_v34 = vld [vmem:[#allocation8 + $0x40] ss:$16 sps:$4 sm:$0xff]  }
 0x14c   :  { %1835 = vmatpush1.bf16.msra.mxu0 %v4219_v35  ;;  %2007 = vmatpush1.bf16.msra.mxu1 %v4222_v36  ;;  %v4312_v35 = vld [vmem:[#allocation8 + $0x48] ss:$16 sps:$4 sm:$0xff]   ;;  %v4317_v36 = vld [vmem:[#allocation8 + $0x64] ss:$16 sps:$4 sm:$0xff]  }
 0x14d   :  { %1836 = vmatprep.subr.bf16.mxu0 %v4227_v37  ;;  %2008 = vmatprep.subr.bf16.mxu1 %v4230_v38  ;;  %v4320_v37 = vld [vmem:[#allocation8 + $0x6c] ss:$16 sps:$4 sm:$0xff]   ;;  %v4315_v38 = vld [vmem:[#allocation8 + $0x60] ss:$16 sps:$4 sm:$0xff]  }
 0x150   :  { %1837 = vmatpush1.bf16.msra.mxu0 %v4225_v39  ;;  %2009 = vmatpush1.bf16.msra.mxu1 %v4228_v40  ;;  %v4318_v39 = vld [vmem:[#allocation8 + $0x68] ss:$16 sps:$4 sm:$0xff]   ;;  %v4323_v40 = vld [vmem:[#allocation8 + $0x84] ss:$16 sps:$4 sm:$0xff]  }
 0x151   :  { %1838 = vmatprep.subr.bf16.mxu0 %v4233_v41  ;;  %2010 = vmatprep.subr.bf16.mxu1 %v4236_v42  ;;  %v4326_v41 = vld [vmem:[#allocation8 + $0x8c] ss:$16 sps:$4 sm:$0xff]   ;;  %v4321_v42 = vld [vmem:[#allocation8 + $0x80] ss:$16 sps:$4 sm:$0xff]  }
 0x154   :  { %1839 = vmatpush1.bf16.msra.mxu0 %v4231_v43  ;;  %2011 = vmatpush1.bf16.msra.mxu1 %v4234_v44  ;;  %v4324_v43 = vld [vmem:[#allocation8 + $0x88] ss:$16 sps:$4 sm:$0xff]   ;;  %v4329_v44 = vld [vmem:[#allocation8 + $0xa4] ss:$16 sps:$4 sm:$0xff]  }
 0x155   :  { %1840 = vmatprep.subr.bf16.mxu0 %v4239_v45  ;;  %2012 = vmatprep.subr.bf16.mxu1 %v4242_v46  ;;  %v4332_v45 = vld [vmem:[#allocation8 + $0xac] ss:$16 sps:$4 sm:$0xff]   ;;  %v4327_v46 = vld [vmem:[#allocation8 + $0xa0] ss:$16 sps:$4 sm:$0xff]  }
 0x158   :  { %1841 = vmatpush1.bf16.msra.mxu0 %v4237_v47  ;;  %2013 = vmatpush1.bf16.msra.mxu1 %v4240_v48  ;;  %v4330_v47 = vld [vmem:[#allocation8 + $0xa8] ss:$16 sps:$4 sm:$0xff]   ;;  %v4335_v48 = vld [vmem:[#allocation8 + $0xc4] ss:$16 sps:$4 sm:$0xff]  }
 0x159   :  { %1842 = vmatprep.subr.bf16.mxu0 %v4245_v49  ;;  %2014 = vmatprep.subr.bf16.mxu1 %v4248_v50  ;;  %v4338_v49 = vld [vmem:[#allocation8 + $0xcc] ss:$16 sps:$4 sm:$0xff]   ;;  %v4333_v50 = vld [vmem:[#allocation8 + $0xc0] ss:$16 sps:$4 sm:$0xff]  }
 0x15c   :  { %1843 = vmatpush1.bf16.msra.mxu0 %v4243_v51  ;;  %2015 = vmatpush1.bf16.msra.mxu1 %v4246_v52  ;;  %v4336_v51 = vld [vmem:[#allocation8 + $0xc8] ss:$16 sps:$4 sm:$0xff]   ;;  %v4341_v52 = vld [vmem:[#allocation8 + $0xe4] ss:$16 sps:$4 sm:$0xff]  }
 0x15d   :  { %1844 = vmatprep.subr.bf16.mxu0 %v4251_v53  ;;  %2016 = vmatprep.subr.bf16.mxu1 %v4254_v54  ;;  %v4344_v53 = vld [vmem:[#allocation8 + $0xec] ss:$16 sps:$4 sm:$0xff]   ;;  %v4339_v54 = vld [vmem:[#allocation8 + $0xe0] ss:$16 sps:$4 sm:$0xff]  }
 0x160   :  { %1845 = vmatpush1.bf16.msra.mxu0 %v4249_v55  ;;  %2017 = vmatpush1.bf16.msra.mxu1 %v4252_v56  ;;  %v4342_v55 = vld [vmem:[#allocation8 + $0xe8] ss:$16 sps:$4 sm:$0xff]   ;;  %v4347_v56 = vld [vmem:[#allocation8 + $0x104] ss:$16 sps:$4 sm:$0xff]  }
 0x161   :  { %1846 = vmatprep.subr.bf16.mxu0 %v4257_v57  ;;  %2018 = vmatprep.subr.bf16.mxu1 %v4260_v58  ;;  %v4350_v57 = vld [vmem:[#allocation8 + $0x10c] ss:$16 sps:$4 sm:$0xff]   ;;  %v4345_v58 = vld [vmem:[#allocation8 + $0x100] ss:$16 sps:$4 sm:$0xff]  }
 0x164   :  { %1847 = vmatpush1.bf16.msra.mxu0 %v4255_v59  ;;  %2019 = vmatpush1.bf16.msra.mxu1 %v4258_v60  ;;  %v4348_v59 = vld [vmem:[#allocation8 + $0x108] ss:$16 sps:$4 sm:$0xff]   ;;  %v4353_v60 = vld [vmem:[#allocation8 + $0x124] ss:$16 sps:$4 sm:$0xff]  }
 0x165   :  { %1848 = vmatprep.subr.bf16.mxu0 %v4263_v61  ;;  %2020 = vmatprep.subr.bf16.mxu1 %v4266_v62  ;;  %v4356_v61 = vld [vmem:[#allocation8 + $0x12c] ss:$16 sps:$4 sm:$0xff]   ;;  %v4351_v62 = vld [vmem:[#allocation8 + $0x120] ss:$16 sps:$4 sm:$0xff]  }
 0x168   :  { %1849 = vmatpush1.bf16.msra.mxu0 %v4261_v63  ;;  %2021 = vmatpush1.bf16.msra.mxu1 %v4264_v0  ;;  %v4354_v63 = vld [vmem:[#allocation8 + $0x128] ss:$16 sps:$4 sm:$0xff]   ;;  %v4359_v0 = vld [vmem:[#allocation8 + $0x144] ss:$16 sps:$4 sm:$0xff]  }
 0x169   :  { %1850 = vmatprep.subr.bf16.mxu0 %v4269_v1  ;;  %2022 = vmatprep.subr.bf16.mxu1 %v4272_v2  ;;  %v4362_v1 = vld [vmem:[#allocation8 + $0x14c] ss:$16 sps:$4 sm:$0xff]   ;;  %v4357_v2 = vld [vmem:[#allocation8 + $0x140] ss:$16 sps:$4 sm:$0xff]  }
 0x16c   :  { %1851 = vmatpush1.bf16.msra.mxu0 %v4267_v3  ;;  %2023 = vmatpush1.bf16.msra.mxu1 %v4270_v4  ;;  %v4360_v3 = vld [vmem:[#allocation8 + $0x148] ss:$16 sps:$4 sm:$0xff]   ;;  %v4365_v4 = vld [vmem:[#allocation8 + $0x164] ss:$16 sps:$4 sm:$0xff]  }
 0x16d   :  { %1852 = vmatprep.subr.bf16.mxu0 %v4275_v5  ;;  %2024 = vmatprep.subr.bf16.mxu1 %v4278_v6  ;;  %v4368_v5 = vld [vmem:[#allocation8 + $0x16c] ss:$16 sps:$4 sm:$0xff]   ;;  %v4363_v6 = vld [vmem:[#allocation8 + $0x160] ss:$16 sps:$4 sm:$0xff]  }
 0x170   :  { %1853 = vmatpush1.bf16.msra.mxu0 %v4273_v7  ;;  %2025 = vmatpush1.bf16.msra.mxu1 %v4276_v8  ;;  %v4366_v7 = vld [vmem:[#allocation8 + $0x168] ss:$16 sps:$4 sm:$0xff]   ;;  %v4371_v8 = vld [vmem:[#allocation8 + $0x184] ss:$16 sps:$4 sm:$0xff]  }
 0x171   :  { %1854 = vmatprep.subr.bf16.mxu0 %v4281_v9  ;;  %2026 = vmatprep.subr.bf16.mxu1 %v4284_v10  ;;  %v4374_v9 = vld [vmem:[#allocation8 + $0x18c] ss:$16 sps:$4 sm:$0xff]   ;;  %v4369_v10 = vld [vmem:[#allocation8 + $0x180] ss:$16 sps:$4 sm:$0xff]  }
 0x174   :  { %1855 = vmatpush1.bf16.msra.mxu0 %v4279_v11  ;;  %2027 = vmatpush1.bf16.msra.mxu1 %v4282_v12  ;;  %v4372_v11 = vld [vmem:[#allocation8 + $0x188] ss:$16 sps:$4 sm:$0xff]   ;;  %v4377_v12 = vld [vmem:[#allocation8 + $0x1a4] ss:$16 sps:$4 sm:$0xff]  }
 0x175   :  { %1856 = vmatprep.subr.bf16.mxu0 %v4287_v13  ;;  %2028 = vmatprep.subr.bf16.mxu1 %v4290_v14  ;;  %v4380_v13 = vld [vmem:[#allocation8 + $0x1ac] ss:$16 sps:$4 sm:$0xff]   ;;  %v4375_v14 = vld [vmem:[#allocation8 + $0x1a0] ss:$16 sps:$4 sm:$0xff]  }
 0x178   :  { %1857 = vmatpush1.bf16.msra.mxu0 %v4285_v15  ;;  %2029 = vmatpush1.bf16.msra.mxu1 %v4288_v16  ;;  %v4378_v15 = vld [vmem:[#allocation8 + $0x1a8] ss:$16 sps:$4 sm:$0xff]   ;;  %v4383_v16 = vld [vmem:[#allocation8 + $0x1c4] ss:$16 sps:$4 sm:$0xff]  }
 0x179   :  { %1858 = vmatprep.subr.bf16.mxu0 %v4293_v17  ;;  %2030 = vmatprep.subr.bf16.mxu1 %v4296_v18  ;;  %v4386_v17 = vld [vmem:[#allocation8 + $0x1cc] ss:$16 sps:$4 sm:$0xff]   ;;  %v4381_v18 = vld [vmem:[#allocation8 + $0x1c0] ss:$16 sps:$4 sm:$0xff]  }
 0x17c   :  { %1859 = vmatpush1.bf16.msra.mxu0 %v4291_v19  ;;  %2031 = vmatpush1.bf16.msra.mxu1 %v4294_v20  ;;  %v4384_v19 = vld [vmem:[#allocation8 + $0x1c8] ss:$16 sps:$4 sm:$0xff]   ;;  %v4389_v20 = vld [vmem:[#allocation8 + $0x1e4] ss:$16 sps:$4 sm:$0xff]  }
 0x17d   :  { %2845 = vmatprep.subr.bf16.mxu0 %v4299_v23  ;;  %2931 = vmatprep.subr.bf16.mxu1 %v4302_v24  ;;  %v4390_v23 = vld [vmem:[#allocation8 + $0x1e8] ss:$16 sps:$4 sm:$0xff]   ;;  %v4395_v24 = vld [vmem:[#allocation8 + $0x204] ss:$16 sps:$4 sm:$0xff]  }
 0x17f   :  { %1861 = vmatmul.mubr.bf16.vlgmr.msra.gmra.mrb[0].mxu0 %v396_v27  ;;  %2033 = vmatmul.mubr.bf16.vlgmr.msra.gmra.mrb[0].mxu1 %v396_v27 }
 0x180   :  { %2846 = vmatpush1.bf16.msra.mxu0 %v4297_v25  ;;  %2932 = vmatpush1.bf16.msra.mxu1 %v4300_v26  ;;  %v4398_v25 = vld [vmem:[#allocation8 + $0x20c] ss:$16 sps:$4 sm:$0xff]   ;;  %v399_v26 = vlaneseq }
 0x181   :  { %2847 = vmatprep.subr.bf16.mxu0 %v4305_v28  ;;  %2933 = vmatprep.subr.bf16.mxu1 %v4308_v29 }
 0x182   :  { %v4846_v27 = vshrl.u32 %v399_v26, 7  ;;  %v4432_v26 = vld [vmem:[#allocation8 + $0x2c8] ss:$16 sps:$4 sm:$0xff]  }
 0x184   :  { %2848 = vmatpush1.bf16.msra.mxu0 %v4303_v30  ;;  %2934 = vmatpush1.bf16.msra.mxu1 %v4306_v31  ;;  %v401_v28 = vsub.s32 0, %v4846_v27  ;;  %v409_v29 = vsub.s32 2, %v4846_v27  ;;  %v389_v30 = vld [vmem:[#allocation7] sm:$0xf]  ;;  %v405_v31 = vsub.s32 1, %v4846_v27 }
 0x185   :  { %2849 = vmatprep.subr.bf16.mxu0 %v4311_v32  ;;  %2935 = vmatprep.subr.bf16.mxu1 %v4314_v33  ;;  %v413_v32 = vsub.s32 3, %v4846_v27 }
 0x186   :  { %v402_v33 = vrot.slane %v389_v30, %v401_v28 }
 0x188   :  { %2850 = vmatpush1.bf16.msra.mxu0 %v4309_v34  ;;  %2936 = vmatpush1.bf16.msra.mxu1 %v4312_v35  ;;  %v410_v34 = vrot.slane %v389_v30, %v409_v29  ;;  %v406_v35 = vrot.slane %v389_v30, %v405_v31 }
 0x189   :  { %2851 = vmatprep.subr.bf16.mxu0 %v4317_v36  ;;  %2937 = vmatprep.subr.bf16.mxu1 %v4320_v37  ;;  %v414_v36 = vrot.slane %v389_v30, %v413_v32  ;;  %v4437_v30 = vld [vmem:[#allocation8 + $0x2e4] ss:$16 sps:$4 sm:$0xff]  }
 0x18c   :  { %2852 = vmatpush1.bf16.msra.mxu0 %v4315_v38  ;;  %2938 = vmatpush1.bf16.msra.mxu1 %v4318_v39 }
 0x18d   :  { %2853 = vmatprep.subr.bf16.mxu0 %v4323_v40  ;;  %2939 = vmatprep.subr.bf16.mxu1 %v4326_v41 }
 0x190   :  { %2854 = vmatpush1.bf16.msra.mxu0 %v4321_v42  ;;  %2940 = vmatpush1.bf16.msra.mxu1 %v4324_v43 }
 0x191   :  { %2855 = vmatprep.subr.bf16.mxu0 %v4329_v44  ;;  %2941 = vmatprep.subr.bf16.mxu1 %v4332_v45 }
 0x194   :  { %2856 = vmatpush1.bf16.msra.mxu0 %v4327_v46  ;;  %2942 = vmatpush1.bf16.msra.mxu1 %v4330_v47 }
 0x195   :  { %2857 = vmatprep.subr.bf16.mxu0 %v4335_v48  ;;  %2943 = vmatprep.subr.bf16.mxu1 %v4338_v49 }
 0x198   :  { %2858 = vmatpush1.bf16.msra.mxu0 %v4333_v50  ;;  %2944 = vmatpush1.bf16.msra.mxu1 %v4336_v51 }
 0x199   :  { %2859 = vmatprep.subr.bf16.mxu0 %v4341_v52  ;;  %2945 = vmatprep.subr.bf16.mxu1 %v4344_v53 }
 0x19c   :  { %2860 = vmatpush1.bf16.msra.mxu0 %v4339_v54  ;;  %2946 = vmatpush1.bf16.msra.mxu1 %v4342_v55 }
 0x19d   :  { %2861 = vmatprep.subr.bf16.mxu0 %v4347_v56  ;;  %2947 = vmatprep.subr.bf16.mxu1 %v4350_v57 }
 0x1a0   :  { %2862 = vmatpush1.bf16.msra.mxu0 %v4345_v58  ;;  %2948 = vmatpush1.bf16.msra.mxu1 %v4348_v59 }
 0x1a1   :  { %2863 = vmatprep.subr.bf16.mxu0 %v4353_v60  ;;  %2949 = vmatprep.subr.bf16.mxu1 %v4356_v61 }
 0x1a4   :  { %2864 = vmatpush1.bf16.msra.mxu0 %v4351_v62  ;;  %2950 = vmatpush1.bf16.msra.mxu1 %v4354_v63 }
 0x1a5   :  { %2865 = vmatprep.subr.bf16.mxu0 %v4359_v0  ;;  %2951 = vmatprep.subr.bf16.mxu1 %v4362_v1  ;;  %v4393_v1 = vld [vmem:[#allocation8 + $0x200] ss:$16 sps:$4 sm:$0xff]  }
 0x1a8   :  { %2866 = vmatpush1.bf16.msra.mxu0 %v4357_v2  ;;  %2952 = vmatpush1.bf16.msra.mxu1 %v4360_v3  ;;  %v4396_v2 = vld [vmem:[#allocation8 + $0x208] ss:$16 sps:$4 sm:$0xff]   ;;  %v4401_v3 = vld [vmem:[#allocation8 + $0x224] ss:$16 sps:$4 sm:$0xff]  }
 0x1a9   :  { %2867 = vmatprep.subr.bf16.mxu0 %v4365_v4  ;;  %2953 = vmatprep.subr.bf16.mxu1 %v4368_v5  ;;  %v4404_v4 = vld [vmem:[#allocation8 + $0x22c] ss:$16 sps:$4 sm:$0xff]   ;;  %v4399_v5 = vld [vmem:[#allocation8 + $0x220] ss:$16 sps:$4 sm:$0xff]  }
 0x1ac   :  { %2868 = vmatpush1.bf16.msra.mxu0 %v4363_v6  ;;  %2954 = vmatpush1.bf16.msra.mxu1 %v4366_v7  ;;  %v4402_v6 = vld [vmem:[#allocation8 + $0x228] ss:$16 sps:$4 sm:$0xff]   ;;  %v4407_v7 = vld [vmem:[#allocation8 + $0x244] ss:$16 sps:$4 sm:$0xff]  }
 0x1ad   :  { %2869 = vmatprep.subr.bf16.mxu0 %v4371_v8  ;;  %2955 = vmatprep.subr.bf16.mxu1 %v4374_v9  ;;  %v4410_v8 = vld [vmem:[#allocation8 + $0x24c] ss:$16 sps:$4 sm:$0xff]   ;;  %v4405_v9 = vld [vmem:[#allocation8 + $0x240] ss:$16 sps:$4 sm:$0xff]  }
 0x1b0   :  { %2870 = vmatpush1.bf16.msra.mxu0 %v4369_v10  ;;  %2956 = vmatpush1.bf16.msra.mxu1 %v4372_v11  ;;  %v4408_v10 = vld [vmem:[#allocation8 + $0x248] ss:$16 sps:$4 sm:$0xff]   ;;  %v4413_v11 = vld [vmem:[#allocation8 + $0x264] ss:$16 sps:$4 sm:$0xff]  }
 0x1b1   :  { %2871 = vmatprep.subr.bf16.mxu0 %v4377_v12  ;;  %2957 = vmatprep.subr.bf16.mxu1 %v4380_v13  ;;  %v4416_v12 = vld [vmem:[#allocation8 + $0x26c] ss:$16 sps:$4 sm:$0xff]   ;;  %v4411_v13 = vld [vmem:[#allocation8 + $0x260] ss:$16 sps:$4 sm:$0xff]  }
 0x1b4   :  { %2872 = vmatpush1.bf16.msra.mxu0 %v4375_v14  ;;  %2958 = vmatpush1.bf16.msra.mxu1 %v4378_v15  ;;  %v4414_v14 = vld [vmem:[#allocation8 + $0x268] ss:$16 sps:$4 sm:$0xff]   ;;  %v4419_v15 = vld [vmem:[#allocation8 + $0x284] ss:$16 sps:$4 sm:$0xff]  }
 0x1b5   :  { %2873 = vmatprep.subr.bf16.mxu0 %v4383_v16  ;;  %2959 = vmatprep.subr.bf16.mxu1 %v4386_v17  ;;  %v4422_v16 = vld [vmem:[#allocation8 + $0x28c] ss:$16 sps:$4 sm:$0xff]   ;;  %v4417_v17 = vld [vmem:[#allocation8 + $0x280] ss:$16 sps:$4 sm:$0xff]  }
 0x1b8   :  { %2874 = vmatpush1.bf16.msra.mxu0 %v4381_v18  ;;  %2960 = vmatpush1.bf16.msra.mxu1 %v4384_v19  ;;  %v4420_v18 = vld [vmem:[#allocation8 + $0x288] ss:$16 sps:$4 sm:$0xff]   ;;  %v4425_v19 = vld [vmem:[#allocation8 + $0x2a4] ss:$16 sps:$4 sm:$0xff]  }
 0x1b9   :  { %2875 = vmatprep.subr.bf16.mxu0 %v4389_v20  ;;  %2961 = vmatprep.subr.bf16.mxu1 %v4392_v21  ;;  %v4428_v20 = vld [vmem:[#allocation8 + $0x2ac] ss:$16 sps:$4 sm:$0xff]   ;;  %v4423_v21 = vld [vmem:[#allocation8 + $0x2a0] ss:$16 sps:$4 sm:$0xff]  }
 0x1bc   :  { %2876 = vmatpush1.bf16.msra.mxu0 %v4387_v22  ;;  %2962 = vmatpush1.bf16.msra.mxu1 %v4390_v23  ;;  %v4426_v22 = vld [vmem:[#allocation8 + $0x2a8] ss:$16 sps:$4 sm:$0xff]   ;;  %v4431_v23 = vld [vmem:[#allocation8 + $0x2c4] ss:$16 sps:$4 sm:$0xff]  }
 0x1bd   :  { %2888 = vmatprep.subr.bf16.mxu0 %v4395_v24  ;;  %2974 = vmatprep.subr.bf16.mxu1 %v4398_v25  ;;  %v4434_v24 = vld [vmem:[#allocation8 + $0x2cc] ss:$16 sps:$4 sm:$0xff]   ;;  %v4429_v25 = vld [vmem:[#allocation8 + $0x2c0] ss:$16 sps:$4 sm:$0xff]  }
 0x252   :  { %v1862_v37 = vpop.f32.mrb[0].mxu0  ;;  %v2034_v38 = vpop.f32.mrb[0].mxu1 }
 0x253   :  { %v3850_v39 = vadd.f32 %v1862_v37, %v402_v33  ;;  %v3854_v40 = vadd.f32 %v2034_v38, %v410_v34  ;;  %v1864_v41 = vpop.f32.mrb[1].mxu0  ;;  %v2036_v42 = vpop.f32.mrb[1].mxu1  ;;  %v4446_v37 = vld [vmem:[#allocation8 + $0x30c] ss:$16 sps:$4 sm:$0xff]   ;;  %v4441_v38 = vld [vmem:[#allocation8 + $0x300] ss:$16 sps:$4 sm:$0xff]  }
 0x254   :  { %v3851_v43 = vadd.f32 %v1864_v41, %v406_v35  ;;  %v3855_v44 = vadd.f32 %v2036_v42, %v414_v36  ;;  %v1866_v45 = vpop.f32.mrb[2].mxu0  ;;  %v2038_v46 = vpop.f32.mrb[2].mxu1  ;;  %v4452_v41 = vld [vmem:[#allocation8 + $0x32c] ss:$16 sps:$4 sm:$0xff]   ;;  %v4447_v42 = vld [vmem:[#allocation8 + $0x320] ss:$16 sps:$4 sm:$0xff]  }
 0x255   :  { %v3852_v47 = vadd.f32 %v1866_v45, %v402_v33  ;;  %v3856_v48 = vadd.f32 %v2038_v46, %v410_v34  ;;  %v1868_v49 = vpop.f32.mrb[3].mxu0  ;;  %v2040_v50 = vpop.f32.mrb[3].mxu1  ;;  %v2043_v53 = vmax.f32 %v3850_v39, 0.0  ;;  %v2045_v54 = vmax.f32 %v3854_v40, 0.0  ;;  %v4440_v33 = vld [vmem:[#allocation8 + $0x2ec] ss:$16 sps:$4 sm:$0xff]  }
 0x256   :  { %v3853_v51 = vadd.f32 %v1868_v49, %v406_v35  ;;  %v3857_v52 = vadd.f32 %v2040_v50, %v414_v36  ;;  %v2044_v57 = vmax.f32 %v3851_v43, 0.0  ;;  %v2046_v58 = vmax.f32 %v3855_v44, 0.0  ;;  %v4435_v34 = vld [vmem:[#allocation8 + $0x2e0] ss:$16 sps:$4 sm:$0xff]   ;;  %v4438_v35 = vld [vmem:[#allocation8 + $0x2e8] ss:$16 sps:$4 sm:$0xff]  }
 0x257   :  { %v2047_v55 = vmax.f32 %v3852_v47, 0.0  ;;  %v2049_v56 = vmax.f32 %v3856_v48, 0.0  ;;  %v4443_v36 = vld [vmem:[#allocation8 + $0x304] ss:$16 sps:$4 sm:$0xff]   ;;  %v4444_v39 = vld [vmem:[#allocation8 + $0x308] ss:$16 sps:$4 sm:$0xff]  }
 0x258   :  { %v2048_v59 = vmax.f32 %v3853_v51, 0.0  ;;  %v2050_v60 = vmax.f32 %v3857_v52, 0.0  ;;  %v4449_v40 = vld [vmem:[#allocation8 + $0x324] ss:$16 sps:$4 sm:$0xff]   ;;  %v4450_v43 = vld [vmem:[#allocation8 + $0x328] ss:$16 sps:$4 sm:$0xff]  }
 0x259   :  { %v2180_v61 = vpack.c.bf16 %v2047_v55, %v2043_v53  ;;  %v4860_v62 = vpack.c.bf16 %v2049_v56, %v2045_v54  ;;  %v4455_v44 = vld [vmem:[#allocation8 + $0x344] ss:$16 sps:$4 sm:$0xff]   ;;  %v4458_v45 = vld [vmem:[#allocation8 + $0x34c] ss:$16 sps:$4 sm:$0xff]   ;;  %v4453_v46 = vld [vmem:[#allocation8 + $0x340] ss:$16 sps:$4 sm:$0xff]  }
 0x25a   :  { %v2181_v63 = vpack.c.bf16 %v2048_v59, %v2044_v57  ;;  %v2183_v0 = vpack.c.bf16 %v2050_v60, %v2046_v58  ;;  %v4456_v47 = vld [vmem:[#allocation8 + $0x348] ss:$16 sps:$4 sm:$0xff]   ;;  %v4461_v48 = vld [vmem:[#allocation8 + $0x364] ss:$16 sps:$4 sm:$0xff]   ;;  %v4464_v49 = vld [vmem:[#allocation8 + $0x36c] ss:$16 sps:$4 sm:$0xff]  }
 0x25b   :  { %v4459_v50 = vld [vmem:[#allocation8 + $0x360] ss:$16 sps:$4 sm:$0xff]   ;;  %v4462_v51 = vld [vmem:[#allocation8 + $0x368] ss:$16 sps:$4 sm:$0xff]   ;;  %v4467_v52 = vld [vmem:[#allocation8 + $0x384] ss:$16 sps:$4 sm:$0xff]  }
 0x25c   :  { %2877 = vmatprep.mubr.bf16.mxu0 %v2181_v63  ;;  %2963 = vmatprep.mubr.bf16.mxu1 %v2181_v63  ;;  %v4470_v53 = vld [vmem:[#allocation8 + $0x38c] ss:$16 sps:$4 sm:$0xff]   ;;  %v4465_v54 = vld [vmem:[#allocation8 + $0x380] ss:$16 sps:$4 sm:$0xff]   ;;  %v4468_v55 = vld [vmem:[#allocation8 + $0x388] ss:$16 sps:$4 sm:$0xff]  }
 0x25d   :  { %2878 = vmatmul.mubr.bf16.vlgmr.msra.gmra.mrb[4].mxu0 %v2180_v61  ;;  %2964 = vmatmul.mubr.bf16.vlgmr.msra.gmra.mrb[4].mxu1 %v2180_v61  ;;  %v4473_v56 = vld [vmem:[#allocation8 + $0x3a4] ss:$16 sps:$4 sm:$0xff]   ;;  %v4476_v57 = vld [vmem:[#allocation8 + $0x3ac] ss:$16 sps:$4 sm:$0xff]   ;;  %v4471_v58 = vld [vmem:[#allocation8 + $0x3a0] ss:$16 sps:$4 sm:$0xff]  }
 0x25e   :  { %2889 = vmatpush1.bf16.msra.mxu0 %v4393_v1  ;;  %2975 = vmatpush1.bf16.msra.mxu1 %v4396_v2  ;;  %v4474_v59 = vld [vmem:[#allocation8 + $0x3a8] ss:$16 sps:$4 sm:$0xff]   ;;  %v4479_v60 = vld [vmem:[#allocation8 + $0x3c4] ss:$16 sps:$4 sm:$0xff]   ;;  %v4482_v61 = vld [vmem:[#allocation8 + $0x3cc] ss:$16 sps:$4 sm:$0xff]  }
 0x25f   :  { %2920 = vmatprep.mubr.bf16.mxu0 %v2183_v0  ;;  %3006 = vmatprep.mubr.bf16.mxu1 %v2183_v0  ;;  %v4477_v63 = vld [vmem:[#allocation8 + $0x3c0] ss:$16 sps:$4 sm:$0xff]   ;;  %v4480_v0 = vld [vmem:[#allocation8 + $0x3c8] ss:$16 sps:$4 sm:$0xff]   ;;  %v4485_v1 = vld [vmem:[#allocation8 + $0x3e4] ss:$16 sps:$4 sm:$0xff]  }
 0x260   :  { %2890 = vmatprep.subr.bf16.mxu0 %v4401_v3  ;;  %2976 = vmatprep.subr.bf16.mxu1 %v4404_v4  ;;  %v4488_v2 = vld [vmem:[#allocation8 + $0x3ec] ss:$16 sps:$4 sm:$0xff]   ;;  %v4483_v3 = vld [vmem:[#allocation8 + $0x3e0] ss:$16 sps:$4 sm:$0xff]   ;;  %v4486_v4 = vld [vmem:[#allocation8 + $0x3e8] ss:$16 sps:$4 sm:$0xff]  }
 0x262   :  { %2891 = vmatpush1.bf16.msra.mxu0 %v4399_v5  ;;  %2977 = vmatpush1.bf16.msra.mxu1 %v4402_v6  ;;  %v4489_v5 = vld [vmem:[#allocation11 + $0x40] sm:$0xff]  }
 0x263   :  { %2892 = vmatprep.subr.bf16.mxu0 %v4407_v7  ;;  %2978 = vmatprep.subr.bf16.mxu1 %v4410_v8  ;;  %v4490_v6 = vld [vmem:[#allocation11 + $0xc0] sm:$0xff]  }
 0x264   :  { %v4491_v7 = vld [vmem:[#allocation11] sm:$0xff]  }
 0x265   :  { %v4492_v8 = vld [vmem:[#allocation11 + $0x80] sm:$0xff]  }
 0x266   :  { %2893 = vmatpush1.bf16.msra.mxu0 %v4405_v9  ;;  %2979 = vmatpush1.bf16.msra.mxu1 %v4408_v10  ;;  %v4493_v9 = vld [vmem:[#allocation11 + $0x48] sm:$0xff]  }
 0x267   :  { %2894 = vmatprep.subr.bf16.mxu0 %v4413_v11  ;;  %2980 = vmatprep.subr.bf16.mxu1 %v4416_v12  ;;  %v4494_v10 = vld [vmem:[#allocation11 + $0xc8] sm:$0xff]  }
 0x268   :  { %v4495_v11 = vld [vmem:[#allocation11 + $0x8] sm:$0xff]  }
 0x269   :  { %v4496_v12 = vld [vmem:[#allocation11 + $0x88] sm:$0xff]  }
 0x26a   :  { %2895 = vmatpush1.bf16.msra.mxu0 %v4411_v13  ;;  %2981 = vmatpush1.bf16.msra.mxu1 %v4414_v14  ;;  %v4497_v13 = vld [vmem:[#allocation11 + $0x50] sm:$0xff]  }
 0x26b   :  { %2896 = vmatprep.subr.bf16.mxu0 %v4419_v15  ;;  %2982 = vmatprep.subr.bf16.mxu1 %v4422_v16  ;;  %v4498_v14 = vld [vmem:[#allocation11 + $0xd0] sm:$0xff]  }
 0x26c   :  { %v4499_v15 = vld [vmem:[#allocation11 + $0x10] sm:$0xff]  }
 0x26d   :  { %v4500_v16 = vld [vmem:[#allocation11 + $0x90] sm:$0xff]  }
 0x26e   :  { %2897 = vmatpush1.bf16.msra.mxu0 %v4417_v17  ;;  %2983 = vmatpush1.bf16.msra.mxu1 %v4420_v18  ;;  %v4501_v17 = vld [vmem:[#allocation11 + $0x58] sm:$0xff]  }
 0x26f   :  { %2898 = vmatprep.subr.bf16.mxu0 %v4425_v19  ;;  %2984 = vmatprep.subr.bf16.mxu1 %v4428_v20  ;;  %v4502_v18 = vld [vmem:[#allocation11 + $0xd8] sm:$0xff]   ;;  %v4505_v20 = vld [vmem:[#allocation11 + $0x60] sm:$0xff]  }
 0x270   :  { %v4503_v19 = vld [vmem:[#allocation11 + $0x18] sm:$0xff]  }
 0x272   :  { %2899 = vmatpush1.bf16.msra.mxu0 %v4423_v21  ;;  %2985 = vmatpush1.bf16.msra.mxu1 %v4426_v22  ;;  %v4506_v21 = vld [vmem:[#allocation11 + $0xe0] sm:$0xff]  }
 0x273   :  { %2900 = vmatprep.subr.bf16.mxu0 %v4431_v23  ;;  %2986 = vmatprep.subr.bf16.mxu1 %v4434_v24  ;;  %v4507_v22 = vld [vmem:[#allocation11 + $0x20] sm:$0xff]   ;;  %v4509_v24 = vld [vmem:[#allocation11 + $0x68] sm:$0xff]  }
 0x274   :  { %v4508_v23 = vld [vmem:[#allocation11 + $0xa0] sm:$0xff]  }
 0x276   :  { %2901 = vmatpush1.bf16.msra.mxu0 %v4429_v25  ;;  %2987 = vmatpush1.bf16.msra.mxu1 %v4432_v26  ;;  %v4510_v25 = vld [vmem:[#allocation11 + $0xe8] sm:$0xff]  }
 0x277   :  { %2902 = vmatprep.subr.bf16.mxu0 %v4437_v30  ;;  %2988 = vmatprep.subr.bf16.mxu1 %v4440_v33  ;;  %v4511_v26 = vld [vmem:[#allocation11 + $0x28] sm:$0xff]   ;;  %v4513_v33 = vld [vmem:[#allocation11 + $0x70] sm:$0xff]  }
 0x278   :  { %v4512_v30 = vld [vmem:[#allocation11 + $0xa8] sm:$0xff]  }
 0x27a   :  { %2903 = vmatpush1.bf16.msra.mxu0 %v4435_v34  ;;  %2989 = vmatpush1.bf16.msra.mxu1 %v4438_v35  ;;  %v4514_v34 = vld [vmem:[#allocation11 + $0xf0] sm:$0xff]  }
 0x27b   :  { %2904 = vmatprep.subr.bf16.mxu0 %v4443_v36  ;;  %2990 = vmatprep.subr.bf16.mxu1 %v4446_v37  ;;  %v4515_v35 = vld [vmem:[#allocation11 + $0x30] sm:$0xff]   ;;  %v4517_v37 = vld [vmem:[#allocation11 + $0x78] sm:$0xff]  }
 0x27c   :  { %v4516_v36 = vld [vmem:[#allocation11 + $0xb0] sm:$0xff]  }
 0x27e   :  { %2905 = vmatpush1.bf16.msra.mxu0 %v4441_v38  ;;  %2991 = vmatpush1.bf16.msra.mxu1 %v4444_v39  ;;  %v4518_v38 = vld [vmem:[#allocation11 + $0xf8] sm:$0xff]  }
 0x27f   :  { %2906 = vmatprep.subr.bf16.mxu0 %v4449_v40  ;;  %2992 = vmatprep.subr.bf16.mxu1 %v4452_v41  ;;  %v4519_v39 = vld [vmem:[#allocation11 + $0x38] sm:$0xff]  }
 0x280   :  { %v4520_v40 = vld [vmem:[#allocation11 + $0xb8] sm:$0xff]  }
 0x281   :  { %v2179_v41 = vld [vmem:[#allocation10] sm:$0xf] }
 0x282   :  { %2907 = vmatpush1.bf16.msra.mxu0 %v4447_v42  ;;  %2993 = vmatpush1.bf16.msra.mxu1 %v4450_v43  ;;  %v2188_v42 = vrot.slane %v2179_v41, %v401_v28  ;;  %v2196_v43 = vrot.slane %v2179_v41, %v409_v29 }
 0x283   :  { %2908 = vmatprep.subr.bf16.mxu0 %v4455_v44  ;;  %2994 = vmatprep.subr.bf16.mxu1 %v4458_v45 }
 0x286   :  { %2909 = vmatpush1.bf16.msra.mxu0 %v4453_v46  ;;  %2995 = vmatpush1.bf16.msra.mxu1 %v4456_v47  ;;  %v2192_v46 = vrot.slane %v2179_v41, %v405_v31  ;;  %v2200_v47 = vrot.slane %v2179_v41, %v413_v32 }
 0x287   :  { %2910 = vmatprep.subr.bf16.mxu0 %v4461_v48  ;;  %2996 = vmatprep.subr.bf16.mxu1 %v4464_v49 }
 0x28a   :  { %2911 = vmatpush1.bf16.msra.mxu0 %v4459_v50  ;;  %2997 = vmatpush1.bf16.msra.mxu1 %v4462_v51 }
 0x28b   :  { %2912 = vmatprep.subr.bf16.mxu0 %v4467_v52  ;;  %2998 = vmatprep.subr.bf16.mxu1 %v4470_v53 }
 0x28e   :  { %2913 = vmatpush1.bf16.msra.mxu0 %v4465_v54  ;;  %2999 = vmatpush1.bf16.msra.mxu1 %v4468_v55 }
 0x28f   :  { %2914 = vmatprep.subr.bf16.mxu0 %v4473_v56  ;;  %3000 = vmatprep.subr.bf16.mxu1 %v4476_v57 }
 0x292   :  { %2915 = vmatpush1.bf16.msra.mxu0 %v4471_v58  ;;  %3001 = vmatpush1.bf16.msra.mxu1 %v4474_v59 }
 0x293   :  { %2916 = vmatprep.subr.bf16.mxu0 %v4479_v60  ;;  %3002 = vmatprep.subr.bf16.mxu1 %v4482_v61 }
 0x296   :  { %2917 = vmatpush1.bf16.msra.mxu0 %v4477_v63  ;;  %3003 = vmatpush1.bf16.msra.mxu1 %v4480_v0  ;;  %v3773_v0 = vld [vmem:[#allocation13] ss:$0 sm:$0xff] }
 0x297   :  { %2918 = vmatprep.subr.bf16.mxu0 %v4485_v1  ;;  %3004 = vmatprep.subr.bf16.mxu1 %v4488_v2 }
 0x29a   :  { %2919 = vmatpush1.bf16.msra.mxu0 %v4483_v3  ;;  %3005 = vmatpush1.bf16.msra.mxu1 %v4486_v4 }
 0x29b   :  { %3806 = vmatprep.subr.bf16.mxu0 %v4489_v5  ;;  %3828 = vmatprep.subr.bf16.mxu1 %v4490_v6 }
 0x29d   :  { %2921 = vmatmul.mubr.bf16.vlgmr.msra.gmra.mrb[4].mxu0 %v4860_v62  ;;  %3007 = vmatmul.mubr.bf16.vlgmr.msra.gmra.mrb[4].mxu1 %v4860_v62  ;;  %v4504_v62 = vld [vmem:[#allocation11 + $0x98] sm:$0xff]  }
 0x29e   :  { %3807 = vmatpush3.bf16.msra.mxu0 %v4491_v7  ;;  %3829 = vmatpush3.bf16.msra.mxu1 %v4492_v8 }
 0x29f   :  { %3808 = vmatprep.subr.bf16.mxu0 %v4493_v9  ;;  %3830 = vmatprep.subr.bf16.mxu1 %v4494_v10 }
 0x2a2   :  { %3809 = vmatpush3.bf16.msra.mxu0 %v4495_v11  ;;  %3831 = vmatpush3.bf16.msra.mxu1 %v4496_v12 }
 0x2a3   :  { %3810 = vmatprep.subr.bf16.mxu0 %v4497_v13  ;;  %3832 = vmatprep.subr.bf16.mxu1 %v4498_v14 }
 0x2a6   :  { %3811 = vmatpush3.bf16.msra.mxu0 %v4499_v15  ;;  %3833 = vmatpush3.bf16.msra.mxu1 %v4500_v16 }
 0x2a7   :  { %3812 = vmatprep.subr.bf16.mxu0 %v4501_v17  ;;  %3834 = vmatprep.subr.bf16.mxu1 %v4502_v18 }
 0x2aa   :  { %3813 = vmatpush3.bf16.msra.mxu0 %v4503_v19  ;;  %3835 = vmatpush3.bf16.msra.mxu1 %v4504_v62 }
 0x2ab   :  { %3814 = vmatprep.subr.bf16.mxu0 %v4505_v20  ;;  %3836 = vmatprep.subr.bf16.mxu1 %v4506_v21 }
 0x2ae   :  { %3815 = vmatpush3.bf16.msra.mxu0 %v4507_v22  ;;  %3837 = vmatpush3.bf16.msra.mxu1 %v4508_v23 }
 0x2af   :  { %3816 = vmatprep.subr.bf16.mxu0 %v4509_v24  ;;  %3838 = vmatprep.subr.bf16.mxu1 %v4510_v25 }
 0x2b2   :  { %3817 = vmatpush3.bf16.msra.mxu0 %v4511_v26  ;;  %3839 = vmatpush3.bf16.msra.mxu1 %v4512_v30 }
 0x2b3   :  { %3818 = vmatprep.subr.bf16.mxu0 %v4513_v33  ;;  %3840 = vmatprep.subr.bf16.mxu1 %v4514_v34 }
 0x2b6   :  { %3819 = vmatpush3.bf16.msra.mxu0 %v4515_v35  ;;  %3841 = vmatpush3.bf16.msra.mxu1 %v4516_v36 }
 0x2b7   :  { %3820 = vmatprep.subr.bf16.mxu0 %v4517_v37  ;;  %3842 = vmatprep.subr.bf16.mxu1 %v4518_v38 }
 0x2ba   :  { %3821 = vmatpush3.bf16.msra.mxu0 %v4519_v39  ;;  %3843 = vmatpush3.bf16.msra.mxu1 %v4520_v40 }
 0x370   :  { %v2922_v44 = vpop.f32.mrb[4].mxu0  ;;  %v3008_v45 = vpop.f32.mrb[4].mxu1 }
 0x371   :  { %v2924_v48 = vpop.f32.mrb[5].mxu0  ;;  %v3010_v49 = vpop.f32.mrb[5].mxu1  ;;  %v3858_v52 = vadd.f32 %v2922_v44, %v2188_v42  ;;  %v3862_v53 = vadd.f32 %v3008_v45, %v2196_v43 }
 0x372   :  { %v2926_v50 = vpop.f32.mrb[6].mxu0  ;;  %v3012_v51 = vpop.f32.mrb[6].mxu1  ;;  %v3859_v57 = vadd.f32 %v2924_v48, %v2192_v46  ;;  %v3863_v29 = vadd.f32 %v3010_v49, %v2200_v47 }
 0x373   :  { %v3860_v54 = vadd.f32 %v2926_v50, %v2188_v42  ;;  %v3864_v55 = vadd.f32 %v3012_v51, %v2196_v43  ;;  %v2928_v28 = vpop.f32.mrb[7].mxu0  ;;  %v3014_v56 = vpop.f32.mrb[7].mxu1 }
 0x374   :  { %v3861_v58 = vadd.f32 %v2928_v28, %v2192_v46  ;;  %v3865_v59 = vadd.f32 %v3014_v56, %v2200_v47 }
 0x375   :  { %v3082_v60 = vpack.c.bf16 %v3860_v54, %v3858_v52  ;;  %v3084_v61 = vpack.c.bf16 %v3864_v55, %v3862_v53 }
 0x376   :  { %v3083_v31 = vpack.c.bf16 %v3861_v58, %v3859_v57  ;;  %v3085_v63 = vpack.c.bf16 %v3865_v59, %v3863_v29 }
 0x378   :  { %3316 = vmatprep.mubr.bf16.mxu0 %v3083_v31  ;;  %3357 = vmatprep.mubr.bf16.mxu1 %v3085_v63 }
 0x379   :  { %3317 = vmatmul.mubr.bf16.vlgmr.msra.gmra.mrb[8].mxu0 %v3082_v60  ;;  %3358 = vmatmul.mubr.bf16.vlgmr.msra.gmra.mrb[8].mxu1 %v3084_v61 }
 0x44c   :  { %v3822_v27 = vpop.f32.mrb[8].mxu0  ;;  %v3844_v32 = vpop.f32.mrb[8].mxu1 }
 0x44d   :  { %v3823_v1 = vpop.f32.mrb[9].mxu0  ;;  %v3845_v2 = vpop.f32.mrb[9].mxu1 }
 0x44e   :  { %v3824_v3 = vadd.f32 %v3823_v1, %v3822_v27  ;;  %v3846_v4 = vadd.f32 %v3845_v2, %v3844_v32  ;;  %v3825_v5 = vpop.f32.mrb[10].mxu0  ;;  %v3847_v6 = vpop.f32.mrb[10].mxu1 }
 0x44f   :  { %v3826_v7 = vpop.f32.mrb[11].mxu0  ;;  %v3848_v8 = vpop.f32.mrb[11].mxu1 }
 0x450   :  { %v3319_v9 = vadd.f32 %v3824_v3, %v3773_v0  ;;  %v3827_v10 = vadd.f32 %v3826_v7, %v3825_v5  ;;  %v3849_v11 = vadd.f32 %v3848_v8, %v3847_v6 }
 0x452   :  { %v3360_v12 = vadd.f32 %v3846_v4, %v3319_v9  ;;  %v3322_v13 = vadd.f32 %v3827_v10, %v3773_v0 }
 0x454   :  { %3367 = vst.msk [vmem:[#allocation14] sm:$0xff] %vm3366_vm0, %v3360_v12  ;;  %v3363_v14 = vadd.f32 %v3849_v11, %v3322_v13 }
 0x456   :  { %3368 = vst.msk [vmem:[#allocation14 + $0x8] sm:$0xff] %vm3366_vm0, %v3363_v14 }
 0x457   :  { %4686 = shalt.err (!%p4683_p4)
}
 0x458   :  { %s4687_s3 = scalar_lea.hbm %s4891_s7, 256 }
 0x459   :  { %p4688_p5 = scmp.ne.s32.totalorder %s4891_s7, %s4687_s3  ;;  %p4691_p6 = scmp.lt.u32.totalorder %s4687_s3, %s4891_s7 }
 0x45b   :  { %p4693_p7 = pnand %p4691_p6, %p4688_p5 }
 0x45d   :  { %4696 = shalt.err (!%p4693_p7)
}
 0x45e   :  { %s4720_s19 = smov 128   ;;  %s4721_s20 = smov 8  }
 0x45f   :  { %3380 = dma.vmem_to_hbm [thread:$0]  %s3375_s14, 256, %s4891_s7, [#allocation4], %s4720_s19, %s4720_s19, %s4721_s20  }
 0x460   :  { %4705 = dma.done.wait [#allocation4], 256  }
 0x461   :  { %4706 = vsyncadd [#allocation4], 4294967040 }
 0x462   :  { %3384 = vsyncpa [#allocation3], 1 }
 0x463   :  { %3385 = vsyncpa [#allocation6], 1 }
 0x464   :  { %3386 = vsyncpa [#allocation9], 1 }
 0x465   :  { %3387 = vsyncpa [#allocation12], 1 }
 0x466   :  { %3388 = vsyncpa [#allocation4], 1 }

</bundles_post_ra>
